<compile_context>
chip_gen: v7x
topology: tpu7x:2x2x1
jax: 0.10.0
libtpu: 0.0.40
codegen_flags: <defaults>
</compile_context>

<pallas_src>
import functools
import math

import jax
import jax.numpy as jnp
from jax.experimental import pallas as pl
from jax.experimental.pallas import tpu as pltpu

KSIZE = 7
PAD = 3


def _gelu_exact(x):
    # nn.GELU() default: exact erf-based GELU.
    return 0.5 * x * (1.0 + jax.lax.erf(x * (1.0 / math.sqrt(2.0))))


# --------------------------------------------------------------- fused kernel
def _arblock_kernel(x_ref, k_ref, kb_ref, w1_ref, b1_ref, w2_ref, b2_ref,
                    o_ref, xpad_ref, *, H, W, h_tile, eps, mm_dtype):
    """One grid step: rows [h*h_tile, (h+1)*h_tile) of batch element n.

    x_ref   : (1, H, W, C)      full NHWC image for batch n (fetched once per n)
    k_ref   : (7, 7, C)         fused depthwise kernel (ACBlock, eval-mode BN)
    kb_ref  : (1, C)            fused depthwise bias
    w1_ref  : (C, 4C)           pwconv1 weight, LayerNorm affine folded in
    b1_ref  : (1, 4C)           pwconv1 bias,  LayerNorm affine folded in
    w2_ref  : (4C, C)           pwconv2 weight, layer-scale gamma folded in
    b2_ref  : (1, C)            pwconv2 bias,  layer-scale gamma folded in
    o_ref   : (1, h_tile, W, C) output tile
    xpad_ref: (H+6, W+6, C)     VMEM scratch: zero-padded copy of the image
    """
    h = pl.program_id(1)
    C = k_ref.shape[-1]

    # Build the zero-padded slab in VMEM once per batch element (no HBM pad).
    @pl.when(h == 0)
    def _():
        xpad_ref[...] = jnp.zeros_like(xpad_ref)
        xpad_ref[PAD:PAD + H, PAD:PAD + W, :] = x_ref[0]

    r0 = pl.multiple_of(h * h_tile, h_tile)

    # ---- depthwise 7x7 conv on this H tile (VPU MACs, f32 accumulation) -----
    xs = xpad_ref[pl.ds(r0, h_tile + 2 * PAD), :, :].astype(jnp.float32)  # (ht+6, W+6, C)
    k = k_ref[...].astype(jnp.float32)                                    # (7, 7, C)
    kb = kb_ref[...].astype(jnp.float32).reshape(1, 1, C)
    acc = jnp.broadcast_to(kb, (h_tile, W, C))        # init with fused dw bias
    for dh in range(KSIZE):
        xrow = xs[dh:dh + h_tile]                     # cheap leading-axis slice
        for dw in range(KSIZE):
            acc = acc + xrow[:, dw:dw + W, :] * k[dh:dh + 1, dw:dw + 1, :]

    # ---- LayerNorm over C (affine folded into w1/b1) + 1x1 MLP --------------
    R = h_tile * W
    y2 = acc.reshape(R, C)
    u = jnp.mean(y2, axis=-1, keepdims=True)
    d = y2 - u
    var = jnp.mean(d * d, axis=-1, keepdims=True)
    yn = d * jax.lax.rsqrt(var + eps)                 # EUP rsqrt, no VPU divide

    hid = jnp.dot(yn.astype(mm_dtype), w1_ref[...],
                  preferred_element_type=jnp.float32)
    hid = hid + b1_ref[...].astype(jnp.float32)
    hid = _gelu_exact(hid)
    z = jnp.dot(hid.astype(mm_dtype), w2_ref[...],
                preferred_element_type=jnp.float32)
    z = z + b2_ref[...].astype(jnp.float32)           # gamma already folded in

    # ---- residual (drop_path = 0.0 -> identity) -----------------------------
    xres = x_ref[0, pl.ds(r0, h_tile), :, :].astype(jnp.float32).reshape(R, C)
    out = xres + z
    o_ref[0] = out.reshape(h_tile, W, C).astype(o_ref.dtype)


# ------------------------------------------------------------------ wrappers
def _pick_h_tile(H, W, target_rows=2048):
    """Largest divisor of H whose tile has at most `target_rows` MLP rows."""
    divs = [h for h in range(1, H + 1) if H % h == 0]
    fits = [h for h in divs if h * W <= target_rows]
    return max(fits) if fits else 1


def arblock_nhwc(x_nhwc, params, *, eps=1e-6, use_bf16=True, h_tile=None):
    """Fused ARBlock forward on NHWC activations (preferred entry point)."""
    N, H, W, C = x_nhwc.shape
    C4 = 4 * C
    if h_tile is None:
        h_tile = _pick_h_tile(H, W)
    assert H % h_tile == 0, "h_tile must divide H"
    HT = H // h_tile

    mm_dtype = jnp.bfloat16 if use_bf16 else jnp.float32

    dwk = params["dw_kernel"]                                   # (7, 7, C)
    dwb = params["dw_bias"].reshape(1, C)

    gamma = params.get("gamma")
    if gamma is None:                                           # layer_scale off
        gamma = jnp.ones((C,), jnp.float32)

    # Fold the LayerNorm affine into pwconv1 and layer-scale gamma into pwconv2.
    w1 = (params["ln_w"][:, None] * params["w1"]).astype(mm_dtype)       # (C, 4C)
    b1 = (params["b1"] + params["ln_b"] @ params["w1"]).reshape(1, C4)   # f32
    w2 = (params["w2"] * gamma[None, :]).astype(mm_dtype)                # (4C, C)
    b2 = (params["b2"] * gamma).reshape(1, C)                            # f32

    # Explicit VMEM budget: estimate, then clamp to a safe range.
    itemsize = jnp.dtype(x_nhwc.dtype).itemsize
    mm_itemsize = jnp.dtype(mm_dtype).itemsize
    est = (2 * H * W * C * itemsize                          # input slab, dbl-buffered
           + 2 * h_tile * W * C * itemsize                   # output tile, dbl-buffered
           + (H + 2 * PAD) * (W + 2 * PAD) * C * itemsize    # padded VMEM scratch
           + 2 * 2 * C * C4 * mm_itemsize                    # w1 + w2, dbl-buffered
           + 4 * h_tile * W * (4 * C + C4))                  # f32 conv acc + MLP hidden
    vmem_limit = int(min(max(2 * est, 32 * 1024 * 1024), 96 * 1024 * 1024))

    kernel = functools.partial(_arblock_kernel, H=H, W=W, h_tile=h_tile,
                               eps=eps, mm_dtype=mm_dtype)

    return pl.pallas_call(
        kernel,
        out_shape=jax.ShapeDtypeStruct((N, H, W, C), x_nhwc.dtype),
        grid_spec=pltpu.PrefetchScalarGridSpec(
            num_scalar_prefetch=0,
            grid=(N, HT),
            in_specs=[
                pl.BlockSpec((1, H, W, C), lambda n, h: (n, 0, 0, 0)),
                pl.BlockSpec((KSIZE, KSIZE, C), lambda n, h: (0, 0, 0)),
                pl.BlockSpec((1, C), lambda n, h: (0, 0)),
                pl.BlockSpec((C, C4), lambda n, h: (0, 0)),
                pl.BlockSpec((1, C4), lambda n, h: (0, 0)),
                pl.BlockSpec((C4, C), lambda n, h: (0, 0)),
                pl.BlockSpec((1, C), lambda n, h: (0, 0)),
            ],
            out_specs=pl.BlockSpec((1, h_tile, W, C), lambda n, h: (n, h, 0, 0)),
            scratch_shapes=[pltpu.VMEM((H + 2 * PAD, W + 2 * PAD, C), x_nhwc.dtype)],
        ),
        compiler_params=pltpu.CompilerParams(
            dimension_semantics=("parallel", "arbitrary"),
            vmem_limit_bytes=vmem_limit),
        input_output_aliases={0: 0},   # residual input may reuse the output HBM buffer
    )(x_nhwc, dwk, dwb, w1, b1, w2, b2)


def arblock(x_nchw, params, *, eps=1e-6, use_bf16=True, h_tile=None):
    """NCHW interface matching the PyTorch module. In a real network keep
    activations NHWC across blocks and call arblock_nhwc directly; these two
    transposes exist only for interface parity with the NCHW spec."""
    x = jnp.transpose(x_nchw, (0, 2, 3, 1))
    y = arblock_nhwc(x, params, eps=eps, use_bf16=use_bf16, h_tile=h_tile)
    return jnp.transpose(y, (0, 3, 1, 2))


# --------------------------- ACBlock fusion (plain-JAX glue, inference BN) ---
def fuse_acblock(wsq, wver, whor, bn_sq, bn_ver, bn_hor, bn_eps=1e-5):
    """Fuse square(7x7)+vertical(7x1)+horizontal(1x7) depthwise convs, each
    followed by eval-mode BatchNorm, into one (7,7,C) kernel + (C,) bias."""
    def scale_bias(bn):
        g, b, m, v = bn
        s = g / jnp.sqrt(v + bn_eps)
        return s, b - m * s

    s_sq, b_sq = scale_bias(bn_sq)
    s_v, b_v = scale_bias(bn_ver)
    s_h, b_h = scale_bias(bn_hor)
    k = wsq[:, 0] * s_sq[:, None, None]                                   # (C,7,7)
    k = k.at[:, :, KSIZE // 2].add(wver[:, 0, :, 0] * s_v[:, None])       # center col
    k = k.at[:, KSIZE // 2, :].add(whor[:, 0, 0, :] * s_h[:, None])       # center row
    bias = b_sq + b_v + b_h
    return jnp.transpose(k, (1, 2, 0)), bias                              # (7,7,C),(C,)


# --------------------------------------------------- pure-JAX reference ------
def reference(x_nchw, params, eps=1e-6):
    N, C, H, W = x_nchw.shape
    k = jnp.transpose(params["dw_kernel"], (2, 0, 1))[:, None]            # (C,1,7,7)
    y = jax.lax.conv_general_dilated(
        x_nchw, k, window_strides=(1, 1), padding=((PAD, PAD), (PAD, PAD)),
        dimension_numbers=("NCHW", "OIHW", "NCHW"), feature_group_count=C)
    y = y + params["dw_bias"][None, :, None, None]
    u = y.mean(1, keepdims=True)
    s = ((y - u) ** 2).mean(1, keepdims=True)
    y = (y - u) / jnp.sqrt(s + eps)
    y = params["ln_w"][None, :, None, None] * y + params["ln_b"][None, :, None, None]
    h = jnp.einsum("nchw,cf->nfhw", y, params["w1"]) + params["b1"][None, :, None, None]
    h = _gelu_exact(h)
    z = jnp.einsum("nfhw,fc->nchw", h, params["w2"]) + params["b2"][None, :, None, None]
    z = z * params["gamma"][None, :, None, None]
    return x_nchw + z


if __name__ == "__main__":
    dim = 4
    N, H, W = 2, 16, 16
    key = jax.random.PRNGKey(0)
    ks = jax.random.split(key, 10)

    # ACBlock branch weights (depthwise, groups=dim): (C,1,7,7), (C,1,7,1), (C,1,1,7)
    wsq = 0.1 * jax.random.normal(ks[0], (dim, 1, KSIZE, KSIZE), jnp.float32)
    wver = 0.1 * jax.random.normal(ks[1], (dim, 1, KSIZE, 1), jnp.float32)
    whor = 0.1 * jax.random.normal(ks[2], (dim, 1, 1, KSIZE), jnp.float32)
    bn_default = (jnp.ones(dim), jnp.zeros(dim), jnp.zeros(dim), jnp.ones(dim))
    dw_kernel, dw_bias = fuse_acblock(wsq, wver, whor, bn_default, bn_default, bn_default)

    params = {
        "dw_kernel": dw_kernel,
        "dw_bias": dw_bias,
        # Non-trivial LN affine so the w1/b1 folding is actually exercised.
        "ln_w": 1.0 + 0.1 * jax.random.normal(ks[3], (dim,), jnp.float32),
        "ln_b": 0.1 * jax.random.normal(ks[4], (dim,), jnp.float32),
        "w1": 0.1 * jax.random.normal(ks[5], (dim, 4 * dim), jnp.float32),
        "b1": 0.1 * jax.random.normal(ks[6], (4 * dim,), jnp.float32),
        "w2": 0.1 * jax.random.normal(ks[7], (4 * dim, dim), jnp.float32),
        "b2": 0.1 * jax.random.normal(ks[8], (dim,), jnp.float32),
        # layer_scale_init_value default is 1e-6; 0.5 keeps the branch visible.
        "gamma": 0.5 * jnp.ones(dim, jnp.float32),
    }

    x = jax.random.normal(ks[9], (N, dim, H, W), jnp.float32)

    ref = jax.block_until_ready(reference(x, params))
    run = jax.jit(arblock, static_argnames=("eps", "use_bf16", "h_tile"))

    # 1) f32 MXU path, multi-H-tile grid (exercises the halo-scratch reuse).
    out_f32 = jax.block_until_ready(run(x, params, use_bf16=False, h_tile=4))
    assert out_f32.shape == x.shape and out_f32.dtype == x.dtype
    assert jnp.allclose(out_f32, ref, atol=1e-4, rtol=1e-4), "f32 path mismatch"

    # 2) default path: bf16 MXU operands (f32 accumulation), auto tile size.
    out_bf16 = jax.block_until_ready(run(x, params))
    assert out_bf16.shape == x.shape and out_bf16.dtype == x.dtype
    assert jnp.allclose(out_bf16, ref, atol=2e-2, rtol=2e-2), "bf16 path mismatch"

    print("KERNEL_OK")
</pallas_src>

<mosaic_0001>
module attributes {stable_mosaic.version = 11 : i64} {
  func.func @_arblock_kernel(%arg0: i32, %arg1: i32, %arg2: memref<1x16x16x4xf32, #tpu.memory_space<vmem>>, %arg3: memref<7x7x4xf32, #tpu.memory_space<vmem>>, %arg4: memref<1x4xf32, #tpu.memory_space<vmem>>, %arg5: memref<4x16xf32, #tpu.memory_space<vmem>>, %arg6: memref<1x16xf32, #tpu.memory_space<vmem>>, %arg7: memref<16x4xf32, #tpu.memory_space<vmem>>, %arg8: memref<1x4xf32, #tpu.memory_space<vmem>>, %arg9: memref<1x4x16x4xf32, #tpu.memory_space<vmem>>, %arg10: memref<22x22x4xf32, #tpu.memory_space<vmem>>) attributes {dimension_semantics = [#tpu.dimension_semantics<parallel>, #tpu.dimension_semantics<arbitrary>], iteration_bounds = array<i64: 2, 4>, scalar_prefetch = 0 : i64, scratch_operands = 1 : i64, tpu.core_type = #tpu.core_type<tc>, window_params = [{transform_indices = @transform_0, window_bounds = array<i64: 1, 16, 16, 4>}, {pipeline_mode = #tpu.pipeline_mode<synchronous>, transform_indices = @transform_1, window_bounds = array<i64: 7, 7, 4>}, {pipeline_mode = #tpu.pipeline_mode<synchronous>, transform_indices = @transform_2, window_bounds = array<i64: 1, 4>}, {pipeline_mode = #tpu.pipeline_mode<synchronous>, transform_indices = @transform_3, window_bounds = array<i64: 4, 16>}, {pipeline_mode = #tpu.pipeline_mode<synchronous>, transform_indices = @transform_4, window_bounds = array<i64: 1, 16>}, {pipeline_mode = #tpu.pipeline_mode<synchronous>, transform_indices = @transform_5, window_bounds = array<i64: 16, 4>}, {pipeline_mode = #tpu.pipeline_mode<synchronous>, transform_indices = @transform_6, window_bounds = array<i64: 1, 4>}, {transform_indices = @transform_7, window_bounds = array<i64: 1, 4, 16, 4>}]} {
    %c0_i32 = arith.constant 0 : i32
    %0 = arith.cmpi eq, %arg1, %c0_i32 : i32
    %1 = arith.extui %0 : i1 to i32
    %c0_i32_0 = arith.constant 0 : i32
    %2 = arith.cmpi ne, %1, %c0_i32_0 : i32
    scf.if %2 {
      %cst_31 = arith.constant 0.000000e+00 : f32
      %308 = vector.broadcast %cst_31 : f32 to vector<22x22x4xf32>
      %c0_32 = arith.constant 0 : index
      %c0_33 = arith.constant 0 : index
      %c0_34 = arith.constant 0 : index
      %309 = vector.load %arg10[%c0_32, %c0_33, %c0_34] : memref<22x22x4xf32, #tpu.memory_space<vmem>>, vector<22x22x4xf32>
      tpu.vector_store %arg10[%c0_32, %c0_33, %c0_34], %308 {strides = array<i32>} : memref<22x22x4xf32, #tpu.memory_space<vmem>>, vector<22x22x4xf32>,
      %c0_35 = arith.constant 0 : index
      %c0_36 = arith.constant 0 : index
      %c0_37 = arith.constant 0 : index
      %c0_38 = arith.constant 0 : index
      %310 = vector.load %arg2[%c0_35, %c0_36, %c0_37, %c0_38] : memref<1x16x16x4xf32, #tpu.memory_space<vmem>>, vector<1x16x16x4xf32>
      %311 = vector.shape_cast %310 : vector<1x16x16x4xf32> to vector<16x16x4xf32>
      %c3 = arith.constant 3 : index
      %c3_39 = arith.constant 3 : index
      %c0_40 = arith.constant 0 : index
      %312 = vector.load %arg10[%c3, %c3_39, %c0_40] : memref<22x22x4xf32, #tpu.memory_space<vmem>>, vector<16x16x4xf32>
      tpu.vector_store %arg10[%c3, %c3_39, %c0_40], %311 {strides = array<i32>} : memref<22x22x4xf32, #tpu.memory_space<vmem>>, vector<16x16x4xf32>,
    } else {
    }
    %c4_i32 = arith.constant 4 : i32
    %3 = arith.muli %arg1, %c4_i32 : i32
    %4 = tpu.assume_multiple %3, 4 : i32
    %5 = arith.index_cast %4 : i32 to index
    %c0 = arith.constant 0 : index
    %c0_1 = arith.constant 0 : index
    %6 = vector.load %arg10[%5, %c0, %c0_1] : memref<22x22x4xf32, #tpu.memory_space<vmem>>, vector<10x22x4xf32>
    %c0_2 = arith.constant 0 : index
    %c0_3 = arith.constant 0 : index
    %c0_4 = arith.constant 0 : index
    %7 = vector.load %arg3[%c0_2, %c0_3, %c0_4] : memref<7x7x4xf32, #tpu.memory_space<vmem>>, vector<7x7x4xf32>
    %c0_5 = arith.constant 0 : index
    %c0_6 = arith.constant 0 : index
    %8 = vector.load %arg4[%c0_5, %c0_6] : memref<1x4xf32, #tpu.memory_space<vmem>>, vector<1x4xf32>
    %9 = vector.shape_cast %8 : vector<1x4xf32> to vector<1x1x4xf32>
    %10 = vector.shape_cast %9 : vector<1x1x4xf32> to vector<1x1x4xf32>
    %11 = vector.broadcast %10 : vector<1x1x4xf32> to vector<4x16x4xf32>
    %12 = vector.extract_strided_slice %6 {offsets = [0, 0, 0], sizes = [4, 22, 4], strides = [1, 1, 1]} : vector<10x22x4xf32> to vector<4x22x4xf32>
    %13 = vector.extract_strided_slice %12 {offsets = [0, 0, 0], sizes = [4, 16, 4], strides = [1, 1, 1]} : vector<4x22x4xf32> to vector<4x16x4xf32>
    %14 = vector.extract_strided_slice %7 {offsets = [0, 0, 0], sizes = [1, 1, 4], strides = [1, 1, 1]} : vector<7x7x4xf32> to vector<1x1x4xf32>
    %15 = vector.broadcast %14 : vector<1x1x4xf32> to vector<4x16x4xf32>
    %16 = arith.mulf %13, %15 : vector<4x16x4xf32>
    %17 = arith.addf %11, %16 : vector<4x16x4xf32>
    %18 = vector.extract_strided_slice %12 {offsets = [0, 1, 0], sizes = [4, 16, 4], strides = [1, 1, 1]} : vector<4x22x4xf32> to vector<4x16x4xf32>
    %19 = vector.extract_strided_slice %7 {offsets = [0, 1, 0], sizes = [1, 1, 4], strides = [1, 1, 1]} : vector<7x7x4xf32> to vector<1x1x4xf32>
    %20 = vector.broadcast %19 : vector<1x1x4xf32> to vector<4x16x4xf32>
    %21 = arith.mulf %18, %20 : vector<4x16x4xf32>
    %22 = arith.addf %17, %21 : vector<4x16x4xf32>
    %23 = vector.extract_strided_slice %12 {offsets = [0, 2, 0], sizes = [4, 16, 4], strides = [1, 1, 1]} : vector<4x22x4xf32> to vector<4x16x4xf32>
    %24 = vector.extract_strided_slice %7 {offsets = [0, 2, 0], sizes = [1, 1, 4], strides = [1, 1, 1]} : vector<7x7x4xf32> to vector<1x1x4xf32>
    %25 = vector.broadcast %24 : vector<1x1x4xf32> to vector<4x16x4xf32>
    %26 = arith.mulf %23, %25 : vector<4x16x4xf32>
    %27 = arith.addf %22, %26 : vector<4x16x4xf32>
    %28 = vector.extract_strided_slice %12 {offsets = [0, 3, 0], sizes = [4, 16, 4], strides = [1, 1, 1]} : vector<4x22x4xf32> to vector<4x16x4xf32>
    %29 = vector.extract_strided_slice %7 {offsets = [0, 3, 0], sizes = [1, 1, 4], strides = [1, 1, 1]} : vector<7x7x4xf32> to vector<1x1x4xf32>
    %30 = vector.broadcast %29 : vector<1x1x4xf32> to vector<4x16x4xf32>
    %31 = arith.mulf %28, %30 : vector<4x16x4xf32>
    %32 = arith.addf %27, %31 : vector<4x16x4xf32>
    %33 = vector.extract_strided_slice %12 {offsets = [0, 4, 0], sizes = [4, 16, 4], strides = [1, 1, 1]} : vector<4x22x4xf32> to vector<4x16x4xf32>
    %34 = vector.extract_strided_slice %7 {offsets = [0, 4, 0], sizes = [1, 1, 4], strides = [1, 1, 1]} : vector<7x7x4xf32> to vector<1x1x4xf32>
    %35 = vector.broadcast %34 : vector<1x1x4xf32> to vector<4x16x4xf32>
    %36 = arith.mulf %33, %35 : vector<4x16x4xf32>
    %37 = arith.addf %32, %36 : vector<4x16x4xf32>
    %38 = vector.extract_strided_slice %12 {offsets = [0, 5, 0], sizes = [4, 16, 4], strides = [1, 1, 1]} : vector<4x22x4xf32> to vector<4x16x4xf32>
    %39 = vector.extract_strided_slice %7 {offsets = [0, 5, 0], sizes = [1, 1, 4], strides = [1, 1, 1]} : vector<7x7x4xf32> to vector<1x1x4xf32>
    %40 = vector.broadcast %39 : vector<1x1x4xf32> to vector<4x16x4xf32>
    %41 = arith.mulf %38, %40 : vector<4x16x4xf32>
    %42 = arith.addf %37, %41 : vector<4x16x4xf32>
    %43 = vector.extract_strided_slice %12 {offsets = [0, 6, 0], sizes = [4, 16, 4], strides = [1, 1, 1]} : vector<4x22x4xf32> to vector<4x16x4xf32>
    %44 = vector.extract_strided_slice %7 {offsets = [0, 6, 0], sizes = [1, 1, 4], strides = [1, 1, 1]} : vector<7x7x4xf32> to vector<1x1x4xf32>
    %45 = vector.broadcast %44 : vector<1x1x4xf32> to vector<4x16x4xf32>
    %46 = arith.mulf %43, %45 : vector<4x16x4xf32>
    %47 = arith.addf %42, %46 : vector<4x16x4xf32>
    %48 = vector.extract_strided_slice %6 {offsets = [1, 0, 0], sizes = [4, 22, 4], strides = [1, 1, 1]} : vector<10x22x4xf32> to vector<4x22x4xf32>
    %49 = vector.extract_strided_slice %48 {offsets = [0, 0, 0], sizes = [4, 16, 4], strides = [1, 1, 1]} : vector<4x22x4xf32> to vector<4x16x4xf32>
    %50 = vector.extract_strided_slice %7 {offsets = [1, 0, 0], sizes = [1, 1, 4], strides = [1, 1, 1]} : vector<7x7x4xf32> to vector<1x1x4xf32>
    %51 = vector.broadcast %50 : vector<1x1x4xf32> to vector<4x16x4xf32>
    %52 = arith.mulf %49, %51 : vector<4x16x4xf32>
    %53 = arith.addf %47, %52 : vector<4x16x4xf32>
    %54 = vector.extract_strided_slice %48 {offsets = [0, 1, 0], sizes = [4, 16, 4], strides = [1, 1, 1]} : vector<4x22x4xf32> to vector<4x16x4xf32>
    %55 = vector.extract_strided_slice %7 {offsets = [1, 1, 0], sizes = [1, 1, 4], strides = [1, 1, 1]} : vector<7x7x4xf32> to vector<1x1x4xf32>
    %56 = vector.broadcast %55 : vector<1x1x4xf32> to vector<4x16x4xf32>
    %57 = arith.mulf %54, %56 : vector<4x16x4xf32>
    %58 = arith.addf %53, %57 : vector<4x16x4xf32>
    %59 = vector.extract_strided_slice %48 {offsets = [0, 2, 0], sizes = [4, 16, 4], strides = [1, 1, 1]} : vector<4x22x4xf32> to vector<4x16x4xf32>
    %60 = vector.extract_strided_slice %7 {offsets = [1, 2, 0], sizes = [1, 1, 4], strides = [1, 1, 1]} : vector<7x7x4xf32> to vector<1x1x4xf32>
    %61 = vector.broadcast %60 : vector<1x1x4xf32> to vector<4x16x4xf32>
    %62 = arith.mulf %59, %61 : vector<4x16x4xf32>
    %63 = arith.addf %58, %62 : vector<4x16x4xf32>
    %64 = vector.extract_strided_slice %48 {offsets = [0, 3, 0], sizes = [4, 16, 4], strides = [1, 1, 1]} : vector<4x22x4xf32> to vector<4x16x4xf32>
    %65 = vector.extract_strided_slice %7 {offsets = [1, 3, 0], sizes = [1, 1, 4], strides = [1, 1, 1]} : vector<7x7x4xf32> to vector<1x1x4xf32>
    %66 = vector.broadcast %65 : vector<1x1x4xf32> to vector<4x16x4xf32>
    %67 = arith.mulf %64, %66 : vector<4x16x4xf32>
    %68 = arith.addf %63, %67 : vector<4x16x4xf32>
    %69 = vector.extract_strided_slice %48 {offsets = [0, 4, 0], sizes = [4, 16, 4], strides = [1, 1, 1]} : vector<4x22x4xf32> to vector<4x16x4xf32>
    %70 = vector.extract_strided_slice %7 {offsets = [1, 4, 0], sizes = [1, 1, 4], strides = [1, 1, 1]} : vector<7x7x4xf32> to vector<1x1x4xf32>
    %71 = vector.broadcast %70 : vector<1x1x4xf32> to vector<4x16x4xf32>
    %72 = arith.mulf %69, %71 : vector<4x16x4xf32>
    %73 = arith.addf %68, %72 : vector<4x16x4xf32>
    %74 = vector.extract_strided_slice %48 {offsets = [0, 5, 0], sizes = [4, 16, 4], strides = [1, 1, 1]} : vector<4x22x4xf32> to vector<4x16x4xf32>
    %75 = vector.extract_strided_slice %7 {offsets = [1, 5, 0], sizes = [1, 1, 4], strides = [1, 1, 1]} : vector<7x7x4xf32> to vector<1x1x4xf32>
    %76 = vector.broadcast %75 : vector<1x1x4xf32> to vector<4x16x4xf32>
    %77 = arith.mulf %74, %76 : vector<4x16x4xf32>
    %78 = arith.addf %73, %77 : vector<4x16x4xf32>
    %79 = vector.extract_strided_slice %48 {offsets = [0, 6, 0], sizes = [4, 16, 4], strides = [1, 1, 1]} : vector<4x22x4xf32> to vector<4x16x4xf32>
    %80 = vector.extract_strided_slice %7 {offsets = [1, 6, 0], sizes = [1, 1, 4], strides = [1, 1, 1]} : vector<7x7x4xf32> to vector<1x1x4xf32>
    %81 = vector.broadcast %80 : vector<1x1x4xf32> to vector<4x16x4xf32>
    %82 = arith.mulf %79, %81 : vector<4x16x4xf32>
    %83 = arith.addf %78, %82 : vector<4x16x4xf32>
    %84 = vector.extract_strided_slice %6 {offsets = [2, 0, 0], sizes = [4, 22, 4], strides = [1, 1, 1]} : vector<10x22x4xf32> to vector<4x22x4xf32>
    %85 = vector.extract_strided_slice %84 {offsets = [0, 0, 0], sizes = [4, 16, 4], strides = [1, 1, 1]} : vector<4x22x4xf32> to vector<4x16x4xf32>
    %86 = vector.extract_strided_slice %7 {offsets = [2, 0, 0], sizes = [1, 1, 4], strides = [1, 1, 1]} : vector<7x7x4xf32> to vector<1x1x4xf32>
    %87 = vector.broadcast %86 : vector<1x1x4xf32> to vector<4x16x4xf32>
    %88 = arith.mulf %85, %87 : vector<4x16x4xf32>
    %89 = arith.addf %83, %88 : vector<4x16x4xf32>
    %90 = vector.extract_strided_slice %84 {offsets = [0, 1, 0], sizes = [4, 16, 4], strides = [1, 1, 1]} : vector<4x22x4xf32> to vector<4x16x4xf32>
    %91 = vector.extract_strided_slice %7 {offsets = [2, 1, 0], sizes = [1, 1, 4], strides = [1, 1, 1]} : vector<7x7x4xf32> to vector<1x1x4xf32>
    %92 = vector.broadcast %91 : vector<1x1x4xf32> to vector<4x16x4xf32>
    %93 = arith.mulf %90, %92 : vector<4x16x4xf32>
    %94 = arith.addf %89, %93 : vector<4x16x4xf32>
    %95 = vector.extract_strided_slice %84 {offsets = [0, 2, 0], sizes = [4, 16, 4], strides = [1, 1, 1]} : vector<4x22x4xf32> to vector<4x16x4xf32>
    %96 = vector.extract_strided_slice %7 {offsets = [2, 2, 0], sizes = [1, 1, 4], strides = [1, 1, 1]} : vector<7x7x4xf32> to vector<1x1x4xf32>
    %97 = vector.broadcast %96 : vector<1x1x4xf32> to vector<4x16x4xf32>
    %98 = arith.mulf %95, %97 : vector<4x16x4xf32>
    %99 = arith.addf %94, %98 : vector<4x16x4xf32>
    %100 = vector.extract_strided_slice %84 {offsets = [0, 3, 0], sizes = [4, 16, 4], strides = [1, 1, 1]} : vector<4x22x4xf32> to vector<4x16x4xf32>
    %101 = vector.extract_strided_slice %7 {offsets = [2, 3, 0], sizes = [1, 1, 4], strides = [1, 1, 1]} : vector<7x7x4xf32> to vector<1x1x4xf32>
    %102 = vector.broadcast %101 : vector<1x1x4xf32> to vector<4x16x4xf32>
    %103 = arith.mulf %100, %102 : vector<4x16x4xf32>
    %104 = arith.addf %99, %103 : vector<4x16x4xf32>
    %105 = vector.extract_strided_slice %84 {offsets = [0, 4, 0], sizes = [4, 16, 4], strides = [1, 1, 1]} : vector<4x22x4xf32> to vector<4x16x4xf32>
    %106 = vector.extract_strided_slice %7 {offsets = [2, 4, 0], sizes = [1, 1, 4], strides = [1, 1, 1]} : vector<7x7x4xf32> to vector<1x1x4xf32>
    %107 = vector.broadcast %106 : vector<1x1x4xf32> to vector<4x16x4xf32>
    %108 = arith.mulf %105, %107 : vector<4x16x4xf32>
    %109 = arith.addf %104, %108 : vector<4x16x4xf32>
    %110 = vector.extract_strided_slice %84 {offsets = [0, 5, 0], sizes = [4, 16, 4], strides = [1, 1, 1]} : vector<4x22x4xf32> to vector<4x16x4xf32>
    %111 = vector.extract_strided_slice %7 {offsets = [2, 5, 0], sizes = [1, 1, 4], strides = [1, 1, 1]} : vector<7x7x4xf32> to vector<1x1x4xf32>
    %112 = vector.broadcast %111 : vector<1x1x4xf32> to vector<4x16x4xf32>
    %113 = arith.mulf %110, %112 : vector<4x16x4xf32>
    %114 = arith.addf %109, %113 : vector<4x16x4xf32>
    %115 = vector.extract_strided_slice %84 {offsets = [0, 6, 0], sizes = [4, 16, 4], strides = [1, 1, 1]} : vector<4x22x4xf32> to vector<4x16x4xf32>
    %116 = vector.extract_strided_slice %7 {offsets = [2, 6, 0], sizes = [1, 1, 4], strides = [1, 1, 1]} : vector<7x7x4xf32> to vector<1x1x4xf32>
    %117 = vector.broadcast %116 : vector<1x1x4xf32> to vector<4x16x4xf32>
    %118 = arith.mulf %115, %117 : vector<4x16x4xf32>
    %119 = arith.addf %114, %118 : vector<4x16x4xf32>
    %120 = vector.extract_strided_slice %6 {offsets = [3, 0, 0], sizes = [4, 22, 4], strides = [1, 1, 1]} : vector<10x22x4xf32> to vector<4x22x4xf32>
    %121 = vector.extract_strided_slice %120 {offsets = [0, 0, 0], sizes = [4, 16, 4], strides = [1, 1, 1]} : vector<4x22x4xf32> to vector<4x16x4xf32>
    %122 = vector.extract_strided_slice %7 {offsets = [3, 0, 0], sizes = [1, 1, 4], strides = [1, 1, 1]} : vector<7x7x4xf32> to vector<1x1x4xf32>
    %123 = vector.broadcast %122 : vector<1x1x4xf32> to vector<4x16x4xf32>
    %124 = arith.mulf %121, %123 : vector<4x16x4xf32>
    %125 = arith.addf %119, %124 : vector<4x16x4xf32>
    %126 = vector.extract_strided_slice %120 {offsets = [0, 1, 0], sizes = [4, 16, 4], strides = [1, 1, 1]} : vector<4x22x4xf32> to vector<4x16x4xf32>
    %127 = vector.extract_strided_slice %7 {offsets = [3, 1, 0], sizes = [1, 1, 4], strides = [1, 1, 1]} : vector<7x7x4xf32> to vector<1x1x4xf32>
    %128 = vector.broadcast %127 : vector<1x1x4xf32> to vector<4x16x4xf32>
    %129 = arith.mulf %126, %128 : vector<4x16x4xf32>
    %130 = arith.addf %125, %129 : vector<4x16x4xf32>
    %131 = vector.extract_strided_slice %120 {offsets = [0, 2, 0], sizes = [4, 16, 4], strides = [1, 1, 1]} : vector<4x22x4xf32> to vector<4x16x4xf32>
    %132 = vector.extract_strided_slice %7 {offsets = [3, 2, 0], sizes = [1, 1, 4], strides = [1, 1, 1]} : vector<7x7x4xf32> to vector<1x1x4xf32>
    %133 = vector.broadcast %132 : vector<1x1x4xf32> to vector<4x16x4xf32>
    %134 = arith.mulf %131, %133 : vector<4x16x4xf32>
    %135 = arith.addf %130, %134 : vector<4x16x4xf32>
    %136 = vector.extract_strided_slice %120 {offsets = [0, 3, 0], sizes = [4, 16, 4], strides = [1, 1, 1]} : vector<4x22x4xf32> to vector<4x16x4xf32>
    %137 = vector.extract_strided_slice %7 {offsets = [3, 3, 0], sizes = [1, 1, 4], strides = [1, 1, 1]} : vector<7x7x4xf32> to vector<1x1x4xf32>
    %138 = vector.broadcast %137 : vector<1x1x4xf32> to vector<4x16x4xf32>
    %139 = arith.mulf %136, %138 : vector<4x16x4xf32>
    %140 = arith.addf %135, %139 : vector<4x16x4xf32>
    %141 = vector.extract_strided_slice %120 {offsets = [0, 4, 0], sizes = [4, 16, 4], strides = [1, 1, 1]} : vector<4x22x4xf32> to vector<4x16x4xf32>
    %142 = vector.extract_strided_slice %7 {offsets = [3, 4, 0], sizes = [1, 1, 4], strides = [1, 1, 1]} : vector<7x7x4xf32> to vector<1x1x4xf32>
    %143 = vector.broadcast %142 : vector<1x1x4xf32> to vector<4x16x4xf32>
    %144 = arith.mulf %141, %143 : vector<4x16x4xf32>
    %145 = arith.addf %140, %144 : vector<4x16x4xf32>
    %146 = vector.extract_strided_slice %120 {offsets = [0, 5, 0], sizes = [4, 16, 4], strides = [1, 1, 1]} : vector<4x22x4xf32> to vector<4x16x4xf32>
    %147 = vector.extract_strided_slice %7 {offsets = [3, 5, 0], sizes = [1, 1, 4], strides = [1, 1, 1]} : vector<7x7x4xf32> to vector<1x1x4xf32>
    %148 = vector.broadcast %147 : vector<1x1x4xf32> to vector<4x16x4xf32>
    %149 = arith.mulf %146, %148 : vector<4x16x4xf32>
    %150 = arith.addf %145, %149 : vector<4x16x4xf32>
    %151 = vector.extract_strided_slice %120 {offsets = [0, 6, 0], sizes = [4, 16, 4], strides = [1, 1, 1]} : vector<4x22x4xf32> to vector<4x16x4xf32>
    %152 = vector.extract_strided_slice %7 {offsets = [3, 6, 0], sizes = [1, 1, 4], strides = [1, 1, 1]} : vector<7x7x4xf32> to vector<1x1x4xf32>
    %153 = vector.broadcast %152 : vector<1x1x4xf32> to vector<4x16x4xf32>
    %154 = arith.mulf %151, %153 : vector<4x16x4xf32>
    %155 = arith.addf %150, %154 : vector<4x16x4xf32>
    %156 = vector.extract_strided_slice %6 {offsets = [4, 0, 0], sizes = [4, 22, 4], strides = [1, 1, 1]} : vector<10x22x4xf32> to vector<4x22x4xf32>
    %157 = vector.extract_strided_slice %156 {offsets = [0, 0, 0], sizes = [4, 16, 4], strides = [1, 1, 1]} : vector<4x22x4xf32> to vector<4x16x4xf32>
    %158 = vector.extract_strided_slice %7 {offsets = [4, 0, 0], sizes = [1, 1, 4], strides = [1, 1, 1]} : vector<7x7x4xf32> to vector<1x1x4xf32>
    %159 = vector.broadcast %158 : vector<1x1x4xf32> to vector<4x16x4xf32>
    %160 = arith.mulf %157, %159 : vector<4x16x4xf32>
    %161 = arith.addf %155, %160 : vector<4x16x4xf32>
    %162 = vector.extract_strided_slice %156 {offsets = [0, 1, 0], sizes = [4, 16, 4], strides = [1, 1, 1]} : vector<4x22x4xf32> to vector<4x16x4xf32>
    %163 = vector.extract_strided_slice %7 {offsets = [4, 1, 0], sizes = [1, 1, 4], strides = [1, 1, 1]} : vector<7x7x4xf32> to vector<1x1x4xf32>
    %164 = vector.broadcast %163 : vector<1x1x4xf32> to vector<4x16x4xf32>
    %165 = arith.mulf %162, %164 : vector<4x16x4xf32>
    %166 = arith.addf %161, %165 : vector<4x16x4xf32>
    %167 = vector.extract_strided_slice %156 {offsets = [0, 2, 0], sizes = [4, 16, 4], strides = [1, 1, 1]} : vector<4x22x4xf32> to vector<4x16x4xf32>
    %168 = vector.extract_strided_slice %7 {offsets = [4, 2, 0], sizes = [1, 1, 4], strides = [1, 1, 1]} : vector<7x7x4xf32> to vector<1x1x4xf32>
    %169 = vector.broadcast %168 : vector<1x1x4xf32> to vector<4x16x4xf32>
    %170 = arith.mulf %167, %169 : vector<4x16x4xf32>
    %171 = arith.addf %166, %170 : vector<4x16x4xf32>
    %172 = vector.extract_strided_slice %156 {offsets = [0, 3, 0], sizes = [4, 16, 4], strides = [1, 1, 1]} : vector<4x22x4xf32> to vector<4x16x4xf32>
    %173 = vector.extract_strided_slice %7 {offsets = [4, 3, 0], sizes = [1, 1, 4], strides = [1, 1, 1]} : vector<7x7x4xf32> to vector<1x1x4xf32>
    %174 = vector.broadcast %173 : vector<1x1x4xf32> to vector<4x16x4xf32>
    %175 = arith.mulf %172, %174 : vector<4x16x4xf32>
    %176 = arith.addf %171, %175 : vector<4x16x4xf32>
    %177 = vector.extract_strided_slice %156 {offsets = [0, 4, 0], sizes = [4, 16, 4], strides = [1, 1, 1]} : vector<4x22x4xf32> to vector<4x16x4xf32>
    %178 = vector.extract_strided_slice %7 {offsets = [4, 4, 0], sizes = [1, 1, 4], strides = [1, 1, 1]} : vector<7x7x4xf32> to vector<1x1x4xf32>
    %179 = vector.broadcast %178 : vector<1x1x4xf32> to vector<4x16x4xf32>
    %180 = arith.mulf %177, %179 : vector<4x16x4xf32>
    %181 = arith.addf %176, %180 : vector<4x16x4xf32>
    %182 = vector.extract_strided_slice %156 {offsets = [0, 5, 0], sizes = [4, 16, 4], strides = [1, 1, 1]} : vector<4x22x4xf32> to vector<4x16x4xf32>
    %183 = vector.extract_strided_slice %7 {offsets = [4, 5, 0], sizes = [1, 1, 4], strides = [1, 1, 1]} : vector<7x7x4xf32> to vector<1x1x4xf32>
    %184 = vector.broadcast %183 : vector<1x1x4xf32> to vector<4x16x4xf32>
    %185 = arith.mulf %182, %184 : vector<4x16x4xf32>
    %186 = arith.addf %181, %185 : vector<4x16x4xf32>
    %187 = vector.extract_strided_slice %156 {offsets = [0, 6, 0], sizes = [4, 16, 4], strides = [1, 1, 1]} : vector<4x22x4xf32> to vector<4x16x4xf32>
    %188 = vector.extract_strided_slice %7 {offsets = [4, 6, 0], sizes = [1, 1, 4], strides = [1, 1, 1]} : vector<7x7x4xf32> to vector<1x1x4xf32>
    %189 = vector.broadcast %188 : vector<1x1x4xf32> to vector<4x16x4xf32>
    %190 = arith.mulf %187, %189 : vector<4x16x4xf32>
    %191 = arith.addf %186, %190 : vector<4x16x4xf32>
    %192 = vector.extract_strided_slice %6 {offsets = [5, 0, 0], sizes = [4, 22, 4], strides = [1, 1, 1]} : vector<10x22x4xf32> to vector<4x22x4xf32>
    %193 = vector.extract_strided_slice %192 {offsets = [0, 0, 0], sizes = [4, 16, 4], strides = [1, 1, 1]} : vector<4x22x4xf32> to vector<4x16x4xf32>
    %194 = vector.extract_strided_slice %7 {offsets = [5, 0, 0], sizes = [1, 1, 4], strides = [1, 1, 1]} : vector<7x7x4xf32> to vector<1x1x4xf32>
    %195 = vector.broadcast %194 : vector<1x1x4xf32> to vector<4x16x4xf32>
    %196 = arith.mulf %193, %195 : vector<4x16x4xf32>
    %197 = arith.addf %191, %196 : vector<4x16x4xf32>
    %198 = vector.extract_strided_slice %192 {offsets = [0, 1, 0], sizes = [4, 16, 4], strides = [1, 1, 1]} : vector<4x22x4xf32> to vector<4x16x4xf32>
    %199 = vector.extract_strided_slice %7 {offsets = [5, 1, 0], sizes = [1, 1, 4], strides = [1, 1, 1]} : vector<7x7x4xf32> to vector<1x1x4xf32>
    %200 = vector.broadcast %199 : vector<1x1x4xf32> to vector<4x16x4xf32>
    %201 = arith.mulf %198, %200 : vector<4x16x4xf32>
    %202 = arith.addf %197, %201 : vector<4x16x4xf32>
    %203 = vector.extract_strided_slice %192 {offsets = [0, 2, 0], sizes = [4, 16, 4], strides = [1, 1, 1]} : vector<4x22x4xf32> to vector<4x16x4xf32>
    %204 = vector.extract_strided_slice %7 {offsets = [5, 2, 0], sizes = [1, 1, 4], strides = [1, 1, 1]} : vector<7x7x4xf32> to vector<1x1x4xf32>
    %205 = vector.broadcast %204 : vector<1x1x4xf32> to vector<4x16x4xf32>
    %206 = arith.mulf %203, %205 : vector<4x16x4xf32>
    %207 = arith.addf %202, %206 : vector<4x16x4xf32>
    %208 = vector.extract_strided_slice %192 {offsets = [0, 3, 0], sizes = [4, 16, 4], strides = [1, 1, 1]} : vector<4x22x4xf32> to vector<4x16x4xf32>
    %209 = vector.extract_strided_slice %7 {offsets = [5, 3, 0], sizes = [1, 1, 4], strides = [1, 1, 1]} : vector<7x7x4xf32> to vector<1x1x4xf32>
    %210 = vector.broadcast %209 : vector<1x1x4xf32> to vector<4x16x4xf32>
    %211 = arith.mulf %208, %210 : vector<4x16x4xf32>
    %212 = arith.addf %207, %211 : vector<4x16x4xf32>
    %213 = vector.extract_strided_slice %192 {offsets = [0, 4, 0], sizes = [4, 16, 4], strides = [1, 1, 1]} : vector<4x22x4xf32> to vector<4x16x4xf32>
    %214 = vector.extract_strided_slice %7 {offsets = [5, 4, 0], sizes = [1, 1, 4], strides = [1, 1, 1]} : vector<7x7x4xf32> to vector<1x1x4xf32>
    %215 = vector.broadcast %214 : vector<1x1x4xf32> to vector<4x16x4xf32>
    %216 = arith.mulf %213, %215 : vector<4x16x4xf32>
    %217 = arith.addf %212, %216 : vector<4x16x4xf32>
    %218 = vector.extract_strided_slice %192 {offsets = [0, 5, 0], sizes = [4, 16, 4], strides = [1, 1, 1]} : vector<4x22x4xf32> to vector<4x16x4xf32>
    %219 = vector.extract_strided_slice %7 {offsets = [5, 5, 0], sizes = [1, 1, 4], strides = [1, 1, 1]} : vector<7x7x4xf32> to vector<1x1x4xf32>
    %220 = vector.broadcast %219 : vector<1x1x4xf32> to vector<4x16x4xf32>
    %221 = arith.mulf %218, %220 : vector<4x16x4xf32>
    %222 = arith.addf %217, %221 : vector<4x16x4xf32>
    %223 = vector.extract_strided_slice %192 {offsets = [0, 6, 0], sizes = [4, 16, 4], strides = [1, 1, 1]} : vector<4x22x4xf32> to vector<4x16x4xf32>
    %224 = vector.extract_strided_slice %7 {offsets = [5, 6, 0], sizes = [1, 1, 4], strides = [1, 1, 1]} : vector<7x7x4xf32> to vector<1x1x4xf32>
    %225 = vector.broadcast %224 : vector<1x1x4xf32> to vector<4x16x4xf32>
    %226 = arith.mulf %223, %225 : vector<4x16x4xf32>
    %227 = arith.addf %222, %226 : vector<4x16x4xf32>
    %228 = vector.extract_strided_slice %6 {offsets = [6, 0, 0], sizes = [4, 22, 4], strides = [1, 1, 1]} : vector<10x22x4xf32> to vector<4x22x4xf32>
    %229 = vector.extract_strided_slice %228 {offsets = [0, 0, 0], sizes = [4, 16, 4], strides = [1, 1, 1]} : vector<4x22x4xf32> to vector<4x16x4xf32>
    %230 = vector.extract_strided_slice %7 {offsets = [6, 0, 0], sizes = [1, 1, 4], strides = [1, 1, 1]} : vector<7x7x4xf32> to vector<1x1x4xf32>
    %231 = vector.broadcast %230 : vector<1x1x4xf32> to vector<4x16x4xf32>
    %232 = arith.mulf %229, %231 : vector<4x16x4xf32>
    %233 = arith.addf %227, %232 : vector<4x16x4xf32>
    %234 = vector.extract_strided_slice %228 {offsets = [0, 1, 0], sizes = [4, 16, 4], strides = [1, 1, 1]} : vector<4x22x4xf32> to vector<4x16x4xf32>
    %235 = vector.extract_strided_slice %7 {offsets = [6, 1, 0], sizes = [1, 1, 4], strides = [1, 1, 1]} : vector<7x7x4xf32> to vector<1x1x4xf32>
    %236 = vector.broadcast %235 : vector<1x1x4xf32> to vector<4x16x4xf32>
    %237 = arith.mulf %234, %236 : vector<4x16x4xf32>
    %238 = arith.addf %233, %237 : vector<4x16x4xf32>
    %239 = vector.extract_strided_slice %228 {offsets = [0, 2, 0], sizes = [4, 16, 4], strides = [1, 1, 1]} : vector<4x22x4xf32> to vector<4x16x4xf32>
    %240 = vector.extract_strided_slice %7 {offsets = [6, 2, 0], sizes = [1, 1, 4], strides = [1, 1, 1]} : vector<7x7x4xf32> to vector<1x1x4xf32>
    %241 = vector.broadcast %240 : vector<1x1x4xf32> to vector<4x16x4xf32>
    %242 = arith.mulf %239, %241 : vector<4x16x4xf32>
    %243 = arith.addf %238, %242 : vector<4x16x4xf32>
    %244 = vector.extract_strided_slice %228 {offsets = [0, 3, 0], sizes = [4, 16, 4], strides = [1, 1, 1]} : vector<4x22x4xf32> to vector<4x16x4xf32>
    %245 = vector.extract_strided_slice %7 {offsets = [6, 3, 0], sizes = [1, 1, 4], strides = [1, 1, 1]} : vector<7x7x4xf32> to vector<1x1x4xf32>
    %246 = vector.broadcast %245 : vector<1x1x4xf32> to vector<4x16x4xf32>
    %247 = arith.mulf %244, %246 : vector<4x16x4xf32>
    %248 = arith.addf %243, %247 : vector<4x16x4xf32>
    %249 = vector.extract_strided_slice %228 {offsets = [0, 4, 0], sizes = [4, 16, 4], strides = [1, 1, 1]} : vector<4x22x4xf32> to vector<4x16x4xf32>
    %250 = vector.extract_strided_slice %7 {offsets = [6, 4, 0], sizes = [1, 1, 4], strides = [1, 1, 1]} : vector<7x7x4xf32> to vector<1x1x4xf32>
    %251 = vector.broadcast %250 : vector<1x1x4xf32> to vector<4x16x4xf32>
    %252 = arith.mulf %249, %251 : vector<4x16x4xf32>
    %253 = arith.addf %248, %252 : vector<4x16x4xf32>
    %254 = vector.extract_strided_slice %228 {offsets = [0, 5, 0], sizes = [4, 16, 4], strides = [1, 1, 1]} : vector<4x22x4xf32> to vector<4x16x4xf32>
    %255 = vector.extract_strided_slice %7 {offsets = [6, 5, 0], sizes = [1, 1, 4], strides = [1, 1, 1]} : vector<7x7x4xf32> to vector<1x1x4xf32>
    %256 = vector.broadcast %255 : vector<1x1x4xf32> to vector<4x16x4xf32>
    %257 = arith.mulf %254, %256 : vector<4x16x4xf32>
    %258 = arith.addf %253, %257 : vector<4x16x4xf32>
    %259 = vector.extract_strided_slice %228 {offsets = [0, 6, 0], sizes = [4, 16, 4], strides = [1, 1, 1]} : vector<4x22x4xf32> to vector<4x16x4xf32>
    %260 = vector.extract_strided_slice %7 {offsets = [6, 6, 0], sizes = [1, 1, 4], strides = [1, 1, 1]} : vector<7x7x4xf32> to vector<1x1x4xf32>
    %261 = vector.broadcast %260 : vector<1x1x4xf32> to vector<4x16x4xf32>
    %262 = arith.mulf %259, %261 : vector<4x16x4xf32>
    %263 = arith.addf %258, %262 : vector<4x16x4xf32>
    %264 = vector.shape_cast %263 : vector<4x16x4xf32> to vector<64x4xf32>
    %cst = arith.constant dense<0.000000e+00> : vector<64xf32>
    %265 = vector.multi_reduction <add>, %264, %cst [1] : vector<64x4xf32> to vector<64xf32>
    %266 = vector.shape_cast %265 : vector<64xf32> to vector<64x1xf32>
    %cst_7 = arith.constant 4.000000e+00 : f32
    %267 = vector.broadcast %cst_7 : f32 to vector<64x1xf32>
    %268 = arith.divf %266, %267 : vector<64x1xf32>
    %269 = vector.broadcast %268 : vector<64x1xf32> to vector<64x4xf32>
    %270 = arith.subf %264, %269 : vector<64x4xf32>
    %271 = arith.mulf %270, %270 : vector<64x4xf32>
    %cst_8 = arith.constant dense<0.000000e+00> : vector<64xf32>
    %272 = vector.multi_reduction <add>, %271, %cst_8 [1] : vector<64x4xf32> to vector<64xf32>
    %273 = vector.shape_cast %272 : vector<64xf32> to vector<64x1xf32>
    %cst_9 = arith.constant 4.000000e+00 : f32
    %274 = vector.broadcast %cst_9 : f32 to vector<64x1xf32>
    %275 = arith.divf %273, %274 : vector<64x1xf32>
    %cst_10 = arith.constant 9.99999997E-7 : f32
    %276 = vector.broadcast %cst_10 : f32 to vector<64x1xf32>
    %277 = arith.addf %275, %276 : vector<64x1xf32>
    %278 = math.rsqrt %277 : vector<64x1xf32>
    %279 = vector.broadcast %278 : vector<64x1xf32> to vector<64x4xf32>
    %280 = arith.mulf %270, %279 : vector<64x4xf32>
    %c0_11 = arith.constant 0 : index
    %c0_12 = arith.constant 0 : index
    %281 = vector.load %arg5[%c0_11, %c0_12] : memref<4x16xf32, #tpu.memory_space<vmem>>, vector<4x16xf32>
    %cst_13 = arith.constant dense<0.000000e+00> : vector<64x16xf32>
    %282 = tpu.matmul %280, %281, %cst_13 {dimension_numbers = #tpu.dot_dimension_numbers<[1], [0], [0], [1], [0, 0, 1, 1], [], []>} : vector<64x4xf32>, vector<4x16xf32>, vector<64x16xf32> -> vector<64x16xf32>
    %c0_14 = arith.constant 0 : index
    %c0_15 = arith.constant 0 : index
    %283 = vector.load %arg6[%c0_14, %c0_15] : memref<1x16xf32, #tpu.memory_space<vmem>>, vector<1x16xf32>
    %284 = vector.broadcast %283 : vector<1x16xf32> to vector<64x16xf32>
    %285 = arith.addf %282, %284 : vector<64x16xf32>
    %cst_16 = arith.constant 5.000000e-01 : f32
    %286 = vector.broadcast %cst_16 : f32 to vector<64x16xf32>
    %287 = arith.mulf %286, %285 : vector<64x16xf32>
    %cst_17 = arith.constant 0.707106769 : f32
    %288 = vector.broadcast %cst_17 : f32 to vector<64x16xf32>
    %289 = arith.mulf %285, %288 : vector<64x16xf32>
    %290 = math.erf %289 : vector<64x16xf32>
    %cst_18 = arith.constant 1.000000e+00 : f32
    %291 = vector.broadcast %cst_18 : f32 to vector<64x16xf32>
    %292 = arith.addf %291, %290 : vector<64x16xf32>
    %293 = arith.mulf %287, %292 : vector<64x16xf32>
    %c0_19 = arith.constant 0 : index
    %c0_20 = arith.constant 0 : index
    %294 = vector.load %arg7[%c0_19, %c0_20] : memref<16x4xf32, #tpu.memory_space<vmem>>, vector<16x4xf32>
    %cst_21 = arith.constant dense<0.000000e+00> : vector<64x4xf32>
    %295 = tpu.matmul %293, %294, %cst_21 {dimension_numbers = #tpu.dot_dimension_numbers<[1], [0], [0], [1], [0, 0, 1, 1], [], []>} : vector<64x16xf32>, vector<16x4xf32>, vector<64x4xf32> -> vector<64x4xf32>
    %c0_22 = arith.constant 0 : index
    %c0_23 = arith.constant 0 : index
    %296 = vector.load %arg8[%c0_22, %c0_23] : memref<1x4xf32, #tpu.memory_space<vmem>>, vector<1x4xf32>
    %297 = vector.broadcast %296 : vector<1x4xf32> to vector<64x4xf32>
    %298 = arith.addf %295, %297 : vector<64x4xf32>
    %c0_24 = arith.constant 0 : index
    %299 = arith.index_cast %4 : i32 to index
    %c0_25 = arith.constant 0 : index
    %c0_26 = arith.constant 0 : index
    %300 = vector.load %arg2[%c0_24, %299, %c0_25, %c0_26] : memref<1x16x16x4xf32, #tpu.memory_space<vmem>>, vector<1x4x16x4xf32>
    %301 = vector.shape_cast %300 : vector<1x4x16x4xf32> to vector<4x16x4xf32>
    %302 = vector.shape_cast %301 : vector<4x16x4xf32> to vector<64x4xf32>
    %303 = arith.addf %302, %298 : vector<64x4xf32>
    %304 = vector.shape_cast %303 : vector<64x4xf32> to vector<4x16x4xf32>
    %c0_27 = arith.constant 0 : index
    %c0_28 = arith.constant 0 : index
    %c0_29 = arith.constant 0 : index
    %c0_30 = arith.constant 0 : index
    %305 = vector.load %arg9[%c0_27, %c0_28, %c0_29, %c0_30] : memref<1x4x16x4xf32, #tpu.memory_space<vmem>>, vector<1x4x16x4xf32>
    %306 = vector.shape_cast %305 : vector<1x4x16x4xf32> to vector<4x16x4xf32>
    %307 = vector.shape_cast %304 : vector<4x16x4xf32> to vector<1x4x16x4xf32>
    tpu.vector_store %arg9[%c0_27, %c0_28, %c0_29, %c0_30], %307 {strides = array<i32>} : memref<1x4x16x4xf32, #tpu.memory_space<vmem>>, vector<1x4x16x4xf32>,
    return
  }
  func.func @transform_0(%arg0: i32, %arg1: i32) -> (i32, i32, i32, i32) {
    %c0_i32 = arith.constant 0 : i32
    %c0_i32_0 = arith.constant 0 : i32
    %c0_i32_1 = arith.constant 0 : i32
    %c0_i32_2 = arith.constant 0 : i32
    return %arg0, %c0_i32, %c0_i32_0, %c0_i32_1 : i32, i32, i32, i32
  }
  func.func @transform_1(%arg0: i32, %arg1: i32) -> (i32, i32, i32) {
    %c0_i32 = arith.constant 0 : i32
    %c0_i32_0 = arith.constant 0 : i32
    %c0_i32_1 = arith.constant 0 : i32
    %c0_i32_2 = arith.constant 0 : i32
    return %c0_i32, %c0_i32_0, %c0_i32_1 : i32, i32, i32
  }
  func.func @transform_2(%arg0: i32, %arg1: i32) -> (i32, i32) {
    %c0_i32 = arith.constant 0 : i32
    %c0_i32_0 = arith.constant 0 : i32
    %c0_i32_1 = arith.constant 0 : i32
    return %c0_i32, %c0_i32_0 : i32, i32
  }
  func.func @transform_3(%arg0: i32, %arg1: i32) -> (i32, i32) {
    %c0_i32 = arith.constant 0 : i32
    %c0_i32_0 = arith.constant 0 : i32
    %c0_i32_1 = arith.constant 0 : i32
    return %c0_i32, %c0_i32_0 : i32, i32
  }
  func.func @transform_4(%arg0: i32, %arg1: i32) -> (i32, i32) {
    %c0_i32 = arith.constant 0 : i32
    %c0_i32_0 = arith.constant 0 : i32
    %c0_i32_1 = arith.constant 0 : i32
    return %c0_i32, %c0_i32_0 : i32, i32
  }
  func.func @transform_5(%arg0: i32, %arg1: i32) -> (i32, i32) {
    %c0_i32 = arith.constant 0 : i32
    %c0_i32_0 = arith.constant 0 : i32
    %c0_i32_1 = arith.constant 0 : i32
    return %c0_i32, %c0_i32_0 : i32, i32
  }
  func.func @transform_6(%arg0: i32, %arg1: i32) -> (i32, i32) {
    %c0_i32 = arith.constant 0 : i32
    %c0_i32_0 = arith.constant 0 : i32
    %c0_i32_1 = arith.constant 0 : i32
    return %c0_i32, %c0_i32_0 : i32, i32
  }
  func.func @transform_7(%arg0: i32, %arg1: i32) -> (i32, i32, i32, i32) {
    %c0_i32 = arith.constant 0 : i32
    %c0_i32_0 = arith.constant 0 : i32
    %c0_i32_1 = arith.constant 0 : i32
    return %arg0, %arg1, %c0_i32, %c0_i32_0 : i32, i32, i32, i32
  }
}

</mosaic_0001>

<bundles_post_ra>
// kernel: arblock.1
= control target key start
LH: loop header
LB: loop body
LE: loop exit
PB: predicated region body
PF: predicated region fallthrough
CT: control target
= control target key end

     0   :  { %s4142_s24 = smov 0   ;;  %s4144_s25 = smov 0   ;;  %s7762_s0 = inlined_call_operand.vmem [shape: f32[2,16,16,4], index: 0, kind: input, shape index: {}, may-alias: {0,7}]   ;;  %s7763_s1 = inlined_call_operand.vmem [shape: f32[7,7,4], index: 1, kind: input, shape index: {}]   ;;  %s7764_s2 = inlined_call_operand.vmem [shape: f32[1,4], index: 2, kind: input, shape index: {}]   ;;  %s7765_s3 = inlined_call_operand.vmem [shape: f32[4,16], index: 3, kind: input, shape index: {}]   ;;  %s7766_s4 = inlined_call_operand.vmem [shape: f32[1,16], index: 4, kind: input, shape index: {}]   ;;  %s7767_s5 = inlined_call_operand.vmem [shape: f32[16,4], index: 5, kind: input, shape index: {}]   ;;  %s7768_s6 = inlined_call_operand.vmem [shape: f32[1,4], index: 6, kind: input, shape index: {}]   ;;  %s7769_s7 = inlined_call_operand.vmem [shape: f32[2,16,16,4], index: 7, kind: output, shape index: {}, may-alias: {0,7}]  }
   0x1   :  { %s4146_s26 = smov 0   ;;  %s4148_s27 = smov 0  }
   0x2   :  { %s4150_s28 = smov 0  }
   0x3 LB: > { %s26_s29 = sadd.s32 1, %s4091_s26  ;;  %s29_s30 = sadd.s32 1, %s4095_s27  ;;  %s4099_s28 = sphi %s4150_s28, %s17_s28   ;;  %s4095_s27 = sphi %s4148_s27, %s9035_s27   ;;  %s4091_s26 = sphi %s4146_s26, %s9034_s26   ;;  %s4087_s25 = sphi %s4144_s25, %s9033_s25   ;;  %s4083_s24 = sphi %s4142_s24, %s9032_s24  }
   0x4   : > { %p27_p0 = scmp.ge.s32.totalorder %s26_s29, 4  ;;  %p3871_p1 = scmp.ge.s32.totalorder %s4099_s28, 1 }
   0x5   : > { %p251_p2 = scmp.lt.s32.totalorder %s4099_s28, 9 }
   0x6   : > { %s9037_s29 = smov (%p27_p0, %s26_s29), 0  ;;  %s9039_s30 = smov (!%p27_p0, %s29_s30), %s4095_s27 }
   0x7   : > { %p252_p3 = pnand %p3871_p1, %p251_p2  ;;  %p31_p4 = scmp.ge.s32.totalorder %s9039_s30, 2 }
   0x9   : > { %s9041_s30 = smov (%p31_p4, %s9039_s30), 0  ;;  %255 = sbr.rel (%p252_p3) target bundleno = 1378 (0x562), region = 48 }
  0x10   : > { %p288_p5 = scmp.lt.s32.totalorder %s4087_s25, 1  ;;  %s3874_s8 = sshll.u32 %s4083_s24, 2 }
  0x11   : > { %p296_p6 = scmp.lt.s32.totalorder %s3874_s8, 15  ;;  %p3878_p7 = scmp.ne.s32.totalorder %s4083_s24, 0 }
  0x12   : > { %s9043_s25 = smov (!%p288_p5, %s4087_s25), 1  ;;  %vm308_vm0 = vcmask (!%p3878_p7), 31744   ;;  %vm311_vm1 = vcmask (!%p3878_p7), 29696   ;;  %v4101_v3 = vmov (!%p3878_p7), 0.0  }
  0x13   : > { %s9045_s8 = smov (!%p296_p6, %s3874_s8), 15  ;;  %s3904_s9 = sshll.u32 %s9043_s25, 8  ;;  %319 = vst.msk [vmem:[#allocation2 + $0x48] sm:$0xff] (!%p3878_p7), %vm308_vm0, %v4101_v3  ;;  %309 = vst.msk [vmem:[#allocation2] sm:$0xff] (!%p3878_p7), %vm308_vm0, %v4101_v3 }
  0x14   : > { %s3876_s10 = sshll.u32 %s9043_s25, 5  ;;  %s4178_s13 = scalar_lea.vmem %s7762_s0, %s3904_s9  ;;  %310 = vst.msk [vmem:[#allocation2 + $0x8] sm:$0xff] (!%p3878_p7), %vm308_vm0, %v4101_v3  ;;  %313 = vst.msk [vmem:[#allocation2 + $0x18] sm:$0xff] (!%p3878_p7), %vm308_vm0, %v4101_v3 }
  0x15   : > { %s3875_s14 = sshll.u32 %s9045_s8, 1  ;;  %307 = sbr.rel (%p3878_p7) target bundleno = 69 (0x45), region = 52  ;;  %v4187_v0 = vld [vmem:[%s4178_s13] sm:$0xff] (!%p3878_p7)  ;;  %v4190_v1 = vld [vmem:[%s4178_s13 + $0x8] sm:$0xff] (!%p3878_p7)  ;;  %v4193_v2 = vld [vmem:[%s4178_s13 + $0x10] sm:$0xff] (!%p3878_p7)  ;;  %314 = vst.msk [vmem:[#allocation2 + $0x20] sm:$0xff] (!%p3878_p7), %vm308_vm0, %v4101_v3 }
  0x16   : > { %s300_s15 = sadd.s32 %s3876_s10, %s3875_s14  ;;  %316 = vst.msk [vmem:[#allocation2 + $0x30] sm:$0xff] (!%p3878_p7), %vm308_vm0, %v4101_v3  ;;  %317 = vst.msk [vmem:[#allocation2 + $0x38] sm:$0xff] (!%p3878_p7), %vm308_vm0, %v4101_v3  ;;  %v379_v4 = vld [vmem:[%s4178_s13 + $0x18] sm:$0xff] (!%p3878_p7)  ;;  %v380_v5 = vld [vmem:[%s4178_s13 + $0x20] sm:$0xff] (!%p3878_p7) }
  0x17   : > { %s3877_s16 = sshll.u32 %s300_s15, 3  ;;  %320 = vst.msk [vmem:[#allocation2 + $0x50] sm:$0xff] (!%p3878_p7), %vm308_vm0, %v4101_v3  ;;  %322 = vst.msk [vmem:[#allocation2 + $0x60] sm:$0xff] (!%p3878_p7), %vm308_vm0, %v4101_v3  ;;  %v381_v6 = vld [vmem:[%s4178_s13 + $0x28] sm:$0xff] (!%p3878_p7)  ;;  %v382_v7 = vld [vmem:[%s4178_s13 + $0x30] sm:$0xff] (!%p3878_p7) }
  0x18   : > { %s4183_s19 = scalar_lea.vmem %s7769_s7, %s3877_s16  ;;  %323 = vst.msk [vmem:[#allocation2 + $0x68] sm:$0xff] (!%p3878_p7), %vm308_vm0, %v4101_v3  ;;  %325 = vst.msk [vmem:[#allocation2 + $0x78] sm:$0xff] (!%p3878_p7), %vm308_vm0, %v4101_v3  ;;  %v383_v8 = vld [vmem:[%s4178_s13 + $0x38] sm:$0xff] (!%p3878_p7)  ;;  %v384_v9 = vld [vmem:[%s4178_s13 + $0x40] sm:$0xff] (!%p3878_p7) }
  0x19   : > { %326 = vst.msk [vmem:[#allocation2 + $0x80] sm:$0xff] (!%p3878_p7), %vm308_vm0, %v4101_v3  ;;  %328 = vst.msk [vmem:[#allocation2 + $0x90] sm:$0xff] (!%p3878_p7), %vm308_vm0, %v4101_v3  ;;  %v385_v10 = vld [vmem:[%s4178_s13 + $0x48] sm:$0xff] (!%p3878_p7)  ;;  %v386_v11 = vld [vmem:[%s4178_s13 + $0x50] sm:$0xff] (!%p3878_p7) }
  0x1a   : > { %329 = vst.msk [vmem:[#allocation2 + $0x98] sm:$0xff] (!%p3878_p7), %vm308_vm0, %v4101_v3  ;;  %331 = vst.msk [vmem:[#allocation2 + $0xa8] sm:$0xff] (!%p3878_p7), %vm308_vm0, %v4101_v3  ;;  %v387_v12 = vld [vmem:[%s4178_s13 + $0x58] sm:$0xff] (!%p3878_p7)  ;;  %v388_v13 = vld [vmem:[%s4178_s13 + $0x60] sm:$0xff] (!%p3878_p7) }
  0x1b   : > { %332 = vst.msk [vmem:[#allocation2 + $0xb0] sm:$0xff] (!%p3878_p7), %vm308_vm0, %v4101_v3  ;;  %334 = vst.msk [vmem:[#allocation2 + $0xc0] sm:$0xff] (!%p3878_p7), %vm308_vm0, %v4101_v3  ;;  %v389_v14 = vld [vmem:[%s4178_s13 + $0x68] sm:$0xff] (!%p3878_p7)  ;;  %v390_v15 = vld [vmem:[%s4178_s13 + $0x70] sm:$0xff] (!%p3878_p7) }
  0x1c   : > { %335 = vst.msk [vmem:[#allocation2 + $0xc8] sm:$0xff] %vm308_vm0, %v4101_v3  ;;  %337 = vst.msk [vmem:[#allocation2 + $0xd8] sm:$0xff] %vm308_vm0, %v4101_v3  ;;  %v391_v16 = vld [vmem:[%s4178_s13 + $0x78] sm:$0xff]  ;;  %v392_v17 = vld [vmem:[%s4178_s13 + $0x80] sm:$0xff] }
  0x1d   : > { %338 = vst.msk [vmem:[#allocation2 + $0xe0] sm:$0xff] %vm308_vm0, %v4101_v3  ;;  %340 = vst.msk [vmem:[#allocation2 + $0xf0] sm:$0xff] %vm308_vm0, %v4101_v3  ;;  %v393_v18 = vld [vmem:[%s4178_s13 + $0x88] sm:$0xff]  ;;  %v394_v19 = vld [vmem:[%s4178_s13 + $0x90] sm:$0xff] }
  0x1e   : > { %341 = vst.msk [vmem:[#allocation2 + $0xf8] sm:$0xff] %vm308_vm0, %v4101_v3  ;;  %343 = vst.msk [vmem:[#allocation2 + $0x108] sm:$0xff] %vm308_vm0, %v4101_v3  ;;  %v395_v20 = vld [vmem:[%s4178_s13 + $0x98] sm:$0xff]  ;;  %v396_v21 = vld [vmem:[%s4178_s13 + $0xa0] sm:$0xff] }
  0x1f   : > { %344 = vst.msk [vmem:[#allocation2 + $0x110] sm:$0xff] %vm308_vm0, %v4101_v3  ;;  %346 = vst.msk [vmem:[#allocation2 + $0x120] sm:$0xff] %vm308_vm0, %v4101_v3  ;;  %v397_v22 = vld [vmem:[%s4178_s13 + $0xa8] sm:$0xff]  ;;  %v398_v23 = vld [vmem:[%s4178_s13 + $0xb0] sm:$0xff] }
  0x20   : > { %347 = vst.msk [vmem:[#allocation2 + $0x128] sm:$0xff] %vm308_vm0, %v4101_v3  ;;  %349 = vst.msk [vmem:[#allocation2 + $0x138] sm:$0xff] %vm308_vm0, %v4101_v3  ;;  %v399_v24 = vld [vmem:[%s4178_s13 + $0xb8] sm:$0xff]  ;;  %v400_v25 = vld [vmem:[%s4178_s13 + $0xc0] sm:$0xff] }
  0x21   : > { %350 = vst.msk [vmem:[#allocation2 + $0x140] sm:$0xff] %vm308_vm0, %v4101_v3  ;;  %352 = vst.msk [vmem:[#allocation2 + $0x150] sm:$0xff] %vm308_vm0, %v4101_v3  ;;  %v401_v26 = vld [vmem:[%s4178_s13 + $0xc8] sm:$0xff]  ;;  %v402_v27 = vld [vmem:[%s4178_s13 + $0xd0] sm:$0xff] }
  0x22   : > { %353 = vst.msk [vmem:[#allocation2 + $0x158] sm:$0xff] %vm308_vm0, %v4101_v3  ;;  %355 = vst.msk [vmem:[#allocation2 + $0x168] sm:$0xff] %vm308_vm0, %v4101_v3  ;;  %v403_v28 = vld [vmem:[%s4178_s13 + $0xd8] sm:$0xff]  ;;  %v404_v29 = vld [vmem:[%s4178_s13 + $0xe0] sm:$0xff] }
  0x23   : > { %356 = vst.msk [vmem:[#allocation2 + $0x170] sm:$0xff] %vm308_vm0, %v4101_v3  ;;  %358 = vst.msk [vmem:[#allocation2 + $0x180] sm:$0xff] %vm308_vm0, %v4101_v3  ;;  %v405_v30 = vld [vmem:[%s4178_s13 + $0xe8] sm:$0xff]  ;;  %v406_v31 = vld [vmem:[%s4178_s13 + $0xf0] sm:$0xff] }
  0x24   : > { %359 = vst.msk [vmem:[#allocation2 + $0x188] sm:$0xff] %vm308_vm0, %v4101_v3  ;;  %361 = vst.msk [vmem:[#allocation2 + $0x198] sm:$0xff] %vm308_vm0, %v4101_v3  ;;  %v407_v32 = vld [vmem:[%s4178_s13 + $0xf8] sm:$0xff] }
  0x25   : > { %362 = vst.msk [vmem:[#allocation2 + $0x1a0] sm:$0xff] %vm308_vm0, %v4101_v3  ;;  %364 = vst.msk [vmem:[#allocation2 + $0x1b0] sm:$0xff] %vm308_vm0, %v4101_v3 }
  0x26   : > { %365 = vst.msk [vmem:[#allocation2 + $0x1b8] sm:$0xff] %vm308_vm0, %v4101_v3  ;;  %367 = vst.msk [vmem:[#allocation2 + $0x1c8] sm:$0xff] %vm308_vm0, %v4101_v3 }
  0x27   : > { %368 = vst.msk [vmem:[#allocation2 + $0x1d0] sm:$0xff] %vm308_vm0, %v4101_v3  ;;  %370 = vst.msk [vmem:[#allocation2 + $0x1e0] sm:$0xff] %vm308_vm0, %v4101_v3 }
  0x28   : > { %371 = vst.msk [vmem:[#allocation2 + $0x1e8] sm:$0xff] %vm308_vm0, %v4101_v3  ;;  %373 = vst.msk [vmem:[#allocation2 + $0x1f8] sm:$0xff] %vm308_vm0, %v4101_v3 }
  0x29   : > { %374 = vst.msk [vmem:[#allocation2 + $0x200] sm:$0xff] %vm308_vm0, %v4101_v3  ;;  %409 = vst.msk [vmem:[#allocation2 + $0x4b] sm:$0xff] %vm308_vm0, %v4187_v0 }
  0x2a   : > { %321 = vst.msk [vmem:[#allocation2 + $0x58] sm:$0x3f] %vm311_vm1, %v4101_v3  ;;  %312 = vst.msk [vmem:[#allocation2 + $0x10] sm:$0x3f] %vm311_vm1, %v4101_v3 }
  0x2b   : > { %315 = vst.msk [vmem:[#allocation2 + $0x28] sm:$0x3f] %vm311_vm1, %v4101_v3  ;;  %318 = vst.msk [vmem:[#allocation2 + $0x40] sm:$0x3f] %vm311_vm1, %v4101_v3 }
  0x2c   : > { %324 = vst.msk [vmem:[#allocation2 + $0x70] sm:$0x3f] %vm311_vm1, %v4101_v3  ;;  %327 = vst.msk [vmem:[#allocation2 + $0x88] sm:$0x3f] %vm311_vm1, %v4101_v3 }
  0x2d   : > { %330 = vst.msk [vmem:[#allocation2 + $0xa0] sm:$0x3f] %vm311_vm1, %v4101_v3  ;;  %333 = vst.msk [vmem:[#allocation2 + $0xb8] sm:$0x3f] %vm311_vm1, %v4101_v3 }
  0x2e   : > { %336 = vst.msk [vmem:[#allocation2 + $0xd0] sm:$0x3f] %vm311_vm1, %v4101_v3  ;;  %339 = vst.msk [vmem:[#allocation2 + $0xe8] sm:$0x3f] %vm311_vm1, %v4101_v3 }
  0x2f   : > { %342 = vst.msk [vmem:[#allocation2 + $0x100] sm:$0x3f] %vm311_vm1, %v4101_v3  ;;  %345 = vst.msk [vmem:[#allocation2 + $0x118] sm:$0x3f] %vm311_vm1, %v4101_v3 }
  0x30   : > { %348 = vst.msk [vmem:[#allocation2 + $0x130] sm:$0x3f] %vm311_vm1, %v4101_v3  ;;  %351 = vst.msk [vmem:[#allocation2 + $0x148] sm:$0x3f] %vm311_vm1, %v4101_v3 }
  0x31   : > { %354 = vst.msk [vmem:[#allocation2 + $0x160] sm:$0x3f] %vm311_vm1, %v4101_v3  ;;  %357 = vst.msk [vmem:[#allocation2 + $0x178] sm:$0x3f] %vm311_vm1, %v4101_v3 }
  0x32   : > { %360 = vst.msk [vmem:[#allocation2 + $0x190] sm:$0x3f] %vm311_vm1, %v4101_v3  ;;  %363 = vst.msk [vmem:[#allocation2 + $0x1a8] sm:$0x3f] %vm311_vm1, %v4101_v3 }
  0x33   : > { %366 = vst.msk [vmem:[#allocation2 + $0x1c0] sm:$0x3f] %vm311_vm1, %v4101_v3  ;;  %369 = vst.msk [vmem:[#allocation2 + $0x1d8] sm:$0x3f] %vm311_vm1, %v4101_v3 }
  0x34   : > { %372 = vst.msk [vmem:[#allocation2 + $0x1f0] sm:$0x3f] %vm311_vm1, %v4101_v3  ;;  %375 = vst.msk [vmem:[#allocation2 + $0x208] sm:$0x3f] %vm311_vm1, %v4101_v3 }
  0x35   : > { %410 = vst.msk [vmem:[#allocation2 + $0x53] sm:$0xff] %vm308_vm0, %v4190_v1  ;;  %411 = vst.msk [vmem:[#allocation2 + $0x63] sm:$0xff] %vm308_vm0, %v4193_v2 }
  0x36   : > { %412 = vst.msk [vmem:[#allocation2 + $0x6b] sm:$0xff] %vm308_vm0, %v379_v4  ;;  %413 = vst.msk [vmem:[#allocation2 + $0x7b] sm:$0xff] %vm308_vm0, %v380_v5 }
  0x37   : > { %414 = vst.msk [vmem:[#allocation2 + $0x83] sm:$0xff] %vm308_vm0, %v381_v6  ;;  %415 = vst.msk [vmem:[#allocation2 + $0x93] sm:$0xff] %vm308_vm0, %v382_v7 }
  0x38   : > { %416 = vst.msk [vmem:[#allocation2 + $0x9b] sm:$0xff] %vm308_vm0, %v383_v8  ;;  %417 = vst.msk [vmem:[#allocation2 + $0xab] sm:$0xff] %vm308_vm0, %v384_v9 }
  0x39   : > { %418 = vst.msk [vmem:[#allocation2 + $0xb3] sm:$0xff] %vm308_vm0, %v385_v10  ;;  %419 = vst.msk [vmem:[#allocation2 + $0xc3] sm:$0xff] %vm308_vm0, %v386_v11 }
  0x3a   : > { %420 = vst.msk [vmem:[#allocation2 + $0xcb] sm:$0xff] %vm308_vm0, %v387_v12  ;;  %421 = vst.msk [vmem:[#allocation2 + $0xdb] sm:$0xff] %vm308_vm0, %v388_v13 }
  0x3b   : > { %422 = vst.msk [vmem:[#allocation2 + $0xe3] sm:$0xff] %vm308_vm0, %v389_v14  ;;  %423 = vst.msk [vmem:[#allocation2 + $0xf3] sm:$0xff] %vm308_vm0, %v390_v15 }
  0x3c   : > { %424 = vst.msk [vmem:[#allocation2 + $0xfb] sm:$0xff] %vm308_vm0, %v391_v16  ;;  %425 = vst.msk [vmem:[#allocation2 + $0x10b] sm:$0xff] %vm308_vm0, %v392_v17 }
  0x3d   : > { %426 = vst.msk [vmem:[#allocation2 + $0x113] sm:$0xff] %vm308_vm0, %v393_v18  ;;  %427 = vst.msk [vmem:[#allocation2 + $0x123] sm:$0xff] %vm308_vm0, %v394_v19 }
  0x3e   : > { %428 = vst.msk [vmem:[#allocation2 + $0x12b] sm:$0xff] %vm308_vm0, %v395_v20  ;;  %429 = vst.msk [vmem:[#allocation2 + $0x13b] sm:$0xff] %vm308_vm0, %v396_v21 }
  0x3f   : > { %430 = vst.msk [vmem:[#allocation2 + $0x143] sm:$0xff] %vm308_vm0, %v397_v22  ;;  %431 = vst.msk [vmem:[#allocation2 + $0x153] sm:$0xff] %vm308_vm0, %v398_v23 }
  0x40   : > { %432 = vst.msk [vmem:[#allocation2 + $0x15b] sm:$0xff] %vm308_vm0, %v399_v24  ;;  %433 = vst.msk [vmem:[#allocation2 + $0x16b] sm:$0xff] %vm308_vm0, %v400_v25 }
  0x41   : > { %434 = vst.msk [vmem:[#allocation2 + $0x173] sm:$0xff] %vm308_vm0, %v401_v26  ;;  %435 = vst.msk [vmem:[#allocation2 + $0x183] sm:$0xff] %vm308_vm0, %v402_v27 }
  0x42   : > { %436 = vst.msk [vmem:[#allocation2 + $0x18b] sm:$0xff] %vm308_vm0, %v403_v28  ;;  %437 = vst.msk [vmem:[#allocation2 + $0x19b] sm:$0xff] %vm308_vm0, %v404_v29 }
  0x43   : > { %438 = vst.msk [vmem:[#allocation2 + $0x1a3] sm:$0xff] %vm308_vm0, %v405_v30  ;;  %439 = vst.msk [vmem:[#allocation2 + $0x1b3] sm:$0xff] %vm308_vm0, %v406_v31 }
  0x44   : > { %440 = vst.msk [vmem:[#allocation2 + $0x1bb] sm:$0xff] %vm308_vm0, %v407_v32 }
  0x45 PF: > { %s3880_s20 = smul.u32 96, %s4083_s24  ;;  %v488_v33 = vlaneseq  ;;  %v474_v35 = vld [vmem:[%s7763_s1] sm:$0x7f]  ;;  %vm536_vm2 = vcmask 1046528   ;;  %vm601_vm3 = vcmask 1045504   ;;  %vm666_vm4 = vcmask 1044480  }
  0x46   : > { %vm731_vm5 = vcmask 1043456   ;;  %v4423_v47 = vld [vmem:[%s7764_s2] ss:$0 sm:$0xff]  ;;  %v475_v4 = vld [vmem:[%s7763_s1 + $0x8] sm:$0x7f]  ;;  %vm796_vm6 = vcmask 1042432  }
  0x47   : > { %v489_v34 = vshrl.u32 %v488_v33, 7  ;;  %s4401_s23 = scalar_lea.vmem [#allocation2], %s3880_s20  ;;  %vm861_vm7 = vcmask 1041408   ;;  %vm3322_vm8 = vcmask 31744   ;;  %vm3617_vm9 = vcmask 130048   ;;  %s3905_s20 = sshll.u32 %s4083_s24, 6 }
  0x48   : > { %s3748_s21 = scalar_lea.vmem %s4178_s13, %s3905_s20 }
  0x49   : > { %v4395_v36 = vsub.s32 0, %v489_v34  ;;  %v4397_v37 = vsub.s32 1, %v489_v34  ;;  %v4399_v38 = vsub.s32 2, %v489_v34  ;;  %v4405_v41 = vsub.s32 3, %v489_v34 }
  0x4a   : > { %v4407_v42 = vsub.s32 4, %v489_v34  ;;  %v4409_v43 = vsub.s32 5, %v489_v34  ;;  %v4434_v51 = vsub.s32 6, %v489_v34 }
  0x4b   : > { %v444_v39 = vld [vmem:[%s4401_s23] sm:$0xff]  ;;  %v445_v40 = vld [vmem:[%s4401_s23 + $0x8] sm:$0xff]  ;;  %v4412_v44 = vrot.slane %v474_v35, %v4395_v36  ;;  %v4415_v45 = vrot.slane %v474_v35, %v4397_v37  ;;  %v4418_v46 = vrot.slane %v474_v35, %v4399_v38  ;;  %v4426_v48 = vrot.slane %v474_v35, %v4405_v41  ;;  %v4485_v19 = vld [vmem:[%s4401_s23 + $0x18] sm:$0xff] }
  0x4c   : > { %v4429_v49 = vrot.slane %v474_v35, %v4407_v42  ;;  %v4432_v50 = vrot.slane %v474_v35, %v4409_v43  ;;  %v4476_v15 = vrot.slane %v474_v35, %v4434_v51  ;;  %v4479_v17 = vrot.slane %v475_v4, %v4395_v36  ;;  %v4488_v20 = vld [vmem:[%s4401_s23 + $0x20] sm:$0xff] }
  0x4d   : > { %8190 = vst [vmem:[#allocation3_spill] sm:$0xff] %v4412_v44  ;;  %8191 = vst [vmem:[#allocation4_spill] sm:$0xff] %v4415_v45  ;;  %v492_v52 = vmul.f32 %v4412_v44, %v444_v39  ;;  %v512_v53 = vmul.f32 %v4415_v45, %v444_v39  ;;  %v4439_v54 = vmul.f32 %v4415_v45, %v445_v40 }
  0x4e   : > { %8192 = vst [vmem:[#allocation5_spill] sm:$0xff] %v4418_v46  ;;  %8193 = vst [vmem:[#allocation6_spill] sm:$0xff] %v4426_v48  ;;  %v577_v55 = vmul.f32 %v4418_v46, %v444_v39  ;;  %v4443_v56 = vmul.f32 %v4418_v46, %v445_v40  ;;  %v642_v57 = vmul.f32 %v4426_v48, %v444_v39 }
  0x4f   : > { %8194 = vst [vmem:[#allocation7_spill] sm:$0xff] %v4429_v49  ;;  %8195 = vst [vmem:[#allocation8_spill] sm:$0xff] %v4432_v50  ;;  %v4447_v58 = vmul.f32 %v4426_v48, %v445_v40  ;;  %v707_v59 = vmul.f32 %v4429_v49, %v444_v39  ;;  %v500_v60 = vadd.f32 %v4423_v47, %v492_v52  ;;  %v537_v61 = vrot.slane %v512_v53, 1 }
  0x50   : > { %8196 = vst [vmem:[#allocation9_spill] sm:$0xff] %v4439_v54  ;;  %8197 = vst [vmem:[#allocation10_spill] sm:$0xff] %v4443_v56  ;;  %v7779_v62 = vrot.slane %v4439_v54, 1  ;;  %v602_v63 = vrot.slane %v577_v55, 2  ;;  %v7778_v0 = vrot.slane %v4443_v56, 2  ;;  %v667_v1 = vrot.slane %v642_v57, 3 }
  0x51   : > { %8198 = vst [vmem:[#allocation11_spill] sm:$0xff] %v4447_v58  ;;  %v7777_v2 = vrot.slane %v4447_v58, 3  ;;  %v4455_v3 = vmul.f32 %v4429_v49, %v445_v40  ;;  %v732_v6 = vrot.slane %v707_v59, 4  ;;  %v772_v7 = vmul.f32 %v4432_v50, %v444_v39  ;;  %8201 = vst [vmem:[#allocation14_spill] sm:$0xff] %v4476_v15 }
  0x52   : > { %v539_v5 = vsel %vm536_vm2, %v537_v61, %v7779_v62  ;;  %v4465_v8 = vmul.f32 %v4432_v50, %v445_v40  ;;  %v604_v10 = vsel %vm601_vm3, %v602_v63, %v7778_v0  ;;  %8202 = vst [vmem:[#allocation15_spill] sm:$0xff] %v4479_v17  ;;  %v4482_v18 = vrot.slane %v475_v4, %v4397_v37 }
  0x53   : > { %8199 = vst [vmem:[#allocation12_spill] sm:$0xff] %v4455_v3  ;;  %v565_v9 = vadd.f32 %v539_v5, %v500_v60  ;;  %v7776_v11 = vrot.slane %v4455_v3, 4  ;;  %v669_v12 = vsel %vm666_vm4, %v667_v1, %v7777_v2  ;;  %v797_v13 = vrot.slane %v772_v7, 5 }
  0x54   : > { %8200 = vst [vmem:[#allocation13_spill] sm:$0xff] %v4465_v8  ;;  %v7775_v14 = vrot.slane %v4465_v8, 5  ;;  %v837_v22 = vmul.f32 %v4476_v15, %v444_v39  ;;  %v4495_v23 = vmul.f32 %v4476_v15, %v445_v40  ;;  %v4498_v24 = vrot.slane %v475_v4, %v4399_v38 }
  0x55   : > { %v630_v16 = vadd.f32 %v604_v10, %v565_v9  ;;  %v734_v21 = vsel %vm731_vm5, %v732_v6, %v7776_v11  ;;  %v922_v27 = vmul.f32 %v4482_v18, %v4485_v19  ;;  %v4507_v28 = vmul.f32 %v4482_v18, %v4488_v20 }
  0x56   : > { %8203 = vst [vmem:[#allocation16_spill] sm:$0xff] %v4495_v23  ;;  %v799_v26 = vsel %vm796_vm6, %v797_v13, %v7775_v14  ;;  %v862_v29 = vrot.slane %v837_v22, 6  ;;  %v7774_v30 = vrot.slane %v4495_v23, 6  ;;  %v986_v31 = vmul.f32 %v4498_v24, %v4485_v19 }
  0x57   : > { %v695_v25 = vadd.f32 %v669_v12, %v630_v16  ;;  %8204 = vst [vmem:[#allocation17_spill] sm:$0xff] %v4507_v28  ;;  %v4514_v32 = vmul.f32 %v4498_v24, %v4488_v20  ;;  %v902_v34 = vmul.f32 %v4479_v17, %v4485_v19  ;;  %v4519_v35 = vrot.slane %v475_v4, %v4405_v41  ;;  %v476_v12 = vld [vmem:[%s7763_s1 + $0x10] sm:$0x7f] }
  0x58   : > { %v864_v39 = vsel %vm861_vm7, %v862_v29, %v7774_v30  ;;  %v946_v40 = vrot.slane %v922_v27, 1  ;;  %v7773_v52 = vrot.slane %v4507_v28, 1  ;;  %v4526_v53 = vrot.slane %v475_v4, %v4407_v42 }
  0x59   : > { %8205 = vst [vmem:[#allocation18_spill] sm:$0xff] %v4514_v32  ;;  %v760_v33 = vadd.f32 %v734_v21, %v695_v25  ;;  %v1010_v57 = vrot.slane %v986_v31, 2  ;;  %v1050_v59 = vmul.f32 %v4519_v35, %v4485_v19  ;;  %v4532_v60 = vmul.f32 %v4519_v35, %v4488_v20 }
  0x5a   : > { %8206 = vst [vmem:[#allocation19_spill] sm:$0xff] %v4526_v53  ;;  %v7770_v61 = vrot.slane %v4514_v32, 2  ;;  %v1114_v63 = vmul.f32 %v4526_v53, %v4485_v19  ;;  %v4539_v1 = vmul.f32 %v4526_v53, %v4488_v20  ;;  %v4542_v5 = vrot.slane %v475_v4, %v4409_v43 }
  0x5b   : > { %v825_v55 = vadd.f32 %v799_v26, %v760_v33  ;;  %8207 = vst [vmem:[#allocation20_spill] sm:$0xff] %v4532_v60  ;;  %v1074_v7 = vrot.slane %v1050_v59, 3  ;;  %v7771_v9 = vrot.slane %v4532_v60, 3  ;;  %v4546_v10 = vrot.slane %v475_v4, %v4434_v51  ;;  %v4581_v59 = vld [vmem:[%s4401_s23 + $0x38] sm:$0xff] }
  0x5c   : > { %8208 = vst [vmem:[#allocation21_spill] sm:$0xff] %v4539_v1  ;;  %8209 = vst [vmem:[#allocation22_spill] sm:$0xff] %v4542_v5  ;;  %v948_v13 = vsel %vm536_vm2, %v946_v40, %v7773_v52  ;;  %v1138_v16 = vrot.slane %v1114_v63, 4  ;;  %v1178_v21 = vmul.f32 %v4542_v5, %v4485_v19  ;;  %v4558_v22 = vmul.f32 %v4542_v5, %v4488_v20 }
  0x5d   : > { %v890_v6 = vadd.f32 %v864_v39, %v825_v55  ;;  %8210 = vst [vmem:[#allocation23_spill] sm:$0xff] %v4546_v10  ;;  %v7772_v25 = vrot.slane %v4539_v1, 4  ;;  %v1242_v26 = vmul.f32 %v4546_v10, %v4485_v19  ;;  %v4565_v27 = vmul.f32 %v4546_v10, %v4488_v20  ;;  %v4578_v55 = vld [vmem:[%s4401_s23 + $0x30] sm:$0xff] }
  0x5e   : > { %8211 = vst [vmem:[#allocation24_spill] sm:$0xff] %v4558_v22  ;;  %v1012_v29 = vsel %vm601_vm3, %v1010_v57, %v7770_v61  ;;  %v1076_v31 = vsel %vm666_vm4, %v1074_v7, %v7771_v9  ;;  %v1202_v39 = vrot.slane %v1178_v21, 5  ;;  %v4575_v40 = vrot.slane %v476_v12, %v4397_v37 }
  0x5f   : > { %v910_v4 = vadd.f32 %v902_v34, %v890_v6  ;;  %8212 = vst [vmem:[#allocation25_spill] sm:$0xff] %v4565_v27  ;;  %v7780_v34 = vrot.slane %v4558_v22, 5  ;;  %v1266_v63 = vrot.slane %v1242_v26, 6  ;;  %v7781_v6 = vrot.slane %v4565_v27, 6 }
  0x60   : > { %8213 = vst [vmem:[#allocation26_spill] sm:$0xff] %v4575_v40  ;;  %v4585_v57 = vrot.slane %v476_v12, %v4399_v38  ;;  %v4588_v61 = vrot.slane %v476_v12, %v4405_v41  ;;  %v1326_v21 = vmul.f32 %v4575_v40, %v4578_v55  ;;  %v4615_v52 = vrot.slane %v476_v12, %v4395_v36 }
  0x61   : > { %v974_v33 = vadd.f32 %v948_v13, %v910_v4  ;;  %v1140_v13 = vsel %vm731_vm5, %v1138_v16, %v7772_v25  ;;  %v4597_v4 = vmul.f32 %v4575_v40, %v4581_v59  ;;  %v1204_v25 = vsel %vm796_vm6, %v1202_v39, %v7780_v34  ;;  %v477_v34 = vld [vmem:[%s7763_s1 + $0x18] sm:$0x7f] }
  0x62   : > { %8214 = vst [vmem:[#allocation27_spill] sm:$0xff] %v4585_v57  ;;  %8215 = vst [vmem:[#allocation28_spill] sm:$0xff] %v4588_v61  ;;  %v1390_v26 = vmul.f32 %v4585_v57, %v4578_v55  ;;  %v4603_v9 = vmul.f32 %v4585_v57, %v4581_v59  ;;  %v4609_v16 = vmul.f32 %v4588_v61, %v4581_v59  ;;  %v1350_v11 = vrot.slane %v1326_v21, 1 }
  0x63   : > { %v1038_v7 = vadd.f32 %v1012_v29, %v974_v33  ;;  %8216 = vst [vmem:[#allocation29_spill] sm:$0xff] %v4597_v4  ;;  %v1454_v29 = vmul.f32 %v4588_v61, %v4578_v55  ;;  %8219 = vst [vmem:[#allocation32_spill] sm:$0xff] %v4615_v52  ;;  %v4618_v30 = vrot.slane %v476_v12, %v4407_v42  ;;  %v7785_v2 = vrot.slane %v4597_v4, 1 }
  0x64   : > { %8217 = vst [vmem:[#allocation30_spill] sm:$0xff] %v4603_v9  ;;  %8218 = vst [vmem:[#allocation31_spill] sm:$0xff] %v4609_v16  ;;  %v1268_v14 = vsel %vm861_vm7, %v1266_v63, %v7781_v6  ;;  %v1414_v0 = vrot.slane %v1390_v26, 2  ;;  %v4639_v26 = vrot.slane %v476_v12, %v4434_v51  ;;  %v1306_v6 = vmul.f32 %v4615_v52, %v4578_v55 }
  0x65   : > { %v1102_v33 = vadd.f32 %v1076_v31, %v1038_v7  ;;  %8220 = vst [vmem:[#allocation33_spill] sm:$0xff] %v4618_v30  ;;  %v1518_v39 = vmul.f32 %v4618_v30, %v4578_v55  ;;  %v4629_v7 = vmul.f32 %v4618_v30, %v4581_v59  ;;  %v1478_v63 = vrot.slane %v1454_v29, 3 }
  0x66   : > { %8223 = vst [vmem:[#allocation36_spill] sm:$0xff] %v4639_v26  ;;  %v1352_v31 = vsel %vm536_vm2, %v1350_v11, %v7785_v2  ;;  %v4662_v11 = vld [vmem:[%s4401_s23 + $0x50] sm:$0xff]  ;;  %v4672_v22 = vmul.f32 %v4639_v26, %v4581_v59  ;;  %v4675_v4 = vrot.slane %v477_v34, %v4395_v36 }
  0x67   : > { %v1166_v62 = vadd.f32 %v1140_v13, %v1102_v33  ;;  %8221 = vst [vmem:[#allocation34_spill] sm:$0xff] %v4629_v7  ;;  %v4636_v13 = vrot.slane %v476_v12, %v4409_v43  ;;  %v1542_v27 = vrot.slane %v1518_v39, 4  ;;  %v4656_v12 = vrot.slane %v477_v34, %v4397_v37 }
  0x68   : > { %v8226_v39 = vrot.slane %v4603_v9, 2  ;;  %8228 = vst [vmem:[#allocation39_spill] sm:$0xff] %v4672_v22  ;;  %8229 = vst [vmem:[#allocation40_spill] sm:$0xff] %v4675_v4 }
  0x69   : > { %8222 = vst [vmem:[#allocation35_spill] sm:$0xff] %v4636_v13  ;;  %v1230_v33 = vadd.f32 %v1204_v25, %v1166_v62  ;;  %v1582_v29 = vmul.f32 %v4636_v13, %v4578_v55  ;;  %v4651_v1 = vmul.f32 %v4636_v13, %v4581_v59  ;;  %v1646_v62 = vmul.f32 %v4639_v26, %v4578_v55  ;;  %v4659_v25 = vld [vmem:[%s4401_s23 + $0x48] sm:$0xff] }
  0x6a   : > { %8225 = vst [vmem:[#allocation38_spill] sm:$0xff] %v4656_v12  ;;  %v1416_v2 = vsel %vm601_vm3, %v1414_v0, %v8226_v39  ;;  %v1730_v32 = vmul.f32 %v4656_v12, %v4659_v25  ;;  %v4681_v9 = vmul.f32 %v4656_v12, %v4662_v11  ;;  %v4684_v0 = vrot.slane %v477_v34, %v4399_v38 }
  0x6b   : > { %v1294_v21 = vadd.f32 %v1268_v14, %v1230_v33  ;;  %8224 = vst [vmem:[#allocation37_spill] sm:$0xff] %v4651_v1  ;;  %v8227_v14 = vrot.slane %v4609_v16, 3  ;;  %v4690_v16 = vrot.slane %v477_v34, %v4405_v41  ;;  %v1670_v23 = vrot.slane %v1646_v62, 6 }
  0x6c   : > { %8230 = vst [vmem:[#allocation41_spill] sm:$0xff] %v4681_v9  ;;  %8231 = vst [vmem:[#allocation42_spill] sm:$0xff] %v4684_v0  ;;  %v1794_v8 = vmul.f32 %v4684_v0, %v4659_v25  ;;  %v1754_v62 = vrot.slane %v1730_v32, 1  ;;  %v4725_v32 = vrot.slane %v477_v34, %v4434_v51 }
  0x6d   : > { %v1480_v33 = vsel %vm666_vm4, %v1478_v63, %v8227_v14  ;;  %v1314_v60 = vadd.f32 %v1306_v6, %v1294_v21  ;;  %v8232_v63 = vrot.slane %v4629_v7, 4  ;;  %v1606_v14 = vrot.slane %v1582_v29, 5  ;;  %8233 = vst [vmem:[#allocation43_spill] sm:$0xff] %v4690_v16 }
  0x6e   : > { %v4693_v6 = vrot.slane %v477_v34, %v4407_v42  ;;  %v4701_v7 = vmul.f32 %v4684_v0, %v4662_v11  ;;  %v4707_v29 = vmul.f32 %v4690_v16, %v4662_v11  ;;  %v1818_v28 = vrot.slane %v1794_v8, 2  ;;  %8239 = vst [vmem:[#allocation49_spill] sm:$0xff] %v4725_v32 }
  0x6f   : > { %v1544_v39 = vsel %vm731_vm5, %v1542_v27, %v8232_v63  ;;  %v1378_v21 = vadd.f32 %v1352_v31, %v1314_v60  ;;  %v1858_v27 = vmul.f32 %v4690_v16, %v4659_v25  ;;  %v478_v60 = vld [vmem:[%s7763_s1 + $0x20] sm:$0x7f]  ;;  %v7805_v63 = vrot.slane %v4681_v9, 1 }
  0x70   : > { %8234 = vst [vmem:[#allocation44_spill] sm:$0xff] %v4693_v6  ;;  %8235 = vst [vmem:[#allocation45_spill] sm:$0xff] %v4701_v7  ;;  %v1922_v3 = vmul.f32 %v4693_v6, %v4659_v25  ;;  %v4718_v54 = vmul.f32 %v4693_v6, %v4662_v11  ;;  %v8240_v8 = vrot.slane %v4651_v1, 5 }
  0x71   : > { %8236 = vst [vmem:[#allocation46_spill] sm:$0xff] %v4707_v29  ;;  %v1442_v31 = vadd.f32 %v1416_v2, %v1378_v21  ;;  %v1882_v56 = vrot.slane %v1858_v27, 3  ;;  %v4722_v2 = vrot.slane %v477_v34, %v4409_v43  ;;  %v8241_v27 = vrot.slane %v4672_v22, 6 }
  0x72   : > { %8237 = vst [vmem:[#allocation47_spill] sm:$0xff] %v4718_v54  ;;  %v1608_v21 = vsel %vm796_vm6, %v1606_v14, %v8240_v8  ;;  %v1756_v34 = vsel %vm536_vm2, %v1754_v62, %v7805_v63  ;;  %v4748_v8 = vld [vmem:[%s4401_s23 + $0x60] sm:$0xff]  ;;  %v2050_v22 = vmul.f32 %v4725_v32, %v4659_v25  ;;  %v8247_v63 = vrot.slane %v4701_v7, 2 }
  0x73   : > { %v1506_v16 = vadd.f32 %v1480_v33, %v1442_v31  ;;  %8238 = vst [vmem:[#allocation48_spill] sm:$0xff] %v4722_v2  ;;  %v1672_v58 = vsel %vm861_vm7, %v1670_v23, %v8241_v27  ;;  %v1710_v33 = vmul.f32 %v4675_v4, %v4659_v25  ;;  %v4736_v31 = vrot.slane %v478_v60, %v4397_v37 }
  0x74   : > { %v1986_v1 = vmul.f32 %v4722_v2, %v4659_v25  ;;  %v4745_v14 = vmul.f32 %v4722_v2, %v4662_v11  ;;  %8244 = vst [vmem:[#allocation52_spill] sm:$0xff] %v4748_v8  ;;  %v1946_v23 = vrot.slane %v1922_v3, 4  ;;  %v1820_v9 = vsel %vm601_vm3, %v1818_v28, %v8247_v63 }
  0x75   : > { %8242 = vst [vmem:[#allocation50_spill] sm:$0xff] %v4736_v31  ;;  %v1570_v0 = vadd.f32 %v1544_v39, %v1506_v16  ;;  %v4755_v16 = vmul.f32 %v4725_v32, %v4662_v11  ;;  %v4758_v39 = vld [vmem:[%s4401_s23 + $0x68] sm:$0xff]  ;;  %v8248_v2 = vrot.slane %v4707_v29, 3  ;;  %v2134_v27 = vmul.f32 %v4736_v31, %v4748_v8 }
  0x76   : > { %8243 = vst [vmem:[#allocation51_spill] sm:$0xff] %v4745_v14  ;;  %8246 = vst [vmem:[#allocation54_spill] sm:$0xff] %v4758_v39  ;;  %v2010_v6 = vrot.slane %v1986_v1, 5  ;;  %v4769_v4 = vrot.slane %v478_v60, %v4395_v36  ;;  %v4773_v32 = vmul.f32 %v4736_v31, %v4758_v39  ;;  %v2074_v63 = vrot.slane %v2050_v22, 6 }
  0x77   : > { %8245 = vst [vmem:[#allocation53_spill] sm:$0xff] %v4755_v16  ;;  %v1634_v62 = vadd.f32 %v1608_v21, %v1570_v0  ;;  %v1884_v3 = vsel %vm666_vm4, %v1882_v56, %v8248_v2  ;;  %v4776_v0 = vrot.slane %v478_v60, %v4399_v38  ;;  %v4780_v56 = vrot.slane %v478_v60, %v4405_v41 }
  0x78   : > { %8249 = vst [vmem:[#allocation55_spill] sm:$0xff] %v4769_v4  ;;  %8250 = vst [vmem:[#allocation56_spill] sm:$0xff] %v4773_v32  ;;  %v4790_v7 = vrot.slane %v478_v60, %v4407_v42  ;;  %v8256_v13 = vrot.slane %v4718_v54, 4 }
  0x79   : > { %8251 = vst [vmem:[#allocation57_spill] sm:$0xff] %v4776_v0  ;;  %v1698_v21 = vadd.f32 %v1672_v58, %v1634_v62  ;;  %8252 = vst [vmem:[#allocation58_spill] sm:$0xff] %v4780_v56  ;;  %v2198_v1 = vmul.f32 %v4776_v0, %v4748_v8  ;;  %v4787_v29 = vmul.f32 %v4776_v0, %v4758_v39  ;;  %v2158_v58 = vrot.slane %v2134_v27, 1 }
  0x7a   : > { %8254 = vst [vmem:[#allocation60_spill] sm:$0xff] %v4790_v7  ;;  %v2262_v22 = vmul.f32 %v4780_v56, %v4748_v8  ;;  %v4796_v62 = vmul.f32 %v4780_v56, %v4758_v39  ;;  %v2326_v0 = vmul.f32 %v4790_v7, %v4748_v8  ;;  %v2114_v27 = vmul.f32 %v4769_v4, %v4748_v8 }
  0x7b   : > { %8253 = vst [vmem:[#allocation59_spill] sm:$0xff] %v4787_v29  ;;  %v1718_v31 = vadd.f32 %v1710_v33, %v1698_v21  ;;  %v2222_v28 = vrot.slane %v2198_v1, 2  ;;  %v1948_v33 = vsel %vm731_vm5, %v1946_v23, %v8256_v13  ;;  %v4808_v21 = vrot.slane %v478_v60, %v4409_v43  ;;  %v479_v1 = vld [vmem:[%s7763_s1 + $0x28] sm:$0x7f] }
  0x7c   : > { %8255 = vst [vmem:[#allocation61_spill] sm:$0xff] %v4796_v62  ;;  %v2286_v2 = vrot.slane %v2262_v22, 3  ;;  %v4819_v13 = vrot.slane %v478_v60, %v4434_v51  ;;  %v8260_v23 = vrot.slane %v4745_v14, 5  ;;  %v8261_v4 = vrot.slane %v4755_v16, 6 }
  0x7d   : > { %v1782_v26 = vadd.f32 %v1756_v34, %v1718_v31  ;;  %8257 = vst [vmem:[#allocation62_spill] sm:$0xff] %v4808_v21  ;;  %v4816_v31 = vmul.f32 %v4790_v7, %v4758_v39  ;;  %v2390_v12 = vmul.f32 %v4808_v21, %v4748_v8  ;;  %v8262_v56 = vrot.slane %v4773_v32, 1 }
  0x7e   : > { %8259 = vst [vmem:[#allocation64_spill] sm:$0xff] %v4819_v13  ;;  %v2012_v54 = vsel %vm796_vm6, %v2010_v6, %v8260_v23  ;;  %v2076_v22 = vsel %vm861_vm7, %v2074_v63, %v8261_v4  ;;  %v8263_v30 = vrot.slane %v4787_v29, 2  ;;  %v2454_v4 = vmul.f32 %v4819_v13, %v4748_v8 }
  0x7f   : > { %8258 = vst [vmem:[#allocation63_spill] sm:$0xff] %v4816_v31  ;;  %v1846_v34 = vadd.f32 %v1820_v9, %v1782_v26  ;;  %v2160_v7 = vsel %vm536_vm2, %v2158_v58, %v8262_v56  ;;  %v2350_v9 = vrot.slane %v2326_v0, 4  ;;  %v4837_v26 = vmul.f32 %v4808_v21, %v4758_v39  ;;  %v4849_v56 = vld [vmem:[%s4401_s23 + $0x78] sm:$0xff]  ;;  %v4852_v58 = vld [vmem:[%s4401_s23 + $0x80] sm:$0xff] }
  0x80   : > { %v2224_v60 = vsel %vm601_vm3, %v2222_v28, %v8263_v30  ;;  %v4843_v63 = vmul.f32 %v4819_v13, %v4758_v39  ;;  %v4846_v23 = vrot.slane %v479_v1, %v4397_v37  ;;  %8267 = vst [vmem:[#allocation68_spill] sm:$0xff] %v4852_v58  ;;  %v8268_v30 = vrot.slane %v4796_v62, 3 }
  0x81   : > { %8264 = vst [vmem:[#allocation65_spill] sm:$0xff] %v4837_v26  ;;  %v1910_v6 = vadd.f32 %v1884_v3, %v1846_v34  ;;  %v4859_v28 = vrot.slane %v479_v1, %v4395_v36  ;;  %v4862_v34 = vrot.slane %v479_v1, %v4399_v38  ;;  %v2414_v32 = vrot.slane %v2390_v12, 5 }
  0x82   : > { %8265 = vst [vmem:[#allocation66_spill] sm:$0xff] %v4843_v63  ;;  %8266 = vst [vmem:[#allocation67_spill] sm:$0xff] %v4846_v23  ;;  %v2288_v0 = vsel %vm666_vm4, %v2286_v2, %v8268_v30  ;;  %v2538_v16 = vmul.f32 %v4846_v23, %v4849_v56  ;;  %v4868_v14 = vmul.f32 %v4846_v23, %v4852_v58 }
  0x83   : > { %8269 = vst [vmem:[#allocation69_spill] sm:$0xff] %v4859_v28  ;;  %8270 = vst [vmem:[#allocation70_spill] sm:$0xff] %v4862_v34  ;;  %v1974_v29 = vadd.f32 %v1948_v33, %v1910_v6  ;;  %v2602_v2 = vmul.f32 %v4862_v34, %v4849_v56  ;;  %v4875_v30 = vmul.f32 %v4862_v34, %v4852_v58  ;;  %v2478_v33 = vrot.slane %v2454_v4, 6 }
  0x84   : > { %8271 = vst [vmem:[#allocation71_spill] sm:$0xff] %v4868_v14  ;;  %v4878_v3 = vrot.slane %v479_v1, %v4405_v41  ;;  %v7862_v6 = vrot.slane %v4843_v63, 6  ;;  %v4882_v13 = vrot.slane %v479_v1, %v4407_v42  ;;  %v2562_v23 = vrot.slane %v2538_v16, 1 }
  0x85   : > { %8272 = vst [vmem:[#allocation72_spill] sm:$0xff] %v4875_v30  ;;  %v2038_v12 = vadd.f32 %v2012_v54, %v1974_v29  ;;  %v2626_v21 = vrot.slane %v2602_v2, 2  ;;  %v8275_v34 = vrot.slane %v4816_v31, 4  ;;  %v4897_v16 = vmul.f32 %v4859_v28, %v4849_v56 }
  0x86   : > { %8273 = vst [vmem:[#allocation73_spill] sm:$0xff] %v4878_v3  ;;  %8274 = vst [vmem:[#allocation74_spill] sm:$0xff] %v4882_v13  ;;  %v2666_v54 = vmul.f32 %v4878_v3, %v4849_v56  ;;  %v4893_v29 = vmul.f32 %v4878_v3, %v4852_v58  ;;  %v2730_v4 = vmul.f32 %v4882_v13, %v4849_v56  ;;  %v8281_v28 = vrot.slane %v4868_v14, 1  ;;  %v4949_v14 = vld [vmem:[%s4401_s23 + $0x98] sm:$0xff] }
  0x87   : > { %v2102_v8 = vadd.f32 %v2076_v22, %v2038_v12  ;;  %v2352_v52 = vsel %vm731_vm5, %v2350_v9, %v8275_v34  ;;  %v4903_v22 = vmul.f32 %v4882_v13, %v4852_v58  ;;  %v4906_v9 = vrot.slane %v479_v1, %v4409_v43  ;;  %v480_v34 = vld [vmem:[%s7763_s1 + $0x30] sm:$0x7f]  ;;  %8286 = vst [vmem:[#allocation82_spill] sm:$0xff] %v4949_v14 }
  0x88   : > { %8276 = vst [vmem:[#allocation75_spill] sm:$0xff] %v4893_v29  ;;  %v8279_v12 = vrot.slane %v4837_v26, 5  ;;  %v2480_v62 = vsel %vm861_vm7, %v2478_v33, %v7862_v6  ;;  %v4918_v31 = vrot.slane %v479_v1, %v4434_v51  ;;  %v2564_v13 = vsel %vm536_vm2, %v2562_v23, %v8281_v28 }
  0x89   : > { %8277 = vst [vmem:[#allocation76_spill] sm:$0xff] %v4903_v22  ;;  %8278 = vst [vmem:[#allocation77_spill] sm:$0xff] %v4906_v9  ;;  %v2122_v2 = vadd.f32 %v2114_v27, %v2102_v8  ;;  %v8282_v3 = vrot.slane %v4875_v30, 2  ;;  %v4932_v27 = vmul.f32 %v4906_v9, %v4852_v58  ;;  %v2754_v23 = vrot.slane %v2730_v4, 4  ;;  %v4946_v30 = vld [vmem:[%s4401_s23 + $0x90] sm:$0xff] }
  0x8a   : > { %v2416_v39 = vsel %vm796_vm6, %v2414_v32, %v8279_v12  ;;  %8280 = vst [vmem:[#allocation78_spill] sm:$0xff] %v4918_v31  ;;  %v2794_v32 = vmul.f32 %v4906_v9, %v4849_v56  ;;  %v2690_v12 = vrot.slane %v2666_v54, 3  ;;  %v2858_v6 = vmul.f32 %v4918_v31, %v4849_v56 }
  0x8b   : > { %v4926_v8 = vsel %vm601_vm3, %v2626_v21, %v8282_v3  ;;  %8283 = vst [vmem:[#allocation79_spill] sm:$0xff] %v4932_v27  ;;  %v2186_v33 = vadd.f32 %v2160_v7, %v2122_v2  ;;  %v4940_v21 = vmul.f32 %v4918_v31, %v4852_v58  ;;  %v4943_v3 = vrot.slane %v480_v34, %v4397_v37 }
  0x8c   : > { %v2818_v54 = vrot.slane %v2794_v32, 5  ;;  %v4952_v2 = vrot.slane %v480_v34, %v4395_v36  ;;  %v4955_v4 = vrot.slane %v480_v34, %v4399_v38  ;;  %v4965_v63 = vrot.slane %v480_v34, %v4405_v41 }
  0x8d   : > { %8284 = vst [vmem:[#allocation80_spill] sm:$0xff] %v4940_v21  ;;  %8285 = vst [vmem:[#allocation81_spill] sm:$0xff] %v4943_v3  ;;  %v2250_v7 = vadd.f32 %v2224_v60, %v2186_v33  ;;  %v2942_v1 = vmul.f32 %v4943_v3, %v4946_v30  ;;  %v4962_v37 = vmul.f32 %v4943_v3, %v4949_v14  ;;  %v2882_v32 = vrot.slane %v2858_v6, 6 }
  0x8e   : > { %8287 = vst [vmem:[#allocation83_spill] sm:$0xff] %v4952_v2  ;;  %8288 = vst [vmem:[#allocation84_spill] sm:$0xff] %v4955_v4  ;;  %v3006_v36 = vmul.f32 %v4955_v4, %v4946_v30  ;;  %v4971_v38 = vmul.f32 %v4955_v4, %v4949_v14  ;;  %v3070_v26 = vmul.f32 %v4965_v63, %v4946_v30  ;;  %v8295_v58 = vrot.slane %v4893_v29, 3 }
  0x8f   : > { %8289 = vst [vmem:[#allocation85_spill] sm:$0xff] %v4962_v37  ;;  %8290 = vst [vmem:[#allocation86_spill] sm:$0xff] %v4965_v63  ;;  %v2314_v60 = vadd.f32 %v2288_v0, %v2250_v7  ;;  %v2966_v28 = vrot.slane %v2942_v1, 1  ;;  %v4978_v3 = vmul.f32 %v4965_v63, %v4949_v14  ;;  %v7879_v0 = vrot.slane %v4962_v37, 1 }
  0x90   : > { %8291 = vst [vmem:[#allocation87_spill] sm:$0xff] %v4971_v38  ;;  %v3030_v6 = vrot.slane %v3006_v36, 2  ;;  %v4982_v7 = vrot.slane %v480_v34, %v4407_v42  ;;  %v3094_v31 = vrot.slane %v3070_v26, 3  ;;  %v4987_v1 = vrot.slane %v480_v34, %v4409_v43 }
  0x91   : > { %8292 = vst [vmem:[#allocation88_spill] sm:$0xff] %v4978_v3  ;;  %v2378_v41 = vadd.f32 %v2352_v52, %v2314_v60  ;;  %v2692_v63 = vsel %vm666_vm4, %v2690_v12, %v8295_v58  ;;  %v8297_v26 = vrot.slane %v4903_v22, 4  ;;  %v5012_v58 = vrot.slane %v480_v34, %v4434_v51 }
  0x92   : > { %8293 = vst [vmem:[#allocation89_spill] sm:$0xff] %v4982_v7  ;;  %8294 = vst [vmem:[#allocation90_spill] sm:$0xff] %v4987_v1  ;;  %v4994_v52 = vmul.f32 %v4982_v7, %v4946_v30  ;;  %v4998_v42 = vmul.f32 %v4982_v7, %v4949_v14  ;;  %v5005_v43 = vmul.f32 %v4987_v1, %v4946_v30  ;;  %v8300_v36 = vrot.slane %v4932_v27, 5 }
  0x93   : > { %v2442_v9 = vadd.f32 %v2416_v39, %v2378_v41  ;;  %v2756_v60 = vsel %vm731_vm5, %v2754_v23, %v8297_v26  ;;  %v5009_v39 = vmul.f32 %v4987_v1, %v4949_v14  ;;  %8299 = vst [vmem:[#allocation93_spill] sm:$0xff] %v5012_v58  ;;  %v8301_v33 = vrot.slane %v4940_v21, 6 }
  0x94   : > { %8296 = vst [vmem:[#allocation91_spill] sm:$0xff] %v4998_v42  ;;  %v2820_v41 = vsel %vm796_vm6, %v2818_v54, %v8300_v36  ;;  %v2922_v26 = vmul.f32 %v4952_v2, %v4946_v30  ;;  %v5025_v4 = vsel %vm536_vm2, %v2966_v28, %v7879_v0  ;;  %v8302_v51 = vrot.slane %v4971_v38, 2 }
  0x95   : > { %8298 = vst [vmem:[#allocation92_spill] sm:$0xff] %v5009_v39  ;;  %v2506_v12 = vadd.f32 %v2480_v62, %v2442_v9  ;;  %v2884_v23 = vsel %vm861_vm7, %v2882_v32, %v8301_v33  ;;  %v8303_v9 = vrot.slane %v4978_v3, 3  ;;  %v494_v28 = vmul.f32 %v4412_v44, %v4485_v19 }
  0x96   : > { %v5030_v62 = vsel %vm601_vm3, %v3030_v6, %v8302_v51  ;;  %v515_v36 = vmul.f32 %v4415_v45, %v4485_v19  ;;  %v580_v54 = vmul.f32 %v4418_v46, %v4485_v19  ;;  %v5059_v6 = vmul.f32 %v5012_v58, %v4949_v14 }
  0x97   : > { %v5035_v34 = vsel %vm666_vm4, %v3094_v31, %v8303_v9  ;;  %v2526_v32 = vadd.f32 %v4897_v16, %v2506_v12  ;;  %v5048_v31 = vmul.f32 %v5012_v58, %v4946_v30  ;;  %v5052_v9 = vmul.f32 %v4415_v45, %v4488_v20 }
  0x98   : > { %v502_v12 = vadd.f32 %v4423_v47, %v494_v28  ;;  %v542_v0 = vrot.slane %v515_v36, 1  ;;  %8305 = vst [vmem:[#allocation95_spill] sm:$0xff] %v5059_v6  ;;  %v5064_v33 = vmul.f32 %v4418_v46, %v4488_v20  ;;  %v645_v3 = vmul.f32 %v4426_v48, %v4485_v19 }
  0x99   : > { %8304 = vst [vmem:[#allocation94_spill] sm:$0xff] %v5052_v9  ;;  %v2590_v16 = vadd.f32 %v2564_v13, %v2526_v32  ;;  %v7887_v51 = vrot.slane %v5052_v9, 1  ;;  %v607_v47 = vrot.slane %v580_v54, 2  ;;  %v5071_v32 = vmul.f32 %v4426_v48, %v4488_v20 }
  0x9a   : > { %8306 = vst [vmem:[#allocation96_spill] sm:$0xff] %v5064_v33  ;;  %v710_v28 = vmul.f32 %v4429_v49, %v4485_v19  ;;  %v7893_v38 = vrot.slane %v5064_v33, 2  ;;  %v672_v37 = vrot.slane %v645_v3, 3  ;;  %v5081_v21 = vmul.f32 %v4429_v49, %v4488_v20  ;;  %v8364_v33 = vld [vmem:[#allocation62_spill] sm:$0xff] }
  0x9b   : > { %v2654_v13 = vadd.f32 %v4926_v8, %v2590_v16  ;;  %8307 = vst [vmem:[#allocation97_spill] sm:$0xff] %v5071_v32  ;;  %v544_v36 = vsel %vm536_vm2, %v542_v0, %v7887_v51  ;;  %v7891_v16 = vrot.slane %v5071_v32, 3  ;;  %v775_v0 = vmul.f32 %v4432_v50, %v4485_v19 }
  0x9c   : > { %8308 = vst [vmem:[#allocation98_spill] sm:$0xff] %v5081_v21  ;;  %v567_v54 = vadd.f32 %v544_v36, %v502_v12  ;;  %v737_v27 = vrot.slane %v710_v28, 4  ;;  %v609_v22 = vsel %vm601_vm3, %v607_v47, %v7893_v38  ;;  %v7889_v9 = vrot.slane %v5081_v21, 4 }
  0x9d   : > { %v2718_v8 = vadd.f32 %v2692_v63, %v2654_v13  ;;  %v5092_v3 = vmul.f32 %v4432_v50, %v4488_v20  ;;  %v674_v63 = vsel %vm666_vm4, %v672_v37, %v7891_v16  ;;  %v840_v12 = vmul.f32 %v4476_v15, %v4485_v19 }
  0x9e   : > { %v632_v29 = vadd.f32 %v609_v22, %v567_v54  ;;  %v739_v13 = vsel %vm731_vm5, %v737_v27, %v7889_v9  ;;  %v802_v47 = vrot.slane %v775_v0, 5  ;;  %v5105_v36 = vmul.f32 %v4476_v15, %v4488_v20 }
  0x9f   : > { %8309 = vst [vmem:[#allocation99_spill] sm:$0xff] %v5092_v3  ;;  %v2782_v51 = vadd.f32 %v2756_v60, %v2718_v8  ;;  %v7890_v28 = vrot.slane %v5092_v3, 5  ;;  %v3286_v22 = vrot.slane %v5048_v31, 6  ;;  %v867_v54 = vrot.slane %v840_v12, 6 }
  0xa0   : > { %8310 = vst [vmem:[#allocation100_spill] sm:$0xff] %v5105_v36  ;;  %v697_v8 = vadd.f32 %v674_v63, %v632_v29  ;;  %v7892_v37 = vrot.slane %v5105_v36, 6  ;;  %v925_v27 = vmul.f32 %v4482_v18, %v4578_v55  ;;  %v5116_v0 = vmul.f32 %v4482_v18, %v4581_v59 }
  0xa1   : > { %v2846_v60 = vadd.f32 %v2820_v41, %v2782_v51  ;;  %v804_v19 = vsel %vm796_vm6, %v802_v47, %v7890_v28  ;;  %v989_v41 = vmul.f32 %v4498_v24, %v4578_v55  ;;  %v5122_v29 = vmul.f32 %v4498_v24, %v4581_v59 }
  0xa2   : > { %8311 = vst [vmem:[#allocation101_spill] sm:$0xff] %v5116_v0  ;;  %v762_v9 = vadd.f32 %v739_v13, %v697_v8  ;;  %v869_v51 = vsel %vm861_vm7, %v867_v54, %v7892_v37  ;;  %v951_v31 = vrot.slane %v925_v27, 1  ;;  %v7894_v63 = vrot.slane %v5116_v0, 1 }
  0xa3   : > { %v2910_v20 = vadd.f32 %v2884_v23, %v2846_v60  ;;  %8312 = vst [vmem:[#allocation102_spill] sm:$0xff] %v5122_v29  ;;  %v1053_v12 = vmul.f32 %v4519_v35, %v4578_v55  ;;  %v904_v60 = vmul.f32 %v4479_v17, %v4578_v55  ;;  %v1015_v8 = vrot.slane %v989_v41, 2 }
  0xa4   : > { %v827_v13 = vadd.f32 %v804_v19, %v762_v9  ;;  %v7895_v28 = vrot.slane %v5122_v29, 2  ;;  %v5136_v16 = vmul.f32 %v4519_v35, %v4581_v59  ;;  %v1117_v54 = vmul.f32 %v4526_v53, %v4578_v55 }
  0xa5   : > { %v2930_v47 = vadd.f32 %v2922_v26, %v2910_v20  ;;  %v953_v26 = vsel %vm536_vm2, %v951_v31, %v7894_v63  ;;  %v5146_v9 = vmul.f32 %v4526_v53, %v4581_v59  ;;  %v1079_v19 = vrot.slane %v1053_v12, 3 }
  0xa6   : > { %8313 = vst [vmem:[#allocation103_spill] sm:$0xff] %v5136_v16  ;;  %v892_v37 = vadd.f32 %v869_v51, %v827_v13  ;;  %v1181_v41 = vmul.f32 %v4542_v5, %v4578_v55  ;;  %v5153_v38 = vmul.f32 %v4542_v5, %v4581_v59  ;;  %v8316_v13 = vrot.slane %v4998_v42, 4 }
  0xa7   : > { %v2994_v27 = vadd.f32 %v5025_v4, %v2930_v47  ;;  %8314 = vst [vmem:[#allocation104_spill] sm:$0xff] %v5146_v9  ;;  %v1143_v47 = vrot.slane %v1117_v54, 4  ;;  %v8317_v63 = vrot.slane %v4994_v52, 4  ;;  %v1017_v23 = vsel %vm601_vm3, %v1015_v8, %v7895_v28 }
  0xa8   : > { %8315 = vst [vmem:[#allocation105_spill] sm:$0xff] %v5153_v38  ;;  %v912_v51 = vadd.f32 %v904_v60, %v892_v37  ;;  %v1245_v20 = vmul.f32 %v4546_v10, %v4578_v55  ;;  %v8319_v54 = vrot.slane %v5009_v39, 5  ;;  %v8320_v52 = vrot.slane %v5005_v43, 5 }
  0xa9   : > { %v3058_v4 = vadd.f32 %v5030_v62, %v2994_v27  ;;  %v3160_v12 = vsel %vm731_vm5, %v8317_v63, %v8316_v13  ;;  %v5169_v62 = vmul.f32 %v4546_v10, %v4581_v59  ;;  %v8321_v27 = vrot.slane %v5136_v16, 3 }
  0xaa   : > { %v976_v60 = vadd.f32 %v953_v26, %v912_v51  ;;  %v3224_v63 = vsel %vm796_vm6, %v8320_v52, %v8319_v54  ;;  %v1207_v13 = vrot.slane %v1181_v41, 5  ;;  %v7897_v55 = vrot.slane %v5153_v38, 5  ;;  %v8337_v38 = vld [vmem:[#allocation54_spill] sm:$0xff] }
  0xab   : > { %8318 = vst [vmem:[#allocation106_spill] sm:$0xff] %v5169_v62  ;;  %v3122_v37 = vadd.f32 %v5035_v34, %v3058_v4  ;;  %v1081_v8 = vsel %vm666_vm4, %v1079_v19, %v8321_v27  ;;  %v8322_v59 = vrot.slane %v5059_v6, 6  ;;  %v8323_v26 = vrot.slane %v5146_v9, 4 }
  0xac   : > { %v1040_v34 = vadd.f32 %v1017_v23, %v976_v60  ;;  %v1271_v43 = vrot.slane %v1245_v20, 6  ;;  %v7896_v51 = vrot.slane %v5169_v62, 6  ;;  %v1329_v54 = vmul.f32 %v4575_v40, %v4659_v25 }
  0xad   : > { %v3186_v28 = vadd.f32 %v3160_v12, %v3122_v37  ;;  %v3288_v31 = vsel %vm861_vm7, %v3286_v22, %v8322_v59  ;;  %v1145_v4 = vsel %vm731_vm5, %v1143_v47, %v8323_v26  ;;  %v5192_v19 = vmul.f32 %v4575_v40, %v4662_v11 }
  0xae   : > { %v1104_v12 = vadd.f32 %v1081_v8, %v1040_v34  ;;  %v1393_v22 = vmul.f32 %v4585_v57, %v4659_v25  ;;  %v5198_v23 = vmul.f32 %v4585_v57, %v4662_v11  ;;  %v1209_v20 = vsel %vm796_vm6, %v1207_v13, %v7897_v55 }
  0xaf   : > { %8324 = vst [vmem:[#allocation107_spill] sm:$0xff] %v5192_v19  ;;  %v3250_v41 = vadd.f32 %v3224_v63, %v3186_v28  ;;  %v1457_v60 = vmul.f32 %v4588_v61, %v4659_v25  ;;  %v5209_v28 = vmul.f32 %v4588_v61, %v4662_v11  ;;  %v1273_v52 = vsel %vm861_vm7, %v1271_v43, %v7896_v51  ;;  %v8328_v63 = vld [vmem:[#allocation32_spill] sm:$0xff] }
  0xb0   : > { %8325 = vst [vmem:[#allocation108_spill] sm:$0xff] %v5198_v23  ;;  %v1168_v37 = vadd.f32 %v1145_v4, %v1104_v12  ;;  %v1308_v27 = vmul.f32 %v8328_v63, %v4659_v25  ;;  %v1355_v8 = vrot.slane %v1329_v54, 1  ;;  %v7899_v13 = vrot.slane %v5192_v19, 1  ;;  %v8329_v4 = vld [vmem:[#allocation33_spill] sm:$0xff]  ;;  %v8335_v54 = vld [vmem:[#allocation52_spill] sm:$0xff]  ;;  %v8336_v19 = vld [vmem:[#allocation38_spill] sm:$0xff] }
  0xb1   : > { %v5203_v47 = vadd.f32 %v3288_v31, %v3250_v41  ;;  %8327 = vst [vmem:[#allocation110_spill] sm:$0xff] %v5209_v28  ;;  %v1419_v34 = vrot.slane %v1393_v22, 2  ;;  %v7903_v26 = vrot.slane %v5198_v23, 2  ;;  %v1521_v41 = vmul.f32 %v8329_v4, %v4659_v25  ;;  %v8331_v22 = vld [vmem:[#allocation35_spill] sm:$0xff] }
  0xb2   : > { %v1232_v59 = vadd.f32 %v1209_v20, %v1168_v37  ;;  %v5224_v43 = vmul.f32 %v8329_v4, %v4662_v11  ;;  %v1483_v51 = vrot.slane %v1457_v60, 3  ;;  %v1357_v55 = vsel %vm536_vm2, %v1355_v8, %v7899_v13  ;;  %v8333_v60 = vld [vmem:[#allocation36_spill] sm:$0xff] }
  0xb3   : > { %8326 = vst [vmem:[#allocation109_spill] sm:$0xff] %v5203_v47  ;;  %v3323_v31 = vsel %vm3322_vm8, %v5203_v47, 0.0  ;;  %v1585_v20 = vmul.f32 %v8331_v22, %v4659_v25  ;;  %v5234_v37 = vmul.f32 %v8331_v22, %v4662_v11  ;;  %v1421_v47 = vsel %vm601_vm3, %v1419_v34, %v7903_v26 }
  0xb4   : > { %3324 = vadd.xlane.f32.xlu0 %v3323_v31  ;;  %8330 = vst [vmem:[#allocation111_spill] sm:$0xff] %v5224_v43  ;;  %v1296_v12 = vadd.f32 %v1273_v52, %v1232_v59  ;;  %v1649_v52 = vmul.f32 %v8333_v60, %v4659_v25  ;;  %v5243_v59 = vmul.f32 %v8333_v60, %v4662_v11  ;;  %v1547_v8 = vrot.slane %v1521_v41, 4  ;;  %v8340_v11 = vld [vmem:[#allocation42_spill] sm:$0xff] }
  0xb5   : > { %8332 = vst [vmem:[#allocation112_spill] sm:$0xff] %v5234_v37  ;;  %v1733_v62 = vmul.f32 %v8336_v19, %v8335_v54  ;;  %v8339_v34 = vrot.slane %v5209_v28, 3  ;;  %v1611_v25 = vrot.slane %v1585_v20, 5  ;;  %v1797_v41 = vmul.f32 %v8340_v11, %v8335_v54  ;;  %v8343_v20 = vld [vmem:[#allocation43_spill] sm:$0xff] }
  0xb6   : > { %v1316_v31 = vadd.f32 %v1308_v27, %v1296_v12  ;;  %8334 = vst [vmem:[#allocation113_spill] sm:$0xff] %v5243_v59  ;;  %v5250_v27 = vmul.f32 %v8336_v19, %v8337_v38  ;;  %v5260_v13 = vmul.f32 %v8340_v11, %v8337_v38  ;;  %v1675_v16 = vrot.slane %v1649_v52, 6 }
  0xb7   : > { %v1485_v26 = vsel %vm666_vm4, %v1483_v51, %v8339_v34  ;;  %v7912_v29 = vrot.slane %v5243_v59, 6  ;;  %v1759_v28 = vrot.slane %v1733_v62, 1  ;;  %v1861_v34 = vmul.f32 %v8343_v20, %v8335_v54 }
  0xb8   : > { %8338 = vst [vmem:[#allocation52_spill] sm:$0xff] %v5250_v27  ;;  %v1380_v12 = vadd.f32 %v1357_v55, %v1316_v31  ;;  %8341 = vst [vmem:[#allocation54_spill] sm:$0xff] %v5260_v13  ;;  %v8342_v55 = vrot.slane %v5224_v43, 4  ;;  %v7914_v51 = vrot.slane %v5250_v27, 1  ;;  %v8344_v6 = vrot.slane %v5234_v37, 5  ;;  %v8355_v43 = vld [vmem:[#allocation68_spill] sm:$0xff] }
  0xb9   : > { %v1823_v39 = vrot.slane %v1797_v41, 2  ;;  %v5275_v52 = vmul.f32 %v8343_v20, %v8337_v38  ;;  %v1677_v62 = vsel %vm861_vm7, %v1675_v16, %v7912_v29  ;;  %v8351_v29 = vld [vmem:[#allocation49_spill] sm:$0xff]  ;;  %v2393_v21 = vmul.f32 %v8364_v33, %v4849_v56 }
  0xba   : > { %v1444_v9 = vadd.f32 %v1421_v47, %v1380_v12  ;;  %v1549_v31 = vsel %vm731_vm5, %v1547_v8, %v8342_v55  ;;  %v1613_v0 = vsel %vm796_vm6, %v1611_v25, %v8344_v6  ;;  %v8346_v8 = vld [vmem:[#allocation40_spill] sm:$0xff]  ;;  %v1887_v6 = vrot.slane %v1861_v34, 3 }
  0xbb   : > { %8345 = vst [vmem:[#allocation114_spill] sm:$0xff] %v5275_v52  ;;  %v1712_v55 = vmul.f32 %v8346_v8, %v8335_v54  ;;  %v2053_v27 = vmul.f32 %v8351_v29, %v8335_v54  ;;  %v5305_v59 = vmul.f32 %v8351_v29, %v8337_v38 }
  0xbc   : > { %v1508_v23 = vadd.f32 %v1485_v26, %v1444_v9  ;;  %v1761_v9 = vsel %vm536_vm2, %v1759_v28, %v7914_v51  ;;  %v8347_v26 = vld [vmem:[#allocation44_spill] sm:$0xff]  ;;  %v8352_v28 = vrot.slane %v5260_v13, 2 }
  0xbd   : > { %v1925_v25 = vmul.f32 %v8347_v26, %v8335_v54  ;;  %v5289_v41 = vmul.f32 %v8347_v26, %v8337_v38  ;;  %8353 = vst [vmem:[#allocation117_spill] sm:$0xff] %v5305_v59  ;;  %v2079_v32 = vrot.slane %v2053_v27, 6 }
  0xbe   : > { %v1572_v12 = vadd.f32 %v1549_v31, %v1508_v23  ;;  %v8349_v31 = vld [vmem:[#allocation48_spill] sm:$0xff]  ;;  %v1825_v34 = vsel %vm601_vm3, %v1823_v39, %v8352_v28 }
  0xbf   : > { %8348 = vst [vmem:[#allocation115_spill] sm:$0xff] %v5289_v41  ;;  %v1989_v47 = vmul.f32 %v8349_v31, %v8335_v54  ;;  %v5295_v16 = vmul.f32 %v8349_v31, %v8337_v38  ;;  %v8357_v54 = vld [vmem:[#allocation57_spill] sm:$0xff]  ;;  %v1951_v28 = vrot.slane %v1925_v25, 4  ;;  %v8359_v38 = vld [vmem:[#allocation58_spill] sm:$0xff] }
  0xc0   : > { %v1636_v23 = vadd.f32 %v1613_v0, %v1572_v12  ;;  %v8354_v0 = vld [vmem:[#allocation50_spill] sm:$0xff]  ;;  %v2201_v36 = vmul.f32 %v8357_v54, %v4849_v56  ;;  %v5317_v39 = vmul.f32 %v8357_v54, %v8355_v43  ;;  %v2265_v13 = vmul.f32 %v8359_v38, %v4849_v56  ;;  %v8361_v54 = vld [vmem:[#allocation60_spill] sm:$0xff] }
  0xc1   : > { %8350 = vst [vmem:[#allocation116_spill] sm:$0xff] %v5295_v16  ;;  %v2137_v12 = vmul.f32 %v8354_v0, %v4849_v56  ;;  %v5311_v42 = vmul.f32 %v8354_v0, %v8355_v43  ;;  %v2015_v3 = vrot.slane %v1989_v47, 5  ;;  %v2329_v25 = vmul.f32 %v8361_v54, %v4849_v56 }
  0xc2   : > { %v1700_v37 = vadd.f32 %v1677_v62, %v1636_v23  ;;  %8358 = vst [vmem:[#allocation118_spill] sm:$0xff] %v5317_v39  ;;  %v5324_v62 = vmul.f32 %v8359_v38, %v8355_v43  ;;  %v5332_v51 = vmul.f32 %v8361_v54, %v8355_v43  ;;  %v2227_v38 = vrot.slane %v2201_v36, 2 }
  0xc3   : > { %8356 = vst [vmem:[#allocation68_spill] sm:$0xff] %v5311_v42  ;;  %v2163_v0 = vrot.slane %v2137_v12, 1  ;;  %v8363_v47 = vrot.slane %v5275_v52, 3  ;;  %v8365_v54 = vrot.slane %v5289_v41, 4  ;;  %v2355_v52 = vrot.slane %v2329_v25, 4 }
  0xc4   : > { %8360 = vst [vmem:[#allocation119_spill] sm:$0xff] %v5324_v62  ;;  %v1720_v23 = vadd.f32 %v1712_v55, %v1700_v37  ;;  %8362 = vst [vmem:[#allocation120_spill] sm:$0xff] %v5332_v51  ;;  %v2291_v55 = vrot.slane %v2265_v13, 3  ;;  %v8367_v37 = vrot.slane %v5295_v16, 5  ;;  %v8371_v12 = vrot.slane %v5317_v39, 2  ;;  %v8373_v16 = vld [vmem:[#allocation64_spill] sm:$0xff] }
  0xc5   : > { %v1889_v27 = vsel %vm666_vm4, %v1887_v6, %v8363_v47  ;;  %v5353_v6 = vmul.f32 %v8364_v33, %v8355_v43  ;;  %v8372_v25 = vrot.slane %v5324_v62, 3  ;;  %v2419_v13 = vrot.slane %v2393_v21, 5  ;;  %v8382_v39 = vld [vmem:[#allocation74_spill] sm:$0xff]  ;;  %v8389_v33 = vld [vmem:[#allocation81_spill] sm:$0xff] }
  0xc6   : > { %v1784_v8 = vadd.f32 %v1761_v9, %v1720_v23  ;;  %v1953_v9 = vsel %vm731_vm5, %v1951_v28, %v8365_v54  ;;  %v8366_v23 = vld [vmem:[#allocation55_spill] sm:$0xff]  ;;  %v2017_v29 = vsel %vm796_vm6, %v2015_v3, %v8367_v37  ;;  %v8370_v54 = vrot.slane %v5311_v42, 1  ;;  %v8384_v42 = vld [vmem:[#allocation77_spill] sm:$0xff] }
  0xc7   : > { %v2116_v36 = vmul.f32 %v8366_v23, %v4849_v56  ;;  %8368 = vst [vmem:[#allocation121_spill] sm:$0xff] %v5353_v6  ;;  %v2229_v3 = vsel %vm601_vm3, %v2227_v38, %v8371_v12  ;;  %v2293_v37 = vsel %vm666_vm4, %v2291_v55, %v8372_v25  ;;  %v8377_v38 = vld [vmem:[#allocation70_spill] sm:$0xff]  ;;  %v8378_v21 = vrot.slane %v5332_v51, 4 }
  0xc8   : > { %v1848_v31 = vadd.f32 %v1825_v34, %v1784_v8  ;;  %v8369_v8 = vrot.slane %v5305_v59, 6  ;;  %v2165_v28 = vsel %vm536_vm2, %v2163_v0, %v8370_v54  ;;  %v2605_v12 = vmul.f32 %v8377_v38, %v4946_v30 }
  0xc9   : > { %v2357_v55 = vsel %vm731_vm5, %v2355_v52, %v8378_v21  ;;  %v2733_v51 = vmul.f32 %v8382_v39, %v4946_v30  ;;  %v5399_v52 = vmul.f32 %v8382_v39, %v4949_v14  ;;  %v2797_v59 = vmul.f32 %v8384_v42, %v4946_v30 }
  0xca   : > { %v1912_v47 = vadd.f32 %v1889_v27, %v1848_v31  ;;  %v2081_v34 = vsel %vm861_vm7, %v2079_v32, %v8369_v8  ;;  %v2457_v31 = vmul.f32 %v8373_v16, %v4849_v56  ;;  %v5371_v27 = vmul.f32 %v8373_v16, %v8355_v43  ;;  %v8375_v8 = vld [vmem:[#allocation67_spill] sm:$0xff]  ;;  %v5417_v16 = vld [vmem:[%s4401_s23 + $0xa8] sm:$0xff] }
  0xcb   : > { %v2541_v0 = vmul.f32 %v8375_v8, %v4946_v30  ;;  %v5377_v54 = vmul.f32 %v8375_v8, %v4949_v14  ;;  %v5387_v43 = vmul.f32 %v8377_v38, %v4949_v14  ;;  %8383 = vst [vmem:[#allocation126_spill] sm:$0xff] %v5399_v52  ;;  %v2945_v26 = vmul.f32 %v8389_v33, %v5417_v16 }
  0xcc   : > { %8374 = vst [vmem:[#allocation122_spill] sm:$0xff] %v5371_v27  ;;  %v1976_v32 = vadd.f32 %v1953_v9, %v1912_v47  ;;  %v8380_v9 = vld [vmem:[#allocation73_spill] sm:$0xff]  ;;  %v2483_v21 = vrot.slane %v2457_v31, 6  ;;  %v8386_v31 = vld [vmem:[#allocation78_spill] sm:$0xff] }
  0xcd   : > { %8376 = vst [vmem:[#allocation123_spill] sm:$0xff] %v5377_v54  ;;  %8379 = vst [vmem:[#allocation124_spill] sm:$0xff] %v5387_v43  ;;  %v2669_v47 = vmul.f32 %v8380_v9, %v4946_v30  ;;  %v5393_v62 = vmul.f32 %v8380_v9, %v4949_v14  ;;  %v2567_v41 = vrot.slane %v2541_v0, 1  ;;  %v2631_v9 = vrot.slane %v2605_v12, 2  ;;  %v8388_v12 = vld [vmem:[#allocation69_spill] sm:$0xff] }
  0xce   : > { %v2040_v25 = vadd.f32 %v2017_v29, %v1976_v32  ;;  %v5406_v29 = vmul.f32 %v8384_v42, %v4949_v14  ;;  %v2861_v8 = vmul.f32 %v8386_v31, %v4946_v30  ;;  %v5414_v56 = vmul.f32 %v8386_v31, %v4949_v14  ;;  %v5427_v14 = vld [vmem:[%s4401_s23 + $0xb0] sm:$0xff] }
  0xcf   : > { %8381 = vst [vmem:[#allocation125_spill] sm:$0xff] %v5393_v62  ;;  %v2695_v39 = vrot.slane %v2669_v47, 3  ;;  %v2759_v0 = vrot.slane %v2733_v51, 4  ;;  %v2520_v38 = vmul.f32 %v8388_v12, %v4946_v30  ;;  %v2823_v47 = vrot.slane %v2797_v59, 5  ;;  %8390 = vst [vmem:[#allocation129_spill] sm:$0xff] %v5427_v14 }
  0xd0   : > { %8385 = vst [vmem:[#allocation127_spill] sm:$0xff] %v5406_v29  ;;  %v2104_v32 = vadd.f32 %v2081_v34, %v2040_v25  ;;  %8387 = vst [vmem:[#allocation128_spill] sm:$0xff] %v5414_v56  ;;  %v8392_v51 = vrot.slane %v5371_v27, 6  ;;  %v8393_v30 = vrot.slane %v5377_v54, 1  ;;  %v8394_v23 = vrot.slane %v5387_v43, 2 }
  0xd1   : > { %v2887_v12 = vrot.slane %v2861_v8, 6  ;;  %v8398_v8 = vrot.slane %v5406_v29, 5 }
  0xd2   : > { %v2124_v42 = vadd.f32 %v2116_v36, %v2104_v32  ;;  %v8391_v36 = vrot.slane %v5353_v6, 5  ;;  %v2485_v25 = vsel %vm861_vm7, %v2483_v21, %v8392_v51  ;;  %v2569_v59 = vsel %vm536_vm2, %v2567_v41, %v8393_v30 }
  0xd3   : > { %v5441_v34 = vsel %vm601_vm3, %v2631_v9, %v8394_v23  ;;  %v8396_v21 = vrot.slane %v5393_v62, 3  ;;  %v8397_v41 = vrot.slane %v5399_v52, 4  ;;  %v5461_v23 = vmul.f32 %v4952_v2, %v5417_v16 }
  0xd4   : > { %v2188_v31 = vadd.f32 %v2165_v28, %v2124_v42  ;;  %v2421_v32 = vsel %vm796_vm6, %v2419_v13, %v8391_v36  ;;  %v5446_v28 = vmul.f32 %v8389_v33, %v5427_v14  ;;  %v446_v13 = vld [vmem:[%s4401_s23 + $0x10] sm:$0x3f]  ;;  %v5466_v9 = vsel %vm796_vm6, %v2823_v47, %v8398_v8 }
  0xd5   : > { %v5452_v51 = vsel %vm666_vm4, %v2695_v39, %v8396_v21  ;;  %v5457_v30 = vsel %vm731_vm5, %v2759_v0, %v8397_v41  ;;  %v4032_v39 = vld [vmem:[%s4401_s23 + $0x8] sm:$0xff]  ;;  %v514_v47 = vmul.f32 %v4415_v45, %v446_v13  ;;  %v644_v27 = vmul.f32 %v4426_v48, %v446_v13 }
  0xd6   : > { %8395 = vst [vmem:[#allocation130_spill] sm:$0xff] %v5446_v28  ;;  %v2252_v36 = vadd.f32 %v2229_v3, %v2188_v31  ;;  %v2971_v3 = vrot.slane %v2945_v26, 1  ;;  %v8399_v31 = vld [vmem:[#allocation84_spill] sm:$0xff]  ;;  %v493_v21 = vmul.f32 %v4032_v39, %v4412_v44  ;;  %v8401_v41 = vld [vmem:[#allocation86_spill] sm:$0xff]  ;;  %v8402_v26 = vrot.slane %v5414_v56, 6 }
  0xd7   : > { %v5470_v42 = vmul.f32 %v8399_v31, %v5417_v16  ;;  %v5476_v0 = vmul.f32 %v8399_v31, %v5427_v14  ;;  %v5480_v62 = vmul.f32 %v8401_v41, %v5417_v16  ;;  %v579_v39 = vmul.f32 %v4418_v46, %v446_v13  ;;  %v8407_v48 = vld [vmem:[#allocation10_spill] sm:$0xff] }
  0xd8   : > { %v2316_v52 = vadd.f32 %v2293_v37, %v2252_v36  ;;  %v5486_v8 = vsel %vm861_vm7, %v2887_v12, %v8402_v26  ;;  %v5492_v37 = vld [vmem:[%s7764_s2] ss:$0 sm:$0xff]  ;;  %v540_v54 = vrot.slane %v514_v47, 1  ;;  %v709_v56 = vmul.f32 %v4429_v49, %v446_v13 }
  0xd9   : > { %8400 = vst [vmem:[#allocation131_spill] sm:$0xff] %v5476_v0  ;;  %8403 = vst [vmem:[#allocation132_spill] sm:$0xff] %v5492_v37  ;;  %v501_v36 = vadd.f32 %v5492_v37, %v493_v21  ;;  %v5500_v12 = vmul.f32 %v8401_v41, %v5427_v14  ;;  %v605_v26 = vrot.slane %v579_v39, 2  ;;  %v774_v29 = vmul.f32 %v4432_v50, %v446_v13  ;;  %v8405_v21 = vld [vmem:[#allocation9_spill] sm:$0xff] }
  0xda   : > { %v2380_v43 = vadd.f32 %v2357_v55, %v2316_v52  ;;  %v839_v6 = vmul.f32 %v4476_v15, %v446_v13  ;;  %v8406_v31 = vrot.slane %v8405_v21, 1  ;;  %v670_v52 = vrot.slane %v644_v27, 3 }
  0xdb   : > { %8404 = vst [vmem:[#allocation133_spill] sm:$0xff] %v5500_v12  ;;  %v735_v47 = vrot.slane %v709_v56, 4  ;;  %v3035_v33 = vrot.slane %v5470_v42, 2  ;;  %v3137_v49 = vmul.f32 %v4982_v7, %v5417_v16  ;;  %v8408_v39 = vrot.slane %v8407_v48, 2 }
  0xdc   : > { %v2444_v2 = vadd.f32 %v2421_v32, %v2380_v43  ;;  %v541_v55 = vsel %vm536_vm2, %v8406_v31, %v540_v54  ;;  %v8409_v43 = vld [vmem:[#allocation11_spill] sm:$0xff]  ;;  %v800_v54 = vrot.slane %v774_v29, 5  ;;  %v8411_v27 = vrot.slane %v5446_v28, 1  ;;  %v5524_v31 = vld [vmem:[%s4401_s23 + $0x28] sm:$0x3f] }
  0xdd   : > { %v566_v41 = vadd.f32 %v541_v55, %v501_v36  ;;  %v606_v50 = vsel %vm601_vm3, %v8408_v39, %v605_v26  ;;  %v8410_v32 = vrot.slane %v8409_v43, 3  ;;  %v3099_v42 = vrot.slane %v5480_v62, 3  ;;  %v5588_v28 = vld [vmem:[%s4401_s23 + $0x40] sm:$0x3f] }
  0xde   : > { %v2508_v46 = vadd.f32 %v2485_v25, %v2444_v2  ;;  %v5520_v56 = vsel %vm536_vm2, %v2971_v3, %v8411_v27  ;;  %v865_v36 = vrot.slane %v839_v6, 6  ;;  %v8412_v25 = vld [vmem:[#allocation12_spill] sm:$0xff]  ;;  %v924_v29 = vmul.f32 %v4482_v18, %v5524_v31  ;;  %v5563_v2 = vld [vmem:[%s4401_s23 + $0x20] sm:$0xff] }
  0xdf   : > { %v671_v21 = vsel %vm666_vm4, %v8410_v32, %v670_v52  ;;  %v631_v48 = vadd.f32 %v606_v50, %v566_v41  ;;  %v8413_v55 = vrot.slane %v8412_v25, 4  ;;  %v5534_v3 = vmul.f32 %v4982_v7, %v5427_v14 }
  0xe0   : > { %v2528_v26 = vadd.f32 %v2520_v38, %v2508_v46  ;;  %v3163_v52 = vrot.slane %v3137_v49, 4  ;;  %v3201_v62 = vmul.f32 %v4987_v1, %v5417_v16  ;;  %v5540_v6 = vmul.f32 %v4987_v1, %v5427_v14  ;;  %v8416_v38 = vld [vmem:[#allocation13_spill] sm:$0xff] }
  0xe1   : > { %v736_v39 = vsel %vm731_vm5, %v8413_v55, %v735_v47  ;;  %8414 = vst [vmem:[#allocation9_spill] sm:$0xff] %v5534_v3  ;;  %v696_v50 = vadd.f32 %v671_v21, %v631_v48  ;;  %v8417_v41 = vrot.slane %v8416_v38, 5  ;;  %v988_v43 = vmul.f32 %v4498_v24, %v5524_v31 }
  0xe2   : > { %v2592_v46 = vadd.f32 %v2569_v59, %v2528_v26  ;;  %8415 = vst [vmem:[#allocation10_spill] sm:$0xff] %v5540_v6  ;;  %v3265_v49 = vmul.f32 %v5012_v58, %v5417_v16  ;;  %v5551_v32 = vmul.f32 %v5012_v58, %v5427_v14  ;;  %v8419_v59 = vld [vmem:[#allocation16_spill] sm:$0xff]  ;;  %v949_v25 = vrot.slane %v924_v29, 1 }
  0xe3   : > { %v801_v47 = vsel %vm796_vm6, %v8417_v41, %v800_v54  ;;  %v761_v21 = vadd.f32 %v736_v39, %v696_v50  ;;  %v8420_v27 = vrot.slane %v8419_v59, 6  ;;  %v1052_v54 = vmul.f32 %v4519_v35, %v5524_v31 }
  0xe4   : > { %8418 = vst [vmem:[#allocation11_spill] sm:$0xff] %v5551_v32  ;;  %v2656_v26 = vadd.f32 %v5441_v34, %v2592_v46  ;;  %v1116_v55 = vmul.f32 %v4526_v53, %v5524_v31  ;;  %v3227_v38 = vrot.slane %v3201_v62, 5  ;;  %v903_v39 = vmul.f32 %v5563_v2, %v4479_v17 }
  0xe5   : > { %v866_v48 = vsel %vm861_vm7, %v8420_v27, %v865_v36  ;;  %v826_v41 = vadd.f32 %v801_v47, %v761_v21  ;;  %v1013_v29 = vrot.slane %v988_v43, 2  ;;  %v1180_v50 = vmul.f32 %v4542_v5, %v5524_v31  ;;  %v8421_v21 = vld [vmem:[#allocation17_spill] sm:$0xff] }
  0xe6   : > { %v2720_v36 = vadd.f32 %v5452_v51, %v2656_v26  ;;  %v3291_v46 = vrot.slane %v3265_v49, 6  ;;  %v1244_v62 = vmul.f32 %v4546_v10, %v5524_v31  ;;  %v8422_v16 = vrot.slane %v8421_v21, 1 }
  0xe7   : > { %v891_v27 = vadd.f32 %v866_v48, %v826_v41  ;;  %v1077_v51 = vrot.slane %v1052_v54, 3  ;;  %v1141_v26 = vrot.slane %v1116_v55, 4  ;;  %v8423_v43 = vrot.slane %v5476_v0, 2  ;;  %v8441_v0 = vld [vmem:[#allocation48_spill] sm:$0xff] }
  0xe8   : > { %v2784_v47 = vadd.f32 %v5457_v30, %v2720_v36  ;;  %v950_v13 = vsel %vm536_vm2, %v8422_v16, %v949_v25  ;;  %v8424_v49 = vrot.slane %v5500_v12, 3  ;;  %v8425_v48 = vrot.slane %v5534_v3, 4  ;;  %v8426_v25 = vld [vmem:[#allocation18_spill] sm:$0xff]  ;;  %v8440_v12 = vld [vmem:[#allocation44_spill] sm:$0xff] }
  0xe9   : > { %v3037_v34 = vsel %vm601_vm3, %v3035_v33, %v8423_v43  ;;  %v911_v30 = vadd.f32 %v903_v39, %v891_v27  ;;  %v8427_v54 = vrot.slane %v8426_v25, 2  ;;  %v1205_v16 = vrot.slane %v1180_v50, 5 }
  0xea   : > { %v3101_v59 = vsel %vm666_vm4, %v3099_v42, %v8424_v49  ;;  %v3165_v41 = vsel %vm731_vm5, %v3163_v52, %v8425_v48  ;;  %v2848_v36 = vadd.f32 %v5466_v9, %v2784_v47  ;;  %v1328_v33 = vmul.f32 %v4575_v40, %v5588_v28  ;;  %v8432_v49 = vld [vmem:[#allocation21_spill] sm:$0xff] }
  0xeb   : > { %v1014_v55 = vsel %vm601_vm3, %v8427_v54, %v1013_v29  ;;  %v8428_v42 = vrot.slane %v5540_v6, 5  ;;  %v8429_v52 = vrot.slane %v5551_v32, 6  ;;  %v975_v39 = vadd.f32 %v950_v13, %v911_v30  ;;  %v8430_v29 = vld [vmem:[#allocation20_spill] sm:$0xff] }
  0xec   : > { %v1269_v9 = vrot.slane %v1244_v62, 6  ;;  %v2912_v27 = vadd.f32 %v5486_v8, %v2848_v36  ;;  %v8431_v47 = vrot.slane %v8430_v29, 3  ;;  %v8433_v48 = vrot.slane %v8432_v49, 4  ;;  %v8434_v30 = vld [vmem:[#allocation24_spill] sm:$0xff] }
  0xed   : > { %v3229_v21 = vsel %vm796_vm6, %v3227_v38, %v8428_v42  ;;  %v5602_v43 = vsel %vm861_vm7, %v3291_v46, %v8429_v52  ;;  %v1392_v38 = vmul.f32 %v4585_v57, %v5588_v28  ;;  %v1039_v54 = vadd.f32 %v1014_v55, %v975_v39  ;;  %v8436_v39 = vld [vmem:[#allocation25_spill] sm:$0xff]  ;;  %v5632_v49 = vld [vmem:[%s4401_s23 + $0x38] sm:$0xff] }
  0xee   : > { %v1078_v50 = vsel %vm666_vm4, %v8431_v47, %v1077_v51  ;;  %v1142_v25 = vsel %vm731_vm5, %v8433_v48, %v1141_v26  ;;  %v1456_v46 = vmul.f32 %v4588_v61, %v5588_v28  ;;  %v1520_v13 = vmul.f32 %v8329_v4, %v5588_v28  ;;  %v5621_v51 = vld [vmem:[%s4401_s23 + $0x58] sm:$0x3f] }
  0xef   : > { %v1584_v8 = vmul.f32 %v8331_v22, %v5588_v28  ;;  %v2932_v62 = vadd.f32 %v5461_v23, %v2912_v27  ;;  %v8435_v36 = vrot.slane %v8434_v30, 5  ;;  %v1353_v42 = vrot.slane %v1328_v33, 1 }
  0xf0   : > { %v1648_v55 = vmul.f32 %v8333_v60, %v5588_v28  ;;  %v1103_v52 = vadd.f32 %v1078_v50, %v1039_v54  ;;  %v8437_v29 = vrot.slane %v8436_v39, 6  ;;  %v1307_v23 = vmul.f32 %v5632_v49, %v8328_v63 }
  0xf1   : > { %v1206_v26 = vsel %vm796_vm6, %v8435_v36, %v1205_v16  ;;  %v1732_v27 = vmul.f32 %v8336_v19, %v5621_v51  ;;  %v2996_v48 = vadd.f32 %v5520_v56, %v2932_v62  ;;  %v1417_v16 = vrot.slane %v1392_v38, 2  ;;  %v8479_v19 = vld [vmem:[#allocation77_spill] sm:$0xff] }
  0xf2   : > { %v1270_v47 = vsel %vm861_vm7, %v8437_v29, %v1269_v9  ;;  %v1796_v33 = vmul.f32 %v8340_v11, %v5621_v51  ;;  %v1860_v50 = vmul.f32 %v8343_v20, %v5621_v51  ;;  %v1167_v54 = vadd.f32 %v1142_v25, %v1103_v52  ;;  %v8438_v29 = vld [vmem:[#allocation29_spill] sm:$0xff]  ;;  %v8478_v11 = vld [vmem:[#allocation74_spill] sm:$0xff] }
  0xf3   : > { %v1481_v30 = vrot.slane %v1456_v46, 3  ;;  %v1545_v9 = vrot.slane %v1520_v13, 4  ;;  %v1609_v36 = vrot.slane %v1584_v8, 5  ;;  %v3060_v39 = vadd.f32 %v3037_v34, %v2996_v48  ;;  %v8442_v25 = vld [vmem:[#allocation49_spill] sm:$0xff]  ;;  %v8443_v34 = vld [vmem:[#allocation30_spill] sm:$0xff]  ;;  %v8445_v48 = vld [vmem:[#allocation31_spill] sm:$0xff] }
  0xf4   : > { %v8439_v32 = vrot.slane %v8438_v29, 1  ;;  %v1673_v3 = vrot.slane %v1648_v55, 6  ;;  %v1924_v56 = vmul.f32 %v8440_v12, %v5621_v51  ;;  %v1231_v38 = vadd.f32 %v1206_v26, %v1167_v54 }
  0xf5   : > { %v1757_v62 = vrot.slane %v1732_v27, 1  ;;  %v1988_v14 = vmul.f32 %v8441_v0, %v5621_v51  ;;  %v2052_v46 = vmul.f32 %v8442_v25, %v5621_v51  ;;  %v3124_v13 = vadd.f32 %v3101_v59, %v3060_v39  ;;  %v8447_v27 = vld [vmem:[#allocation34_spill] sm:$0xff]  ;;  %v8449_v0 = vld [vmem:[#allocation37_spill] sm:$0xff]  ;;  %v8451_v39 = vld [vmem:[#allocation39_spill] sm:$0xff] }
  0xf6   : > { %v1354_v6 = vsel %vm536_vm2, %v8439_v32, %v1353_v42  ;;  %v8444_v8 = vrot.slane %v8443_v34, 2  ;;  %v1821_v32 = vrot.slane %v1796_v33, 2  ;;  %v1885_v42 = vrot.slane %v1860_v50, 3  ;;  %v5668_v33 = vld [vmem:[%s4401_s23 + $0x50] sm:$0xff] }
  0xf7   : > { %v1295_v55 = vadd.f32 %v1270_v47, %v1231_v38  ;;  %v8446_v29 = vrot.slane %v8445_v48, 3  ;;  %v8448_v54 = vrot.slane %v8447_v27, 4  ;;  %v8450_v20 = vrot.slane %v8449_v0, 5  ;;  %v8453_v47 = vld [vmem:[#allocation40_spill] sm:$0xff]  ;;  %v5675_v38 = vld [vmem:[%s4401_s23 + $0x70] sm:$0x3f] }
  0xf8   : > { %v1418_v52 = vsel %vm601_vm3, %v8444_v8, %v1417_v16  ;;  %v3188_v59 = vadd.f32 %v3165_v41, %v3124_v13  ;;  %v8452_v34 = vrot.slane %v8451_v39, 6  ;;  %v5672_v50 = vmul.f32 %v5668_v33, %v8453_v47  ;;  %8454 = vst [vmem:[#allocation12_spill] sm:$0xff] %v5675_v38  ;;  %v8455_v8 = vld [vmem:[#allocation41_spill] sm:$0xff]  ;;  %v8459_v27 = vld [vmem:[#allocation46_spill] sm:$0xff] }
  0xf9   : > { %v1482_v26 = vsel %vm666_vm4, %v8446_v29, %v1481_v30  ;;  %v1546_v12 = vsel %vm731_vm5, %v8448_v54, %v1545_v9  ;;  %v1610_v25 = vsel %vm796_vm6, %v8450_v20, %v1609_v36  ;;  %v1949_v30 = vrot.slane %v1924_v56, 4 }
  0xfa   : > { %v1674_v16 = vsel %vm861_vm7, %v8452_v34, %v1673_v3  ;;  %v1315_v9 = vadd.f32 %v1307_v23, %v1295_v55  ;;  %v8456_v0 = vrot.slane %v8455_v8, 1  ;;  %v2013_v41 = vrot.slane %v1988_v14, 5  ;;  %v8457_v3 = vld [vmem:[#allocation45_spill] sm:$0xff]  ;;  %v8461_v23 = vld [vmem:[#allocation50_spill] sm:$0xff] }
  0xfb   : > { %v2077_v36 = vrot.slane %v2052_v46, 6  ;;  %v3252_v13 = vadd.f32 %v3229_v21, %v3188_v59  ;;  %v8458_v48 = vrot.slane %v8457_v3, 2  ;;  %v8460_v54 = vrot.slane %v8459_v27, 3  ;;  %v8463_v14 = vld [vmem:[#allocation58_spill] sm:$0xff]  ;;  %v8464_v46 = vld [vmem:[#allocation60_spill] sm:$0xff] }
  0xfc   : > { %v5680_v20 = vsel %vm536_vm2, %v8456_v0, %v1757_v62  ;;  %v2136_v55 = vmul.f32 %v8461_v23, %v5675_v38  ;;  %v1379_v39 = vadd.f32 %v1354_v6, %v1315_v9  ;;  %v8462_v62 = vld [vmem:[#allocation57_spill] sm:$0xff]  ;;  %v2264_v21 = vmul.f32 %v8463_v14, %v5675_v38  ;;  %v5704_v8 = vld [vmem:[%s4401_s23 + $0x88] sm:$0x3f]  ;;  %v8471_v14 = vld [vmem:[#allocation51_spill] sm:$0xff] }
  0xfd   : > { %v5685_v29 = vsel %vm601_vm3, %v8458_v48, %v1821_v32  ;;  %v5690_v56 = vsel %vm666_vm4, %v8460_v54, %v1885_v42  ;;  %v2200_v34 = vmul.f32 %v8462_v62, %v5675_v38  ;;  %v2328_v59 = vmul.f32 %v8464_v46, %v5675_v38  ;;  %8466 = vst [vmem:[#allocation16_spill] sm:$0xff] %v5704_v8  ;;  %v8467_v42 = vld [vmem:[#allocation47_spill] sm:$0xff]  ;;  %v8469_v6 = vld [vmem:[#allocation62_spill] sm:$0xff]  ;;  %v8470_v48 = vld [vmem:[#allocation64_spill] sm:$0xff] }
  0xfe   : > { %v5701_v32 = vadd.f32 %v5602_v43, %v3252_v13  ;;  %v8468_v0 = vrot.slane %v8467_v42, 4  ;;  %v2392_v9 = vmul.f32 %v8469_v6, %v5675_v38  ;;  %v2456_v27 = vmul.f32 %v8470_v48, %v5675_v38  ;;  %v8473_v43 = vld [vmem:[#allocation53_spill] sm:$0xff]  ;;  %v5738_v38 = vld [vmem:[%s4401_s23 + $0x68] sm:$0xff] }
  0xff   : > { %v1443_v54 = vadd.f32 %v1418_v52, %v1379_v39  ;;  %v8472_v62 = vrot.slane %v8471_v14, 5  ;;  %v8474_v13 = vrot.slane %v8473_v43, 6  ;;  %v2161_v6 = vrot.slane %v2136_v55, 1  ;;  %v8476_v52 = vld [vmem:[#allocation70_spill] sm:$0xff]  ;;  %v8477_v14 = vld [vmem:[#allocation73_spill] sm:$0xff] }
 0x100   : > { %8465 = vst [vmem:[#allocation13_spill] sm:$0xff] %v5701_v32  ;;  %v5709_v3 = vsel %vm731_vm5, %v8468_v0, %v1949_v30  ;;  %v8475_v30 = vld [vmem:[#allocation67_spill] sm:$0xff]  ;;  %v3329_v0 = vsel %vm3322_vm8, %v5701_v32, 0.0  ;;  %v2604_v39 = vmul.f32 %v8476_v52, %v5704_v8  ;;  %v2225_v43 = vrot.slane %v2200_v34, 2  ;;  %v8481_v34 = vld [vmem:[#allocation78_spill] sm:$0xff] }
 0x101   : > { %v5718_v46 = vsel %vm796_vm6, %v8472_v62, %v2013_v41  ;;  %v5723_v23 = vsel %vm861_vm7, %v8474_v13, %v2077_v36  ;;  %v2540_v42 = vmul.f32 %v8475_v30, %v5704_v8  ;;  %v2668_v41 = vmul.f32 %v8477_v14, %v5704_v8  ;;  %3330 = vadd.xlane.f32.xlu1 %v3329_v0  ;;  %v8480_v52 = vld [vmem:[#allocation55_spill] sm:$0xff] }
 0x102   : > { %v1507_v62 = vadd.f32 %v1482_v26, %v1443_v54  ;;  %v2289_v48 = vrot.slane %v2264_v21, 3  ;;  %v2353_v36 = vrot.slane %v2328_v59, 4  ;;  %v2417_v13 = vrot.slane %v2392_v9, 5  ;;  %v8482_v59 = vld [vmem:[#allocation56_spill] sm:$0xff] }
 0x103   : > { %v2481_v47 = vrot.slane %v2456_v27, 6  ;;  %v2732_v30 = vmul.f32 %v8478_v11, %v5704_v8  ;;  %v2796_v32 = vmul.f32 %v8479_v19, %v5704_v8  ;;  %v5742_v60 = vmul.f32 %v5738_v38, %v8480_v52  ;;  %v8484_v19 = vld [vmem:[#allocation59_spill] sm:$0xff] }
 0x104   : > { %v1571_v55 = vadd.f32 %v1546_v12, %v1507_v62  ;;  %v2565_v26 = vrot.slane %v2540_v42, 1  ;;  %v2860_v21 = vmul.f32 %v8481_v34, %v5704_v8  ;;  %v8483_v9 = vrot.slane %v8482_v59, 1  ;;  %v8486_v42 = vld [vmem:[#allocation61_spill] sm:$0xff]  ;;  %v8488_v59 = vld [vmem:[#allocation63_spill] sm:$0xff] }
 0x105   : > { %v2629_v54 = vrot.slane %v2604_v39, 2  ;;  %v2693_v0 = vrot.slane %v2668_v41, 3  ;;  %v495_v12 = vmul.f32 %v5563_v2, %v4412_v44  ;;  %v8485_v11 = vrot.slane %v8484_v19, 2  ;;  %v8490_v39 = vld [vmem:[#allocation65_spill] sm:$0xff]  ;;  %v8510_v44 = vld [vmem:[#allocation80_spill] sm:$0xff] }
 0x106   : > { %v5749_v27 = vsel %vm536_vm2, %v8483_v9, %v2161_v6  ;;  %v1635_v62 = vadd.f32 %v1610_v25, %v1571_v55  ;;  %v8487_v52 = vrot.slane %v8486_v42, 3  ;;  %v8489_v8 = vrot.slane %v8488_v59, 4  ;;  %v8492_v25 = vld [vmem:[#allocation66_spill] sm:$0xff] }
 0x107   : > { %v5756_v14 = vsel %vm601_vm3, %v8485_v11, %v2225_v43  ;;  %v8491_v41 = vrot.slane %v8490_v39, 5  ;;  %v8493_v19 = vrot.slane %v8492_v25, 6  ;;  %v2757_v43 = vrot.slane %v2732_v30, 4  ;;  %v8497_v39 = vld [vmem:[#allocation72_spill] sm:$0xff] }
 0x108   : > { %v5761_v34 = vsel %vm666_vm4, %v8487_v52, %v2289_v48  ;;  %v5766_v6 = vsel %vm731_vm5, %v8489_v8, %v2353_v36  ;;  %v2821_v55 = vrot.slane %v2796_v32, 5  ;;  %v1699_v9 = vadd.f32 %v1674_v16, %v1635_v62  ;;  %v5779_v48 = vld [vmem:[%s4401_s23 + $0x80] sm:$0xff]  ;;  %v8495_v36 = vld [vmem:[#allocation71_spill] sm:$0xff] }
 0x109   : > { %v5771_v2 = vsel %vm796_vm6, %v8491_v41, %v2417_v13  ;;  %v5776_v11 = vsel %vm861_vm7, %v8493_v19, %v2481_v47  ;;  %v8494_v52 = vld [vmem:[#allocation69_spill] sm:$0xff]  ;;  %v8496_v42 = vrot.slane %v8495_v36, 1  ;;  %v2885_v59 = vrot.slane %v2860_v21, 6  ;;  %v8499_v32 = vld [vmem:[#allocation75_spill] sm:$0xff]  ;;  %v8502_v36 = vld [vmem:[#allocation6_spill] sm:$0xff] }
 0x10a   : > { %v5783_v8 = vmul.f32 %v5779_v48, %v8494_v52  ;;  %v8498_v41 = vrot.slane %v8497_v39, 2  ;;  %v8500_v16 = vrot.slane %v8499_v32, 3  ;;  %v503_v62 = vadd.f32 %v5492_v37, %v495_v12  ;;  %v8506_v12 = vld [vmem:[#allocation79_spill] sm:$0xff] }
 0x10b   : > { %v5788_v13 = vsel %vm536_vm2, %v8496_v42, %v2565_v26  ;;  %v517_v25 = vmul.f32 %v4415_v45, %v5524_v31  ;;  %v1719_v19 = vadd.f32 %v5672_v50, %v1699_v9  ;;  %v8501_v26 = vld [vmem:[#allocation5_spill] sm:$0xff]  ;;  %v647_v42 = vmul.f32 %v8502_v36, %v5524_v31  ;;  %v8509_v9 = vld [vmem:[#allocation8_spill] sm:$0xff] }
 0x10c   : > { %v5793_v47 = vsel %vm601_vm3, %v8498_v41, %v2629_v54  ;;  %v5798_v30 = vsel %vm666_vm4, %v8500_v16, %v2693_v0  ;;  %v582_v21 = vmul.f32 %v8501_v26, %v5524_v31  ;;  %v8503_v54 = vld [vmem:[#allocation7_spill] sm:$0xff]  ;;  %v8504_v41 = vld [vmem:[#allocation76_spill] sm:$0xff]  ;;  %v8507_v16 = vrot.slane %v8506_v12, 5  ;;  %v5823_v45 = vld [vmem:[%s4401_s23 + $0xa0] sm:$0x3f] }
 0x10d   : > { %v712_v39 = vmul.f32 %v8503_v54, %v5524_v31  ;;  %v8505_v32 = vrot.slane %v8504_v41, 4  ;;  %v545_v50 = vrot.slane %v517_v25, 1  ;;  %v777_v26 = vmul.f32 %v8509_v9, %v5524_v31  ;;  %v8513_v12 = vld [vmem:[#allocation81_spill] sm:$0xff] }
 0x10e   : > { %v5818_v37 = vsel %vm796_vm6, %v8507_v16, %v2821_v55  ;;  %v1783_v36 = vadd.f32 %v5680_v20, %v1719_v19  ;;  %v8511_v54 = vrot.slane %v8510_v44, 6  ;;  %v2944_v52 = vmul.f32 %v8513_v12, %v5823_v45  ;;  %v8514_v55 = vld [vmem:[#allocation94_spill] sm:$0xff]  ;;  %v8516_v44 = vld [vmem:[#allocation84_spill] sm:$0xff] }
 0x10f   : > { %v5813_v0 = vsel %vm731_vm5, %v8505_v32, %v2757_v43  ;;  %8508 = vst [vmem:[#allocation17_spill] sm:$0xff] %v5818_v37  ;;  %v610_v43 = vrot.slane %v582_v21, 2  ;;  %v675_v32 = vrot.slane %v647_v42, 3  ;;  %v8515_v16 = vrot.slane %v8514_v55, 1  ;;  %v8519_v12 = vld [vmem:[#allocation86_spill] sm:$0xff] }
 0x110   : > { %v5829_v41 = vsel %vm861_vm7, %v8511_v54, %v2885_v59  ;;  %v740_v37 = vrot.slane %v712_v39, 4  ;;  %v842_v9 = vmul.f32 %v4476_v15, %v5524_v31  ;;  %v1847_v20 = vadd.f32 %v5685_v29, %v1783_v36  ;;  %v8517_v54 = vld [vmem:[#allocation96_spill] sm:$0xff]  ;;  %v8520_v39 = vld [vmem:[#allocation97_spill] sm:$0xff]  ;;  %v8522_v36 = vld [vmem:[#allocation82_spill] sm:$0xff] }
 0x111   : > { %8512 = vst [vmem:[#allocation18_spill] sm:$0xff] %v5829_v41  ;;  %v546_v25 = vsel %vm536_vm2, %v8515_v16, %v545_v50  ;;  %v3008_v19 = vmul.f32 %v8516_v44, %v5823_v45  ;;  %v8518_v21 = vrot.slane %v8517_v54, 2  ;;  %v3072_v41 = vmul.f32 %v8519_v12, %v5823_v45  ;;  %v8523_v44 = vld [vmem:[#allocation83_spill] sm:$0xff] }
 0x112   : > { %v568_v59 = vadd.f32 %v546_v25, %v503_v62  ;;  %v3136_v50 = vmul.f32 %v4982_v7, %v5823_v45  ;;  %v8521_v55 = vrot.slane %v8520_v39, 3  ;;  %v805_v16 = vrot.slane %v777_v26, 5 }
 0x113   : > { %v611_v42 = vsel %vm601_vm3, %v8518_v21, %v610_v43  ;;  %v1911_v29 = vadd.f32 %v5690_v56, %v1847_v20  ;;  %v5854_v62 = vmul.f32 %v8523_v44, %v8522_v36  ;;  %v3200_v43 = vmul.f32 %v4987_v1, %v5823_v45  ;;  %v8524_v21 = vld [vmem:[#allocation98_spill] sm:$0xff]  ;;  %v8526_v1 = vld [vmem:[#allocation99_spill] sm:$0xff] }
 0x114   : > { %v676_v31 = vsel %vm666_vm4, %v8521_v55, %v675_v32  ;;  %v633_v25 = vadd.f32 %v611_v42, %v568_v59  ;;  %v3264_v54 = vmul.f32 %v5012_v58, %v5823_v45  ;;  %v8525_v7 = vrot.slane %v8524_v21, 4 }
 0x115   : > { %v870_v12 = vrot.slane %v842_v9, 6  ;;  %v927_v26 = vmul.f32 %v4482_v18, %v5588_v28  ;;  %v1975_v56 = vadd.f32 %v5709_v3, %v1911_v29  ;;  %v2969_v32 = vrot.slane %v2944_v52, 1  ;;  %v8528_v52 = vld [vmem:[#allocation100_spill] sm:$0xff] }
 0x116   : > { %v741_v39 = vsel %vm731_vm5, %v8525_v7, %v740_v37  ;;  %v3033_v20 = vrot.slane %v3008_v19, 2  ;;  %v698_v55 = vadd.f32 %v676_v31, %v633_v25  ;;  %v3097_v36 = vrot.slane %v3072_v41, 3 }
 0x117   : > { %v3161_v44 = vrot.slane %v3136_v50, 4  ;;  %v8527_v59 = vrot.slane %v8526_v1, 5  ;;  %v991_v21 = vmul.f32 %v4498_v24, %v5588_v28  ;;  %v2039_v7 = vadd.f32 %v5718_v46, %v1975_v56 }
 0x118   : > { %v3225_v37 = vrot.slane %v3200_v43, 5  ;;  %v763_v9 = vadd.f32 %v741_v39, %v698_v55  ;;  %v1055_v58 = vmul.f32 %v4519_v35, %v5588_v28  ;;  %v3289_v3 = vrot.slane %v3264_v54, 6  ;;  %v8532_v54 = vld [vmem:[#allocation87_spill] sm:$0xff] }
 0x119   : > { %v806_v42 = vsel %vm796_vm6, %v8527_v59, %v805_v16  ;;  %v8529_v19 = vrot.slane %v8528_v52, 6  ;;  %v954_v50 = vrot.slane %v927_v26, 1  ;;  %v1119_v1 = vmul.f32 %v4526_v53, %v5588_v28  ;;  %v8530_v16 = vld [vmem:[#allocation85_spill] sm:$0xff]  ;;  %v8536_v52 = vld [vmem:[#allocation91_spill] sm:$0xff] }
 0x11a   : > { %v2103_v31 = vadd.f32 %v5723_v23, %v2039_v7  ;;  %v8531_v29 = vrot.slane %v8530_v16, 1  ;;  %v828_v43 = vadd.f32 %v806_v42, %v763_v9  ;;  %v905_v25 = vmul.f32 %v5632_v49, %v4479_v17 }
 0x11b   : > { %v871_v41 = vsel %vm861_vm7, %v8529_v19, %v870_v12  ;;  %v8533_v39 = vrot.slane %v8532_v54, 2  ;;  %v1018_v12 = vrot.slane %v991_v21, 2  ;;  %v1183_v26 = vmul.f32 %v4542_v5, %v5588_v28  ;;  %v8538_v21 = vld [vmem:[#allocation92_spill] sm:$0xff] }
 0x11c   : > { %v5883_v46 = vsel %vm536_vm2, %v8531_v29, %v2969_v32  ;;  %v1247_v23 = vmul.f32 %v4546_v10, %v5588_v28  ;;  %v2123_v55 = vadd.f32 %v5742_v60, %v2103_v31  ;;  %v8534_v32 = vld [vmem:[#allocation88_spill] sm:$0xff]  ;;  %v893_v7 = vadd.f32 %v871_v41, %v828_v43  ;;  %v8540_v28 = vld [vmem:[#allocation101_spill] sm:$0xff] }
 0x11d   : > { %v5890_v56 = vsel %vm601_vm3, %v8533_v39, %v3033_v20  ;;  %v8535_v59 = vrot.slane %v8534_v32, 3  ;;  %v1082_v9 = vrot.slane %v1055_v58, 3  ;;  %v8537_v19 = vrot.slane %v8536_v52, 4  ;;  %v8542_v39 = vld [vmem:[#allocation95_spill] sm:$0xff]  ;;  %v8544_v32 = vld [vmem:[#allocation102_spill] sm:$0xff] }
 0x11e   : > { %v8539_v16 = vrot.slane %v8538_v21, 5  ;;  %v8541_v54 = vrot.slane %v8540_v28, 1  ;;  %v1146_v31 = vrot.slane %v1119_v1, 4  ;;  %v8543_v41 = vrot.slane %v8542_v39, 6  ;;  %v8551_v39 = vld [vmem:[#allocation105_spill] sm:$0xff] }
 0x11f   : > { %v5900_v42 = vsel %vm666_vm4, %v8535_v59, %v3097_v36  ;;  %v5905_v20 = vsel %vm731_vm5, %v8537_v19, %v3161_v44  ;;  %v2187_v36 = vadd.f32 %v5749_v27, %v2123_v55  ;;  %v913_v43 = vadd.f32 %v905_v25, %v893_v7  ;;  %v8546_v55 = vld [vmem:[#allocation103_spill] sm:$0xff]  ;;  %v8548_v7 = vld [vmem:[#allocation104_spill] sm:$0xff] }
 0x120   : > { %v5910_v29 = vsel %vm796_vm6, %v8539_v16, %v3225_v37  ;;  %v955_v60 = vsel %vm536_vm2, %v8541_v54, %v954_v50  ;;  %v5919_v58 = vsel %vm861_vm7, %v8543_v41, %v3289_v3  ;;  %v1331_v44 = vmul.f32 %v4575_v40, %v5621_v51 }
 0x121   : > { %v8545_v59 = vrot.slane %v8544_v32, 2  ;;  %v1210_v52 = vrot.slane %v1183_v26, 5  ;;  %v1274_v19 = vrot.slane %v1247_v23, 6  ;;  %v1395_v50 = vmul.f32 %v4585_v57, %v5621_v51 }
 0x122   : > { %v2251_v27 = vadd.f32 %v5756_v14, %v2187_v36  ;;  %v977_v1 = vadd.f32 %v955_v60, %v913_v43  ;;  %v8547_v21 = vrot.slane %v8546_v55, 3  ;;  %v1309_v25 = vmul.f32 %v5668_v33, %v8328_v63  ;;  %v8550_v60 = vld [vmem:[#allocation36_spill] sm:$0xff]  ;;  %v8553_v43 = vld [vmem:[#allocation106_spill] sm:$0xff] }
 0x123   : > { %v1019_v37 = vsel %vm601_vm3, %v8545_v59, %v1018_v12  ;;  %v8549_v16 = vrot.slane %v8548_v7, 4  ;;  %v1459_v12 = vmul.f32 %v4588_v61, %v5621_v51  ;;  %v1523_v26 = vmul.f32 %v8329_v4, %v5621_v51  ;;  %v8556_v7 = vld [vmem:[#allocation38_spill] sm:$0xff] }
 0x124   : > { %v1083_v3 = vsel %vm666_vm4, %v8547_v21, %v1082_v9  ;;  %v1587_v14 = vmul.f32 %v8331_v22, %v5621_v51  ;;  %v2315_v23 = vadd.f32 %v5761_v34, %v2251_v27  ;;  %v1041_v54 = vadd.f32 %v1019_v37, %v977_v1  ;;  %v8555_v21 = vld [vmem:[#allocation12_spill] sm:$0xff] }
 0x125   : > { %v1147_v28 = vsel %vm731_vm5, %v8549_v16, %v1146_v31  ;;  %v1358_v9 = vrot.slane %v1331_v44, 1  ;;  %v1651_v36 = vmul.f32 %v8550_v60, %v5621_v51  ;;  %v8552_v41 = vrot.slane %v8551_v39, 5  ;;  %v8557_v44 = vld [vmem:[#allocation42_spill] sm:$0xff]  ;;  %v8558_v51 = vld [vmem:[#allocation43_spill] sm:$0xff] }
 0x126   : > { %v8554_v32 = vrot.slane %v8553_v43, 6  ;;  %v1422_v55 = vrot.slane %v1395_v50, 2  ;;  %v1735_v16 = vmul.f32 %v8556_v7, %v8555_v21  ;;  %v2379_v22 = vadd.f32 %v5766_v6, %v2315_v23  ;;  %v8562_v23 = vld [vmem:[#allocation108_spill] sm:$0xff] }
 0x127   : > { %v1211_v31 = vsel %vm796_vm6, %v8552_v41, %v1210_v52  ;;  %v1105_v34 = vadd.f32 %v1083_v3, %v1041_v54  ;;  %v1799_v37 = vmul.f32 %v8557_v44, %v8555_v21  ;;  %v1863_v27 = vmul.f32 %v8558_v51, %v8555_v21  ;;  %v8559_v41 = vld [vmem:[#allocation44_spill] sm:$0xff] }
 0x128   : > { %v1275_v59 = vsel %vm861_vm7, %v8554_v32, %v1274_v19  ;;  %v1486_v1 = vrot.slane %v1459_v12, 3  ;;  %v1550_v39 = vrot.slane %v1523_v26, 4  ;;  %v1614_v52 = vrot.slane %v1587_v14, 5  ;;  %v8560_v32 = vld [vmem:[#allocation107_spill] sm:$0xff]  ;;  %v8564_v12 = vld [vmem:[#allocation48_spill] sm:$0xff]  ;;  %v8565_v14 = vld [vmem:[#allocation49_spill] sm:$0xff] }
 0x129   : > { %v1927_v43 = vmul.f32 %v8559_v41, %v8555_v21  ;;  %v2443_v19 = vadd.f32 %v5771_v2, %v2379_v22  ;;  %v1169_v50 = vadd.f32 %v1147_v28, %v1105_v34  ;;  %v8561_v7 = vrot.slane %v8560_v32, 1  ;;  %v8566_v34 = vld [vmem:[#allocation110_spill] sm:$0xff] }
 0x12a   : > { %v1678_v3 = vrot.slane %v1651_v36, 6  ;;  %v8563_v54 = vrot.slane %v8562_v23, 2  ;;  %v1762_v60 = vrot.slane %v1735_v16, 1  ;;  %v1991_v26 = vmul.f32 %v8564_v12, %v8555_v21  ;;  %v8568_v36 = vld [vmem:[#allocation111_spill] sm:$0xff]  ;;  %v8570_v16 = vld [vmem:[#allocation112_spill] sm:$0xff] }
 0x12b   : > { %v1359_v6 = vsel %vm536_vm2, %v8561_v7, %v1358_v9  ;;  %v2055_v51 = vmul.f32 %v8565_v14, %v8555_v21  ;;  %v2507_v41 = vadd.f32 %v5776_v11, %v2443_v19  ;;  %v1233_v22 = vadd.f32 %v1211_v31, %v1169_v50  ;;  %v8572_v11 = vld [vmem:[#allocation113_spill] sm:$0xff] }
 0x12c   : > { %v1423_v44 = vsel %vm601_vm3, %v8563_v54, %v1422_v55  ;;  %v1826_v2 = vrot.slane %v1799_v37, 2  ;;  %v1890_v28 = vrot.slane %v1863_v27, 3  ;;  %v8567_v32 = vrot.slane %v8566_v34, 3  ;;  %v8574_v27 = vld [vmem:[#allocation40_spill] sm:$0xff] }
 0x12d   : > { %v8569_v7 = vrot.slane %v8568_v36, 4  ;;  %v8571_v23 = vrot.slane %v8570_v16, 5  ;;  %v1954_v12 = vrot.slane %v1927_v43, 4  ;;  %v2527_v21 = vadd.f32 %v5783_v8, %v2507_v41  ;;  %v8578_v43 = vld [vmem:[#allocation50_spill] sm:$0xff] }
 0x12e   : > { %v1487_v9 = vsel %vm666_vm4, %v8567_v32, %v1486_v1  ;;  %v1297_v14 = vadd.f32 %v1275_v59, %v1233_v22  ;;  %v8573_v31 = vrot.slane %v8572_v11, 6  ;;  %v5988_v19 = vmul.f32 %v5738_v38, %v8574_v27  ;;  %v8575_v1 = vld [vmem:[#allocation52_spill] sm:$0xff]  ;;  %v8579_v41 = vld [vmem:[#allocation54_spill] sm:$0xff] }
 0x12f   : > { %v1551_v55 = vsel %vm731_vm5, %v8569_v7, %v1550_v39  ;;  %v1615_v54 = vsel %vm796_vm6, %v8571_v23, %v1614_v52  ;;  %v8576_v50 = vrot.slane %v8575_v1, 1  ;;  %v2018_v34 = vrot.slane %v1991_v26, 5  ;;  %v8577_v52 = vld [vmem:[#allocation16_spill] sm:$0xff]  ;;  %v8581_v7 = vld [vmem:[#allocation114_spill] sm:$0xff]  ;;  %v8585_v26 = vld [vmem:[#allocation57_spill] sm:$0xff] }
 0x130   : > { %v1679_v37 = vsel %vm861_vm7, %v8573_v31, %v1678_v3  ;;  %v2082_v32 = vrot.slane %v2055_v51, 6  ;;  %v2139_v36 = vmul.f32 %v8578_v43, %v8577_v52  ;;  %v2591_v8 = vadd.f32 %v5788_v13, %v2527_v21  ;;  %v8586_v13 = vld [vmem:[#allocation58_spill] sm:$0xff]  ;;  %v8598_v27 = vld [vmem:[#allocation68_spill] sm:$0xff] }
 0x131   : > { %v5993_v39 = vsel %vm536_vm2, %v8576_v50, %v1762_v60  ;;  %v1317_v59 = vadd.f32 %v1309_v25, %v1297_v14  ;;  %v8580_v22 = vrot.slane %v8579_v41, 2  ;;  %v8582_v16 = vrot.slane %v8581_v7, 3  ;;  %v8583_v60 = vld [vmem:[#allocation115_spill] sm:$0xff]  ;;  %v8587_v14 = vld [vmem:[#allocation60_spill] sm:$0xff] }
 0x132   : > { %v8584_v11 = vrot.slane %v8583_v60, 4  ;;  %v2203_v31 = vmul.f32 %v8585_v26, %v8577_v52  ;;  %v2267_v25 = vmul.f32 %v8586_v13, %v8577_v52  ;;  %v2655_v21 = vadd.f32 %v5793_v47, %v2591_v8  ;;  %v8589_v41 = vld [vmem:[#allocation64_spill] sm:$0xff]  ;;  %v8592_v60 = vld [vmem:[#allocation117_spill] sm:$0xff] }
 0x133   : > { %v6001_v3 = vsel %vm601_vm3, %v8580_v22, %v1826_v2  ;;  %v6006_v23 = vsel %vm666_vm4, %v8582_v16, %v1890_v28  ;;  %v2331_v2 = vmul.f32 %v8587_v14, %v8577_v52  ;;  %v1381_v1 = vadd.f32 %v1359_v6, %v1317_v59  ;;  %v8588_v28 = vld [vmem:[#allocation62_spill] sm:$0xff]  ;;  %v8594_v14 = vld [vmem:[#allocation55_spill] sm:$0xff] }
 0x134   : > { %v6011_v51 = vsel %vm731_vm5, %v8584_v11, %v1954_v12  ;;  %v2395_v50 = vmul.f32 %v8588_v28, %v8577_v52  ;;  %v2459_v22 = vmul.f32 %v8589_v41, %v8577_v52  ;;  %v8590_v12 = vld [vmem:[#allocation116_spill] sm:$0xff]  ;;  %v8593_v11 = vrot.slane %v8592_v60, 6  ;;  %v8595_v52 = vld [vmem:[#allocation67_spill] sm:$0xff] }
 0x135   : > { %v8591_v7 = vrot.slane %v8590_v12, 5  ;;  %v6036_v47 = vmul.f32 %v5779_v48, %v8594_v14  ;;  %v2166_v6 = vrot.slane %v2139_v36, 1  ;;  %v2719_v8 = vadd.f32 %v5798_v30, %v2655_v21  ;;  %v8596_v12 = vld [vmem:[#allocation70_spill] sm:$0xff] }
 0x136   : > { %v6032_v13 = vsel %vm861_vm7, %v8593_v11, %v2082_v32  ;;  %v1445_v59 = vadd.f32 %v1423_v44, %v1381_v1  ;;  %v2543_v41 = vmul.f32 %v8595_v52, %v5823_v45  ;;  %v2294_v28 = vrot.slane %v2267_v25, 3  ;;  %v8597_v32 = vld [vmem:[#allocation73_spill] sm:$0xff]  ;;  %v8600_v21 = vld [vmem:[#allocation74_spill] sm:$0xff] }
 0x137   : > { %v6027_v16 = vsel %vm796_vm6, %v8591_v7, %v2018_v34  ;;  %v2607_v34 = vmul.f32 %v8596_v12, %v5823_v45  ;;  %v2230_v7 = vrot.slane %v2203_v31, 2  ;;  %v2358_v60 = vrot.slane %v2331_v2, 4  ;;  %v8601_v31 = vld [vmem:[#allocation77_spill] sm:$0xff]  ;;  %v8602_v2 = vld [vmem:[#allocation78_spill] sm:$0xff] }
 0x138   : > { %v2671_v11 = vmul.f32 %v8597_v32, %v5823_v45  ;;  %v2783_v26 = vadd.f32 %v5813_v0, %v2719_v8  ;;  %v1509_v14 = vadd.f32 %v1487_v9, %v1445_v59  ;;  %v2422_v43 = vrot.slane %v2395_v50, 5  ;;  %v8603_v9 = vld [vmem:[#allocation17_spill] sm:$0xff] }
 0x139   : > { %v2486_v36 = vrot.slane %v2459_v22, 6  ;;  %v8599_v30 = vrot.slane %v8598_v27, 1  ;;  %v6053_v1 = vmul.f32 %v8600_v21, %v5823_v45  ;;  %v6057_v25 = vmul.f32 %v8601_v31, %v5823_v45  ;;  %v8606_v21 = vld [vmem:[#allocation119_spill] sm:$0xff]  ;;  %v8608_v31 = vld [vmem:[#allocation120_spill] sm:$0xff] }
 0x13a   : > { %v6061_v0 = vmul.f32 %v8602_v2, %v5823_v45  ;;  %v2847_v50 = vadd.f32 %v8603_v9, %v2783_v26  ;;  %v1573_v22 = vadd.f32 %v1551_v55, %v1509_v14  ;;  %v2570_v27 = vrot.slane %v2543_v41, 1  ;;  %v8610_v55 = vld [vmem:[#allocation18_spill] sm:$0xff] }
 0x13b   : > { %v6049_v44 = vsel %vm536_vm2, %v8599_v30, %v2166_v6  ;;  %v2634_v8 = vrot.slane %v2607_v34, 2  ;;  %v8604_v6 = vld [vmem:[#allocation118_spill] sm:$0xff]  ;;  %v8607_v32 = vrot.slane %v8606_v21, 3  ;;  %v8609_v52 = vrot.slane %v8608_v31, 4  ;;  %v8611_v34 = vld [vmem:[#allocation121_spill] sm:$0xff] }
 0x13c   : > { %v8605_v59 = vrot.slane %v8604_v6, 2  ;;  %v2698_v26 = vrot.slane %v2671_v11, 3  ;;  %v2911_v14 = vadd.f32 %v8610_v55, %v2847_v50  ;;  %v1637_v41 = vadd.f32 %v1615_v54, %v1573_v22  ;;  %v8613_v6 = vld [vmem:[#allocation122_spill] sm:$0xff]  ;;  %v8616_v31 = vld [vmem:[#allocation69_spill] sm:$0xff]  ;;  %v8617_v22 = vld [vmem:[#allocation123_spill] sm:$0xff] }
 0x13d   : > { %v6072_v12 = vsel %vm666_vm4, %v8607_v32, %v2294_v28  ;;  %v6077_v45 = vsel %vm731_vm5, %v8609_v52, %v2358_v60  ;;  %v8612_v9 = vrot.slane %v8611_v34, 5  ;;  %v8614_v21 = vrot.slane %v8613_v6, 6  ;;  %v6091_v32 = vld [vmem:[%s4401_s23 + $0x98] sm:$0xff]  ;;  %v8621_v6 = vld [vmem:[#allocation125_spill] sm:$0xff]  ;;  %v4040_v54 = vld [vmem:[%s4401_s23 + $0x30] sm:$0xff] }
 0x13e   : > { %v6067_v30 = vsel %vm601_vm3, %v8605_v59, %v2230_v7  ;;  %8615 = vst [vmem:[#allocation20_spill] sm:$0xff] %v6091_v32  ;;  %v6095_v52 = vmul.f32 %v6091_v32, %v8616_v31  ;;  %v1701_v50 = vadd.f32 %v1679_v37, %v1637_v41  ;;  %v8618_v59 = vrot.slane %v8617_v22, 1  ;;  %v8619_v55 = vld [vmem:[#allocation124_spill] sm:$0xff]  ;;  %v8623_v11 = vld [vmem:[#allocation3_spill] sm:$0xff] }
 0x13f   : > { %v6083_v7 = vsel %vm796_vm6, %v8612_v9, %v2422_v43  ;;  %v6088_v28 = vsel %vm861_vm7, %v8614_v21, %v2486_v36  ;;  %v2931_v43 = vadd.f32 %v5854_v62, %v2911_v14  ;;  %v8620_v34 = vrot.slane %v8619_v55, 2  ;;  %v8624_v62 = vld [vmem:[#allocation4_spill] sm:$0xff] }
 0x140   : > { %v6104_v36 = vsel %vm536_vm2, %v8618_v59, %v2570_v27  ;;  %v8622_v21 = vrot.slane %v8621_v6, 3  ;;  %v496_v31 = vmul.f32 %v4040_v54, %v8623_v11  ;;  %v518_v37 = vmul.f32 %v4040_v54, %v8624_v62 }
 0x141   : > { %v6109_v9 = vsel %vm601_vm3, %v8620_v34, %v2634_v8  ;;  %v6121_v14 = vmul.f32 %v5632_v49, %v8624_v62  ;;  %v2995_v27 = vadd.f32 %v5883_v46, %v2931_v43  ;;  %v1721_v41 = vadd.f32 %v5988_v19, %v1701_v50  ;;  %v8626_v8 = vld [vmem:[#allocation5_spill] sm:$0xff] }
 0x142   : > { %v6114_v60 = vsel %vm666_vm4, %v8622_v21, %v2698_v26  ;;  %v583_v22 = vmul.f32 %v4040_v54, %v8626_v8  ;;  %v6128_v59 = vmul.f32 %v5632_v49, %v8626_v8  ;;  %v8627_v26 = vld [vmem:[#allocation132_spill] sm:$0xff]  ;;  %v547_v34 = vrot.slane %v518_v37, 1  ;;  %v8628_v21 = vld [vmem:[#allocation6_spill] sm:$0xff]  ;;  %v8629_v37 = vld [vmem:[#allocation7_spill] sm:$0xff] }
 0x143   : > { %8625 = vst [vmem:[#allocation21_spill] sm:$0xff] %v6121_v14  ;;  %v504_v55 = vadd.f32 %v8627_v26, %v496_v31  ;;  %v8000_v6 = vrot.slane %v6121_v14, 1  ;;  %v648_v11 = vmul.f32 %v4040_v54, %v8628_v21  ;;  %v3059_v62 = vadd.f32 %v5890_v56, %v2995_v27 }
 0x144   : > { %v1785_v2 = vadd.f32 %v5993_v39, %v1721_v41  ;;  %v612_v46 = vrot.slane %v583_v22, 2  ;;  %v8010_v19 = vrot.slane %v6128_v59, 2  ;;  %v6141_v50 = vmul.f32 %v5632_v49, %v8628_v21 }
 0x145   : > { %v549_v43 = vsel %vm536_vm2, %v547_v34, %v8000_v6  ;;  %v677_v31 = vrot.slane %v648_v11, 3  ;;  %v713_v26 = vmul.f32 %v4040_v54, %v8629_v37  ;;  %v3123_v8 = vadd.f32 %v5900_v42, %v3059_v62  ;;  %v8630_v6 = vld [vmem:[#allocation8_spill] sm:$0xff] }
 0x146   : > { %v1849_v56 = vadd.f32 %v6001_v3, %v1785_v2  ;;  %v569_v27 = vadd.f32 %v549_v43, %v504_v55  ;;  %v614_v39 = vsel %vm601_vm3, %v612_v46, %v8010_v19  ;;  %v8009_v41 = vrot.slane %v6141_v50, 3  ;;  %v8647_v19 = vld [vmem:[#allocation129_spill] sm:$0xff] }
 0x147   : > { %v6152_v22 = vmul.f32 %v5632_v49, %v8629_v37  ;;  %v742_v34 = vrot.slane %v713_v26, 4  ;;  %v778_v11 = vmul.f32 %v4040_v54, %v8630_v6  ;;  %v3187_v14 = vadd.f32 %v5905_v20, %v3123_v8 }
 0x148   : > { %v1913_v42 = vadd.f32 %v6006_v23, %v1849_v56  ;;  %v634_v3 = vadd.f32 %v614_v39, %v569_v27  ;;  %v6159_v2 = vmul.f32 %v5632_v49, %v8630_v6  ;;  %v679_v62 = vsel %vm666_vm4, %v677_v31, %v8009_v41  ;;  %v6177_v39 = vld [vmem:[%s4401_s23 + $0x48] sm:$0xff] }
 0x149   : > { %v8003_v55 = vrot.slane %v6152_v22, 4  ;;  %v807_v46 = vrot.slane %v778_v11, 5  ;;  %v843_v43 = vmul.f32 %v4040_v54, %v4476_v15  ;;  %v3251_v26 = vadd.f32 %v5910_v29, %v3187_v14  ;;  %8631 = vst [vmem:[#allocation24_spill] sm:$0xff] %v6177_v39 }
 0x14a   : > { %v1977_v20 = vadd.f32 %v6011_v51, %v1913_v42  ;;  %v699_v8 = vadd.f32 %v679_v62, %v634_v3  ;;  %v8002_v23 = vrot.slane %v6159_v2, 5  ;;  %v6174_v27 = vmul.f32 %v5632_v49, %v4476_v15 }
 0x14b   : > { %v744_v56 = vsel %vm731_vm5, %v742_v34, %v8003_v55  ;;  %v872_v31 = vrot.slane %v843_v43, 6  ;;  %v906_v54 = vmul.f32 %v6177_v39, %v4479_v17  ;;  %v6182_v29 = vadd.f32 %v5919_v58, %v3251_v26 }
 0x14c   : > { %v2041_v51 = vadd.f32 %v6027_v16, %v1977_v20  ;;  %v764_v14 = vadd.f32 %v744_v56, %v699_v8  ;;  %v809_v34 = vsel %vm796_vm6, %v807_v46, %v8002_v23  ;;  %v8005_v11 = vrot.slane %v6174_v27, 6 }
 0x14d   : > { %8632 = vst [vmem:[#allocation25_spill] sm:$0xff] %v6182_v29  ;;  %v928_v49 = vmul.f32 %v6177_v39, %v4482_v18  ;;  %v6193_v42 = vmul.f32 %v5668_v33, %v4482_v18  ;;  %v992_v58 = vmul.f32 %v6177_v39, %v4498_v24  ;;  %v3326_v16 = vsel %vm3322_vm8, %v6182_v29, 0.0 }
 0x14e   : > { %v2105_v3 = vadd.f32 %v6032_v13, %v2041_v51  ;;  %v829_v62 = vadd.f32 %v809_v34, %v764_v14  ;;  %v6202_v46 = vmul.f32 %v5668_v33, %v4498_v24  ;;  %3327 = vadd.xlane.f32.xlu0 %v3326_v16  ;;  %v874_v43 = vsel %vm861_vm7, %v872_v31, %v8005_v11 }
 0x14f   : > { %v956_v26 = vrot.slane %v928_v49, 1  ;;  %v8004_v20 = vrot.slane %v6193_v42, 1  ;;  %v1020_v8 = vrot.slane %v992_v58, 2  ;;  %v1056_v13 = vmul.f32 %v6177_v39, %v4519_v35 }
 0x150   : > { %v2125_v56 = vadd.f32 %v6036_v47, %v2105_v3  ;;  %v894_v23 = vadd.f32 %v874_v43, %v829_v62  ;;  %v8006_v55 = vrot.slane %v6202_v46, 2  ;;  %v6217_v14 = vmul.f32 %v5668_v33, %v4519_v35 }
 0x151   : > { %v958_v51 = vsel %vm536_vm2, %v956_v26, %v8004_v20  ;;  %v1120_v31 = vmul.f32 %v6177_v39, %v4526_v53  ;;  %v6223_v47 = vmul.f32 %v5668_v33, %v4526_v53  ;;  %v1084_v16 = vrot.slane %v1056_v13, 3 }
 0x152   : > { %v2189_v34 = vadd.f32 %v6049_v44, %v2125_v56  ;;  %v914_v49 = vadd.f32 %v906_v54, %v894_v23  ;;  %v1022_v58 = vsel %vm601_vm3, %v1020_v8, %v8006_v55  ;;  %v8008_v3 = vrot.slane %v6217_v14, 3  ;;  %v8636_v8 = vld [vmem:[#allocation126_spill] sm:$0xff]  ;;  %v6261_v55 = vld [vmem:[%s4401_s23 + $0x60] sm:$0xff] }
 0x153   : > { %8633 = vst [vmem:[#allocation29_spill] sm:$0xff] %v6223_v47  ;;  %v1148_v62 = vrot.slane %v1120_v31, 4  ;;  %v8007_v43 = vrot.slane %v6223_v47, 4  ;;  %v1184_v26 = vmul.f32 %v6177_v39, %v4542_v5  ;;  %v6236_v44 = vmul.f32 %v5668_v33, %v4542_v5  ;;  %8639 = vst [vmem:[#allocation34_spill] sm:$0xff] %v6261_v55 }
 0x154   : > { %v2253_v20 = vadd.f32 %v6067_v30, %v2189_v34  ;;  %v978_v11 = vadd.f32 %v958_v51, %v914_v49  ;;  %v1248_v23 = vmul.f32 %v6177_v39, %v4546_v10  ;;  %v8635_v54 = vrot.slane %v6053_v1, 4 }
 0x155   : > { %8634 = vst [vmem:[#allocation30_spill] sm:$0xff] %v6236_v44  ;;  %v8637_v56 = vrot.slane %v8636_v8, 4  ;;  %v1086_v31 = vsel %vm666_vm4, %v1084_v16, %v8008_v3  ;;  %v1212_v30 = vrot.slane %v1184_v26, 5  ;;  %v6252_v51 = vmul.f32 %v5668_v33, %v4546_v10 }
 0x156   : > { %v2317_v34 = vadd.f32 %v6072_v12, %v2253_v20  ;;  %v1042_v49 = vadd.f32 %v1022_v58, %v978_v11  ;;  %v1150_v1 = vsel %vm731_vm5, %v1148_v62, %v8007_v43  ;;  %v1332_v16 = vmul.f32 %v6261_v55, %v4575_v40  ;;  %v8642_v20 = vld [vmem:[#allocation127_spill] sm:$0xff] }
 0x157   : > { %v6245_v13 = vsel %vm731_vm5, %v8637_v56, %v8635_v54  ;;  %8638 = vst [vmem:[#allocation31_spill] sm:$0xff] %v6252_v51  ;;  %v1276_v54 = vrot.slane %v1248_v23, 6  ;;  %v6267_v33 = vmul.f32 %v5738_v38, %v4575_v40  ;;  %v8641_v11 = vrot.slane %v6057_v25, 5  ;;  %v8645_v23 = vld [vmem:[#allocation128_spill] sm:$0xff]  ;;  %v8648_v56 = vld [vmem:[#allocation83_spill] sm:$0xff] }
 0x158   : > { %v2381_v12 = vadd.f32 %v6077_v45, %v2317_v34  ;;  %v8643_v58 = vrot.slane %v8642_v20, 5  ;;  %v8644_v26 = vrot.slane %v6061_v0, 6  ;;  %v8646_v43 = vrot.slane %v8645_v23, 6  ;;  %v6311_v23 = vld [vmem:[%s4401_s23 + $0xb8] sm:$0x3f] }
 0x159   : > { %8640 = vst [vmem:[#allocation37_spill] sm:$0xff] %v6267_v33  ;;  %v1106_v41 = vadd.f32 %v1086_v31, %v1042_v49  ;;  %v6286_v8 = vmul.f32 %v8648_v56, %v8647_v19  ;;  %v8649_v25 = vrot.slane %v6236_v44, 5  ;;  %v1396_v34 = vmul.f32 %v6261_v55, %v4585_v57  ;;  %8653 = vst [vmem:[#allocation45_spill] sm:$0xff] %v6311_v23 }
 0x15a   : > { %v6275_v62 = vsel %vm796_vm6, %v8643_v58, %v8641_v11  ;;  %v6282_v3 = vsel %vm861_vm7, %v8646_v43, %v8644_v26  ;;  %v6295_v0 = vmul.f32 %v5738_v38, %v4585_v57  ;;  %v2445_v11 = vadd.f32 %v6083_v7, %v2381_v12 }
 0x15b   : > { %v1214_v45 = vsel %vm796_vm6, %v1212_v30, %v8649_v25  ;;  %v1170_v43 = vadd.f32 %v1150_v1, %v1106_v41  ;;  %v1360_v20 = vrot.slane %v1332_v16, 1  ;;  %v8651_v19 = vrot.slane %v6252_v51, 6  ;;  %v8655_v16 = vld [vmem:[#allocation81_spill] sm:$0xff]  ;;  %v8656_v25 = vld [vmem:[#allocation84_spill] sm:$0xff] }
 0x15c   : > { %8650 = vst [vmem:[#allocation39_spill] sm:$0xff] %v6295_v0  ;;  %v1310_v30 = vmul.f32 %v6261_v55, %v8328_v63  ;;  %v1460_v58 = vmul.f32 %v6261_v55, %v4588_v61  ;;  %v6308_v26 = vmul.f32 %v5738_v38, %v4588_v61  ;;  %v2509_v7 = vadd.f32 %v6088_v28, %v2445_v11  ;;  %v8657_v28 = vld [vmem:[#allocation86_spill] sm:$0xff] }
 0x15d   : > { %v1278_v49 = vsel %vm861_vm7, %v1276_v54, %v8651_v19  ;;  %v1234_v41 = vadd.f32 %v1214_v45, %v1170_v43  ;;  %v1524_v1 = vmul.f32 %v6261_v55, %v8329_v4  ;;  %v6318_v54 = vmul.f32 %v5738_v38, %v8329_v4  ;;  %v8659_v4 = vld [vmem:[#allocation35_spill] sm:$0xff] }
 0x15e   : > { %8652 = vst [vmem:[#allocation41_spill] sm:$0xff] %v6308_v26  ;;  %v2947_v12 = vmul.f32 %v8655_v16, %v6311_v23  ;;  %v3011_v19 = vmul.f32 %v8656_v25, %v6311_v23  ;;  %v1424_v31 = vrot.slane %v1396_v34, 2  ;;  %v2529_v39 = vadd.f32 %v6095_v52, %v2509_v7 }
 0x15f   : > { %8654 = vst [vmem:[#allocation46_spill] sm:$0xff] %v6318_v54  ;;  %v3075_v45 = vmul.f32 %v8657_v28, %v6311_v23  ;;  %v1298_v11 = vadd.f32 %v1278_v49, %v1234_v41  ;;  %v8658_v43 = vrot.slane %v6267_v33, 1  ;;  %v1488_v51 = vrot.slane %v1460_v58, 3  ;;  %v8661_v41 = vld [vmem:[#allocation89_spill] sm:$0xff] }
 0x160   : > { %v1588_v47 = vmul.f32 %v6261_v55, %v8659_v4  ;;  %v6336_v34 = vmul.f32 %v5738_v38, %v8659_v4  ;;  %v2593_v52 = vadd.f32 %v6104_v36, %v2529_v39  ;;  %v1552_v29 = vrot.slane %v1524_v1, 4 }
 0x161   : > { %v1362_v63 = vsel %vm536_vm2, %v1360_v20, %v8658_v43  ;;  %v1318_v7 = vadd.f32 %v1310_v30, %v1298_v11  ;;  %v6342_v33 = vmul.f32 %v8661_v41, %v6311_v23  ;;  %v8662_v20 = vrot.slane %v6295_v0, 2  ;;  %v8663_v43 = vld [vmem:[#allocation36_spill] sm:$0xff]  ;;  %v8665_v30 = vld [vmem:[#allocation90_spill] sm:$0xff] }
 0x162   : > { %8660 = vst [vmem:[#allocation47_spill] sm:$0xff] %v6336_v34  ;;  %v1652_v44 = vmul.f32 %v6261_v55, %v8663_v43  ;;  %v6351_v4 = vmul.f32 %v5738_v38, %v8663_v43  ;;  %v2657_v36 = vadd.f32 %v6109_v9, %v2593_v52  ;;  %v2974_v39 = vrot.slane %v2947_v12, 1 }
 0x163   : > { %v1426_v58 = vsel %vm601_vm3, %v1424_v31, %v8662_v20  ;;  %v6356_v1 = vmul.f32 %v8665_v30, %v6311_v23  ;;  %v1382_v11 = vadd.f32 %v1362_v63, %v1318_v7  ;;  %v3038_v49 = vrot.slane %v3011_v19, 2  ;;  %v6368_v63 = vld [vmem:[%s4401_s23 + $0x78] sm:$0xff]  ;;  %v8669_v19 = vld [vmem:[#allocation38_spill] sm:$0xff] }
 0x164   : > { %8664 = vst [vmem:[#allocation51_spill] sm:$0xff] %v6351_v4  ;;  %v8666_v0 = vrot.slane %v6308_v26, 3  ;;  %v1616_v20 = vrot.slane %v1588_v47, 5  ;;  %v8033_v55 = vrot.slane %v6336_v34, 5  ;;  %v2721_v61 = vadd.f32 %v6114_v60, %v2657_v36  ;;  %8668 = vst [vmem:[#allocation53_spill] sm:$0xff] %v6368_v63  ;;  %v8673_v36 = vld [vmem:[#allocation93_spill] sm:$0xff] }
 0x165   : > { %v3102_v38 = vrot.slane %v3075_v45, 3  ;;  %v1446_v43 = vadd.f32 %v1426_v58, %v1382_v11  ;;  %v8667_v9 = vrot.slane %v6318_v54, 4  ;;  %v1680_v52 = vrot.slane %v1652_v44, 6  ;;  %v8677_v54 = vld [vmem:[#allocation40_spill] sm:$0xff]  ;;  %v8680_v26 = vld [vmem:[#allocation131_spill] sm:$0xff] }
 0x166   : > { %v1490_v31 = vsel %vm666_vm4, %v1488_v51, %v8666_v0  ;;  %v1736_v7 = vmul.f32 %v6368_v63, %v8669_v19  ;;  %v6374_v47 = vmul.f32 %v5779_v48, %v8669_v19  ;;  %v2785_v60 = vadd.f32 %v6245_v13, %v2721_v61  ;;  %v8671_v0 = vld [vmem:[#allocation42_spill] sm:$0xff] }
 0x167   : > { %v1554_v12 = vsel %vm731_vm5, %v1552_v29, %v8667_v9  ;;  %v1510_v51 = vadd.f32 %v1490_v31, %v1446_v43  ;;  %v1800_v45 = vmul.f32 %v6368_v63, %v8671_v0  ;;  %v6381_v29 = vmul.f32 %v5779_v48, %v8671_v0  ;;  %v8674_v43 = vld [vmem:[#allocation43_spill] sm:$0xff] }
 0x168   : > { %8670 = vst [vmem:[#allocation56_spill] sm:$0xff] %v6374_v47  ;;  %v3166_v44 = vrot.slane %v6342_v33, 4  ;;  %v3230_v58 = vrot.slane %v6356_v1, 5  ;;  %v3267_v11 = vmul.f32 %v8673_v36, %v6311_v23  ;;  %v1618_v9 = vsel %vm796_vm6, %v1616_v20, %v8033_v55  ;;  %v8678_v55 = vld [vmem:[#allocation130_spill] sm:$0xff] }
 0x169   : > { %8672 = vst [vmem:[#allocation59_spill] sm:$0xff] %v6381_v29  ;;  %v2849_v61 = vadd.f32 %v6275_v62, %v2785_v60  ;;  %v1574_v13 = vadd.f32 %v1554_v12, %v1510_v51  ;;  %v1864_v31 = vmul.f32 %v6368_v63, %v8674_v43  ;;  %v6395_v57 = vmul.f32 %v5779_v48, %v8674_v43 }
 0x16a   : > { %v8676_v33 = vrot.slane %v6351_v4, 6  ;;  %v1714_v23 = vmul.f32 %v6368_v63, %v8677_v54  ;;  %v1764_v34 = vrot.slane %v1736_v7, 1  ;;  %v8038_v20 = vrot.slane %v6374_v47, 1 }
 0x16b   : > { %8675 = vst [vmem:[#allocation61_spill] sm:$0xff] %v6395_v57  ;;  %v2913_v62 = vadd.f32 %v6282_v3, %v2849_v61  ;;  %v1638_v12 = vadd.f32 %v1618_v9, %v1574_v13  ;;  %v1828_v60 = vrot.slane %v1800_v45, 2  ;;  %v8040_v51 = vrot.slane %v6381_v29, 2  ;;  %v8690_v61 = vld [vmem:[#allocation9_spill] sm:$0xff]  ;;  %v8703_v29 = vld [vmem:[#allocation55_spill] sm:$0xff] }
 0x16c   : > { %v1682_v1 = vsel %vm861_vm7, %v1680_v52, %v8676_v33  ;;  %v8679_v0 = vrot.slane %v8678_v55, 1  ;;  %v8681_v4 = vrot.slane %v8680_v26, 2  ;;  %v8682_v33 = vld [vmem:[#allocation44_spill] sm:$0xff]  ;;  %v1892_v9 = vrot.slane %v1864_v31, 3  ;;  %v8684_v55 = vld [vmem:[#allocation133_spill] sm:$0xff] }
 0x16d   : > { %v1928_v54 = vmul.f32 %v6368_v63, %v8682_v33  ;;  %v6415_v7 = vmul.f32 %v5779_v48, %v8682_v33  ;;  %v2933_v3 = vadd.f32 %v6286_v8, %v2913_v62  ;;  %v1702_v45 = vadd.f32 %v1682_v1, %v1638_v12  ;;  %v8686_v26 = vld [vmem:[#allocation48_spill] sm:$0xff] }
 0x16e   : > { %v2975_v43 = vsel %vm536_vm2, %v8679_v0, %v2974_v39  ;;  %v3039_v52 = vsel %vm601_vm3, %v8681_v4, %v3038_v49  ;;  %v8685_v13 = vrot.slane %v8684_v55, 3  ;;  %v1766_v4 = vsel %vm536_vm2, %v1764_v34, %v8038_v20  ;;  %v8688_v55 = vld [vmem:[#allocation49_spill] sm:$0xff] }
 0x16f   : > { %8683 = vst [vmem:[#allocation63_spill] sm:$0xff] %v6415_v7  ;;  %v1992_v49 = vmul.f32 %v6368_v63, %v8686_v26  ;;  %v6429_v0 = vmul.f32 %v5779_v48, %v8686_v26  ;;  %v2997_v8 = vadd.f32 %v2975_v43, %v2933_v3  ;;  %v3294_v31 = vrot.slane %v3267_v11, 6 }
 0x170   : > { %v3103_v39 = vsel %vm666_vm4, %v8685_v13, %v3102_v38  ;;  %v1722_v1 = vadd.f32 %v1714_v23, %v1702_v45  ;;  %v1830_v62 = vsel %vm601_vm3, %v1828_v60, %v8040_v51  ;;  %v1956_v38 = vrot.slane %v1928_v54, 4  ;;  %v6449_v45 = vld [vmem:[%s4401_s23 + $0x90] sm:$0xff]  ;;  %v8694_v51 = vld [vmem:[#allocation50_spill] sm:$0xff] }
 0x171   : > { %8687 = vst [vmem:[#allocation65_spill] sm:$0xff] %v6429_v0  ;;  %v2056_v34 = vmul.f32 %v6368_v63, %v8688_v55  ;;  %v6439_v13 = vmul.f32 %v5779_v48, %v8688_v55  ;;  %v3061_v20 = vadd.f32 %v3039_v52, %v2997_v8  ;;  %v8691_v47 = vrot.slane %v8690_v61, 4  ;;  %8693 = vst [vmem:[#allocation71_spill] sm:$0xff] %v6449_v45 }
 0x172   : > { %v1786_v23 = vadd.f32 %v1766_v4, %v1722_v1  ;;  %v8692_v43 = vrot.slane %v6395_v57, 3  ;;  %v2020_v54 = vrot.slane %v1992_v49, 5  ;;  %v2140_v12 = vmul.f32 %v6449_v45, %v8694_v51  ;;  %v8698_v4 = vld [vmem:[#allocation10_spill] sm:$0xff] }
 0x173   : > { %8689 = vst [vmem:[#allocation66_spill] sm:$0xff] %v6439_v13  ;;  %v3167_v11 = vsel %vm731_vm5, %v8691_v47, %v3166_v44  ;;  %v6455_v48 = vmul.f32 %v6091_v32, %v8694_v51  ;;  %v3125_v52 = vadd.f32 %v3103_v39, %v3061_v20  ;;  %v8696_v47 = vld [vmem:[#allocation57_spill] sm:$0xff]  ;;  %v8699_v49 = vrot.slane %v8698_v4, 5  ;;  %v8701_v39 = vld [vmem:[#allocation11_spill] sm:$0xff] }
 0x174   : > { %v1894_v60 = vsel %vm666_vm4, %v1892_v9, %v8692_v43  ;;  %v1850_v61 = vadd.f32 %v1830_v62, %v1786_v23  ;;  %v2204_v44 = vmul.f32 %v6449_v45, %v8696_v47  ;;  %v6461_v9 = vmul.f32 %v6091_v32, %v8696_v47 }
 0x175   : > { %8695 = vst [vmem:[#allocation72_spill] sm:$0xff] %v6455_v48  ;;  %v3231_v8 = vsel %vm796_vm6, %v8699_v49, %v3230_v58  ;;  %v8700_v1 = vrot.slane %v6415_v7, 4  ;;  %v2084_v3 = vrot.slane %v2056_v34, 6  ;;  %v8047_v63 = vrot.slane %v6439_v13, 6 }
 0x176   : > { %8697 = vst [vmem:[#allocation75_spill] sm:$0xff] %v6461_v9  ;;  %v3189_v20 = vadd.f32 %v3167_v11, %v3125_v52  ;;  %v8702_v62 = vrot.slane %v8701_v39, 6  ;;  %v1914_v57 = vadd.f32 %v1894_v60, %v1850_v61  ;;  %v2118_v47 = vmul.f32 %v6449_v45, %v8703_v29 }
 0x177   : > { %v1958_v43 = vsel %vm731_vm5, %v1956_v38, %v8700_v1  ;;  %v8704_v4 = vrot.slane %v6429_v0, 5  ;;  %v2168_v49 = vrot.slane %v2140_v12, 1  ;;  %v8051_v7 = vrot.slane %v6455_v48, 1  ;;  %v8705_v38 = vld [vmem:[#allocation58_spill] sm:$0xff] }
 0x178   : > { %v3295_v23 = vsel %vm861_vm7, %v8702_v62, %v3294_v31  ;;  %v2268_v34 = vmul.f32 %v6449_v45, %v8705_v38  ;;  %v3253_v1 = vadd.f32 %v3231_v8, %v3189_v20  ;;  %v1978_v11 = vadd.f32 %v1958_v43, %v1914_v57 }
 0x179   : > { %v2022_v58 = vsel %vm796_vm6, %v2020_v54, %v8704_v4  ;;  %v2232_v52 = vrot.slane %v2204_v44, 2  ;;  %v8050_v39 = vrot.slane %v6461_v9, 2  ;;  %v2086_v31 = vsel %vm861_vm7, %v2084_v3, %v8047_v63  ;;  %v8707_v54 = vld [vmem:[#allocation60_spill] sm:$0xff]  ;;  %v8710_v44 = vld [vmem:[#allocation62_spill] sm:$0xff] }
 0x17a   : > { %v6487_v60 = vmul.f32 %v6091_v32, %v8705_v38  ;;  %v2332_v12 = vmul.f32 %v6449_v45, %v8707_v54  ;;  %v6493_v61 = vmul.f32 %v6091_v32, %v8707_v54  ;;  %v6495_v8 = vadd.f32 %v3295_v23, %v3253_v1  ;;  %v8727_v54 = vld [vmem:[#allocation77_spill] sm:$0xff] }
 0x17b   : > { %v2042_v57 = vadd.f32 %v2022_v58, %v1978_v11  ;;  %v2396_v43 = vmul.f32 %v6449_v45, %v8710_v44  ;;  %v6501_v3 = vmul.f32 %v6091_v32, %v8710_v44  ;;  %v2296_v20 = vrot.slane %v2268_v34, 3  ;;  %v8712_v34 = vld [vmem:[#allocation64_spill] sm:$0xff]  ;;  %v8740_v38 = vld [vmem:[#allocation21_spill] sm:$0xff] }
 0x17c   : > { %8706 = vst [vmem:[#allocation76_spill] sm:$0xff] %v6487_v60  ;;  %8708 = vst [vmem:[#allocation79_spill] sm:$0xff] %v6493_v61  ;;  %v3332_v62 = vsel %vm3322_vm8, %v6495_v8, 0.0  ;;  %v2170_v23 = vsel %vm536_vm2, %v2168_v49, %v8051_v7  ;;  %v2234_v58 = vsel %vm601_vm3, %v2232_v52, %v8050_v39  ;;  %v2360_v11 = vrot.slane %v2332_v12, 4  ;;  %v8715_v52 = vld [vmem:[#allocation67_spill] sm:$0xff]  ;;  %v8718_v7 = vld [vmem:[#allocation70_spill] sm:$0xff] }
 0x17d   : > { %8709 = vst [vmem:[#allocation80_spill] sm:$0xff] %v6495_v8  ;;  %8711 = vst [vmem:[#allocation94_spill] sm:$0xff] %v6501_v3  ;;  %v2106_v4 = vadd.f32 %v2086_v31, %v2042_v57  ;;  %3333 = vadd.xlane.f32.xlu1 %v3332_v62  ;;  %v2460_v29 = vmul.f32 %v6449_v45, %v8712_v34  ;;  %v2424_v8 = vrot.slane %v2396_v43, 5  ;;  %v6521_v57 = vld [vmem:[%s4401_s23 + $0xa8] sm:$0xff]  ;;  %v6526_v39 = vld [vmem:[%s4401_s23 + $0xb0] sm:$0xff]  ;;  %v8722_v45 = vrot.slane %v6487_v60, 3 }
 0x17e   : > { %v6518_v49 = vmul.f32 %v6091_v32, %v8712_v34  ;;  %8714 = vst [vmem:[#allocation97_spill] sm:$0xff] %v6521_v57  ;;  %v2544_v62 = vmul.f32 %v6521_v57, %v8715_v52  ;;  %8716 = vst [vmem:[#allocation82_spill] sm:$0xff] %v6526_v39  ;;  %v6530_v12 = vmul.f32 %v6526_v39, %v8715_v52  ;;  %v8720_v31 = vld [vmem:[#allocation73_spill] sm:$0xff]  ;;  %v8723_v52 = vrot.slane %v6493_v61, 4  ;;  %v8724_v32 = vld [vmem:[#allocation74_spill] sm:$0xff] }
 0x17f   : > { %v2126_v13 = vadd.f32 %v2118_v47, %v2106_v4  ;;  %v2608_v47 = vmul.f32 %v6521_v57, %v8718_v7  ;;  %v6536_v43 = vmul.f32 %v6526_v39, %v8718_v7  ;;  %v2672_v63 = vmul.f32 %v6521_v57, %v8720_v31 }
 0x180   : > { %8713 = vst [vmem:[#allocation96_spill] sm:$0xff] %v6518_v49  ;;  %8717 = vst [vmem:[#allocation98_spill] sm:$0xff] %v6530_v12  ;;  %v6542_v1 = vmul.f32 %v6526_v39, %v8720_v31  ;;  %v2298_v9 = vsel %vm666_vm4, %v2296_v20, %v8722_v45  ;;  %v2362_v48 = vsel %vm731_vm5, %v2360_v11, %v8723_v52  ;;  %v8726_v0 = vrot.slane %v6501_v3, 5 }
 0x181   : > { %8719 = vst [vmem:[#allocation99_spill] sm:$0xff] %v6536_v43  ;;  %v2190_v4 = vadd.f32 %v2170_v23, %v2126_v13  ;;  %v2736_v7 = vmul.f32 %v6521_v57, %v8724_v32  ;;  %v6554_v13 = vmul.f32 %v6526_v39, %v8724_v32  ;;  %v2488_v34 = vrot.slane %v2460_v29, 6 }
 0x182   : > { %8721 = vst [vmem:[#allocation100_spill] sm:$0xff] %v6542_v1  ;;  %v2426_v31 = vsel %vm796_vm6, %v2424_v8, %v8726_v0  ;;  %v8071_v45 = vrot.slane %v6518_v49, 6  ;;  %v2572_v20 = vrot.slane %v2544_v62, 1  ;;  %v8074_v61 = vrot.slane %v6530_v12, 1  ;;  %v8729_v8 = vld [vmem:[#allocation78_spill] sm:$0xff]  ;;  %v8734_v12 = vld [vmem:[#allocation3_spill] sm:$0xff] }
 0x183   : > { %8725 = vst [vmem:[#allocation85_spill] sm:$0xff] %v6554_v13  ;;  %v2254_v23 = vadd.f32 %v2234_v58, %v2190_v4  ;;  %v2636_v11 = vrot.slane %v2608_v47, 2  ;;  %v8077_v52 = vrot.slane %v6536_v43, 2  ;;  %v2700_v44 = vrot.slane %v2672_v63, 3  ;;  %v4047_v43 = vld [vmem:[%s4401_s23 + $0x38] sm:$0xff] }
 0x184   : > { %v2800_v58 = vmul.f32 %v6521_v57, %v8727_v54  ;;  %v2764_v4 = vrot.slane %v2736_v7, 4  ;;  %v6568_v29 = vmul.f32 %v6526_v39, %v8727_v54  ;;  %v2864_v62 = vmul.f32 %v6521_v57, %v8729_v8 }
 0x185   : > { %v2318_v60 = vadd.f32 %v2298_v9, %v2254_v23  ;;  %v6574_v63 = vmul.f32 %v6526_v39, %v8729_v8  ;;  %v6577_v9 = vld [vmem:[%s4401_s23 + $0xc0] sm:$0xff]  ;;  %v2490_v7 = vsel %vm861_vm7, %v2488_v34, %v8071_v45  ;;  %v2574_v32 = vsel %vm536_vm2, %v2572_v20, %v8074_v61 }
 0x186   : > { %8728 = vst [vmem:[#allocation87_spill] sm:$0xff] %v6568_v29  ;;  %8730 = vst [vmem:[#allocation88_spill] sm:$0xff] %v6577_v9  ;;  %v8731_v23 = vld [vmem:[#allocation69_spill] sm:$0xff]  ;;  %v8732_v8 = vrot.slane %v6542_v1, 3  ;;  %v2828_v39 = vrot.slane %v2800_v58, 5  ;;  %v6595_v34 = vmul.f32 %v8648_v56, %v6577_v9  ;;  %v8733_v45 = vrot.slane %v6554_v13, 4 }
 0x187   : > { %v2382_v47 = vadd.f32 %v2362_v48, %v2318_v60  ;;  %v2522_v0 = vmul.f32 %v6521_v57, %v8731_v23  ;;  %v2638_v48 = vsel %vm601_vm3, %v2636_v11, %v8077_v52  ;;  %v2892_v61 = vrot.slane %v2864_v62, 6  ;;  %v8735_v52 = vld [vmem:[#allocation4_spill] sm:$0xff] }
 0x188   : > { %v2702_v54 = vsel %vm666_vm4, %v2700_v44, %v8732_v8  ;;  %v2766_v57 = vsel %vm731_vm5, %v2764_v4, %v8733_v45  ;;  %v497_v11 = vmul.f32 %v4047_v43, %v8734_v12  ;;  %v2948_v58 = vmul.f32 %v8655_v16, %v6577_v9  ;;  %v4048_v8 = vld [vmem:[%s4401_s23 + $0x40] sm:$0x3f] }
 0x189   : > { %v2446_v60 = vadd.f32 %v2426_v31, %v2382_v47  ;;  %v6604_v31 = vld [vmem:[%s4401_s23 + $0xc8] sm:$0xff]  ;;  %v520_v1 = vmul.f32 %v4048_v8, %v8735_v52  ;;  %v3012_v4 = vmul.f32 %v8656_v25, %v6577_v9  ;;  %v6620_v43 = vld [vmem:[%s7764_s2] ss:$0 sm:$0xff]  ;;  %v650_v13 = vmul.f32 %v4048_v8, %v8628_v21 }
 0x18a   : > { %v6613_v45 = vmul.f32 %v8655_v16, %v6604_v31  ;;  %8737 = vst [vmem:[#allocation92_spill] sm:$0xff] %v6620_v43  ;;  %v505_v62 = vadd.f32 %v6620_v43, %v497_v11  ;;  %v715_v56 = vmul.f32 %v4048_v8, %v8629_v37  ;;  %v8739_v16 = vrot.slane %v6568_v29, 5 }
 0x18b   : > { %v2510_v47 = vadd.f32 %v2490_v7, %v2446_v60  ;;  %v8738_v7 = vld [vmem:[#allocation5_spill] sm:$0xff]  ;;  %v550_v20 = vrot.slane %v520_v1, 1  ;;  %v780_v49 = vmul.f32 %v4048_v8, %v8630_v6  ;;  %v845_v3 = vmul.f32 %v4048_v8, %v4476_v15 }
 0x18c   : > { %8736 = vst [vmem:[#allocation91_spill] sm:$0xff] %v6613_v45  ;;  %v585_v60 = vmul.f32 %v4048_v8, %v8738_v7  ;;  %v2830_v52 = vsel %vm796_vm6, %v2828_v39, %v8739_v16  ;;  %v8741_v11 = vrot.slane %v8740_v38, 1  ;;  %v745_v1 = vrot.slane %v715_v56, 4 }
 0x18d   : > { %v2530_v44 = vadd.f32 %v2522_v0, %v2510_v47  ;;  %v680_v0 = vrot.slane %v650_v13, 3  ;;  %v6636_v47 = vmul.f32 %v8656_v25, %v6604_v31  ;;  %v3076_v16 = vmul.f32 %v8657_v28, %v6577_v9 }
 0x18e   : > { %v615_v23 = vrot.slane %v585_v60, 2  ;;  %v551_v7 = vsel %vm536_vm2, %v8741_v11, %v550_v20  ;;  %v8743_v60 = vrot.slane %v6128_v59, 2  ;;  %v8744_v38 = vrot.slane %v6574_v63, 6 }
 0x18f   : > { %v2594_v12 = vadd.f32 %v2574_v32, %v2530_v44  ;;  %8742 = vst [vmem:[#allocation101_spill] sm:$0xff] %v6636_v47  ;;  %v570_v39 = vadd.f32 %v551_v7, %v505_v62  ;;  %v8745_v56 = vrot.slane %v6141_v50, 3  ;;  %v810_v44 = vrot.slane %v780_v49, 5 }
 0x190   : > { %v616_v8 = vsel %vm601_vm3, %v8743_v60, %v615_v23  ;;  %v2894_v20 = vsel %vm861_vm7, %v2892_v61, %v8744_v38  ;;  %v2976_v11 = vrot.slane %v2948_v58, 1  ;;  %v8092_v25 = vrot.slane %v6613_v45, 1 }
 0x191   : > { %v2658_v32 = vadd.f32 %v2638_v48, %v2594_v12  ;;  %v681_v13 = vsel %vm666_vm4, %v8745_v56, %v680_v0  ;;  %v3040_v29 = vrot.slane %v3012_v4, 2  ;;  %v635_v15 = vadd.f32 %v616_v8, %v570_v39  ;;  %v6654_v48 = vld [vmem:[%s4401_s23 + $0x58] sm:$0x3f] }
 0x192   : > { %v8746_v59 = vrot.slane %v6152_v22, 4  ;;  %v875_v12 = vrot.slane %v845_v3, 6  ;;  %8747 = vst [vmem:[#allocation95_spill] sm:$0xff] %v6654_v48  ;;  %v930_v61 = vmul.f32 %v6654_v48, %v4482_v18  ;;  %v8091_v50 = vrot.slane %v6636_v47, 2 }
 0x193   : > { %v2722_v62 = vadd.f32 %v2702_v54, %v2658_v32  ;;  %v6661_v49 = vmul.f32 %v8657_v28, %v6604_v31  ;;  %v3104_v58 = vrot.slane %v3076_v16, 3  ;;  %v700_v4 = vadd.f32 %v681_v13, %v635_v15 }
 0x194   : > { %v746_v23 = vsel %vm731_vm5, %v8746_v59, %v745_v1  ;;  %v3140_v22 = vmul.f32 %v8661_v41, %v6577_v9  ;;  %v8749_v3 = vrot.slane %v6159_v2, 5  ;;  %v994_v0 = vmul.f32 %v6654_v48, %v4498_v24 }
 0x195   : > { %8748 = vst [vmem:[#allocation102_spill] sm:$0xff] %v6661_v49  ;;  %v2786_v54 = vadd.f32 %v2766_v57, %v2722_v62  ;;  %v2978_v1 = vsel %vm536_vm2, %v2976_v11, %v8092_v25  ;;  %v6675_v16 = vmul.f32 %v8661_v41, %v6604_v31  ;;  %v3204_v15 = vmul.f32 %v8665_v30, %v6577_v9 }
 0x196   : > { %v811_v7 = vsel %vm796_vm6, %v8749_v3, %v810_v44  ;;  %v765_v57 = vadd.f32 %v746_v23, %v700_v4  ;;  %v8751_v2 = vrot.slane %v6174_v27, 6  ;;  %v959_v8 = vrot.slane %v930_v61, 1  ;;  %v6692_v44 = vld [vmem:[%s4401_s23 + $0x50] sm:$0xff] }
 0x197   : > { %8750 = vst [vmem:[#allocation103_spill] sm:$0xff] %v6675_v16  ;;  %v2850_v39 = vadd.f32 %v2830_v52, %v2786_v54  ;;  %v1058_v32 = vmul.f32 %v6654_v48, %v4519_v35  ;;  %v3042_v38 = vsel %vm601_vm3, %v3040_v29, %v8091_v50  ;;  %v6689_v56 = vmul.f32 %v8665_v30, %v6604_v31  ;;  %v8765_v50 = vld [vmem:[#allocation30_spill] sm:$0xff] }
 0x198   : > { %v876_v60 = vsel %vm861_vm7, %v8751_v2, %v875_v12  ;;  %v830_v13 = vadd.f32 %v811_v7, %v765_v57  ;;  %v907_v27 = vmul.f32 %v6692_v44, %v4479_v17  ;;  %v8090_v11 = vrot.slane %v6661_v49, 3 }
 0x199   : > { %8752 = vst [vmem:[#allocation104_spill] sm:$0xff] %v6689_v56  ;;  %v2914_v52 = vadd.f32 %v2894_v20, %v2850_v39  ;;  %v1023_v62 = vrot.slane %v994_v0, 2  ;;  %v1122_v59 = vmul.f32 %v6654_v48, %v4526_v53  ;;  %v3168_v23 = vrot.slane %v3140_v22, 4 }
 0x19a   : > { %v8089_v29 = vrot.slane %v6675_v16, 4  ;;  %v895_v12 = vadd.f32 %v876_v60, %v830_v13  ;;  %v1186_v61 = vmul.f32 %v6654_v48, %v4542_v5  ;;  %v3232_v54 = vrot.slane %v3204_v15, 5 }
 0x19b   : > { %v2934_v4 = vadd.f32 %v6595_v34, %v2914_v52  ;;  %v8753_v3 = vrot.slane %v6193_v42, 1  ;;  %v1087_v7 = vrot.slane %v1058_v32, 3  ;;  %v8093_v0 = vrot.slane %v6689_v56, 5  ;;  %v8785_v56 = vld [vmem:[#allocation57_spill] sm:$0xff] }
 0x19c   : > { %v3268_v22 = vmul.f32 %v8673_v36, %v6577_v9  ;;  %v6711_v57 = vmul.f32 %v8673_v36, %v6604_v31  ;;  %v915_v39 = vadd.f32 %v907_v27, %v895_v12  ;;  %v8755_v34 = vrot.slane %v6202_v46, 2  ;;  %v8758_v12 = vld [vmem:[#allocation27_spill] sm:$0xff] }
 0x19d   : > { %v960_v20 = vsel %vm536_vm2, %v8753_v3, %v959_v8  ;;  %v2998_v2 = vadd.f32 %v2978_v1, %v2934_v4  ;;  %v1151_v42 = vrot.slane %v1122_v59, 4  ;;  %v1250_v60 = vmul.f32 %v6654_v48, %v4546_v10 }
 0x19e   : > { %8754 = vst [vmem:[#allocation105_spill] sm:$0xff] %v6711_v57  ;;  %v1024_v15 = vsel %vm601_vm3, %v8755_v34, %v1023_v62  ;;  %v3106_v8 = vsel %vm666_vm4, %v3104_v58, %v8090_v11  ;;  %v3170_v32 = vsel %vm731_vm5, %v3168_v23, %v8089_v29  ;;  %v979_v13 = vadd.f32 %v960_v20, %v915_v39  ;;  %v6728_v62 = vld [vmem:[%s4401_s23 + $0x70] sm:$0x3f]  ;;  %v8759_v23 = vld [vmem:[#allocation28_spill] sm:$0xff]  ;;  %v8760_v20 = vld [vmem:[#allocation29_spill] sm:$0xff] }
 0x19f   : > { %v1215_v52 = vrot.slane %v1186_v61, 5  ;;  %v3062_v27 = vadd.f32 %v3042_v38, %v2998_v2  ;;  %v8756_v1 = vrot.slane %v6217_v14, 3  ;;  %8757 = vst [vmem:[#allocation106_spill] sm:$0xff] %v6728_v62  ;;  %v1334_v59 = vmul.f32 %v6728_v62, %v4575_v40  ;;  %v8762_v29 = vld [vmem:[#allocation33_spill] sm:$0xff]  ;;  %v8763_v11 = vld [vmem:[#allocation35_spill] sm:$0xff] }
 0x1a0   : > { %v1398_v4 = vmul.f32 %v6728_v62, %v8758_v12  ;;  %v3296_v58 = vrot.slane %v3268_v22, 6  ;;  %v8101_v3 = vrot.slane %v6711_v57, 6  ;;  %v1043_v34 = vadd.f32 %v1024_v15, %v979_v13  ;;  %v8764_v13 = vld [vmem:[#allocation36_spill] sm:$0xff]  ;;  %v8771_v57 = vld [vmem:[#allocation37_spill] sm:$0xff] }
 0x1a1   : > { %v1088_v46 = vsel %vm666_vm4, %v8756_v1, %v1087_v7  ;;  %v1462_v61 = vmul.f32 %v6728_v62, %v8759_v23  ;;  %v3126_v38 = vadd.f32 %v3106_v8, %v3062_v27  ;;  %v3234_v14 = vsel %vm796_vm6, %v3232_v54, %v8093_v0 }
 0x1a2   : > { %v8761_v7 = vrot.slane %v8760_v20, 4  ;;  %v1279_v2 = vrot.slane %v1250_v60, 6  ;;  %v1107_v1 = vadd.f32 %v1088_v46, %v1043_v34  ;;  %v1526_v22 = vmul.f32 %v6728_v62, %v8762_v29 }
 0x1a3   : > { %v1590_v15 = vmul.f32 %v6728_v62, %v8763_v11  ;;  %v1654_v8 = vmul.f32 %v6728_v62, %v8764_v13  ;;  %v3190_v27 = vadd.f32 %v3170_v32, %v3126_v38  ;;  %v8766_v25 = vrot.slane %v8765_v50, 5  ;;  %v6759_v62 = vld [vmem:[%s4401_s23 + $0x68] sm:$0xff]  ;;  %v8769_v32 = vld [vmem:[#allocation32_spill] sm:$0xff] }
 0x1a4   : > { %v1152_v39 = vsel %vm731_vm5, %v8761_v7, %v1151_v42  ;;  %v1363_v20 = vrot.slane %v1334_v59, 1  ;;  %v1427_v0 = vrot.slane %v1398_v4, 2  ;;  %v3298_v42 = vsel %vm861_vm7, %v3296_v58, %v8101_v3  ;;  %v8767_v7 = vld [vmem:[#allocation31_spill] sm:$0xff] }
 0x1a5   : > { %v1216_v54 = vsel %vm796_vm6, %v8766_v25, %v1215_v52  ;;  %v1171_v60 = vadd.f32 %v1152_v39, %v1107_v1  ;;  %v1491_v46 = vrot.slane %v1462_v61, 3  ;;  %v3254_v34 = vadd.f32 %v3234_v14, %v3190_v27  ;;  %v8773_v14 = vld [vmem:[#allocation39_spill] sm:$0xff] }
 0x1a6   : > { %v8768_v48 = vrot.slane %v8767_v7, 6  ;;  %v1311_v50 = vmul.f32 %v6759_v62, %v8769_v32  ;;  %v1555_v52 = vrot.slane %v1526_v22, 4  ;;  %v1619_v59 = vrot.slane %v1590_v15, 5  ;;  %v8776_v22 = vld [vmem:[#allocation41_spill] sm:$0xff]  ;;  %v8780_v7 = vld [vmem:[#allocation46_spill] sm:$0xff] }
 0x1a7   : > { %v1235_v25 = vadd.f32 %v1216_v54, %v1171_v60  ;;  %v1683_v4 = vrot.slane %v1654_v8, 6  ;;  %v6763_v38 = vadd.f32 %v3298_v42, %v3254_v34  ;;  %v8772_v58 = vrot.slane %v8771_v57, 1  ;;  %v8778_v54 = vld [vmem:[#allocation42_spill] sm:$0xff]  ;;  %v8779_v42 = vld [vmem:[#allocation43_spill] sm:$0xff] }
 0x1a8   : > { %v1280_v9 = vsel %vm861_vm7, %v8768_v48, %v1279_v2  ;;  %v8774_v39 = vrot.slane %v8773_v14, 2  ;;  %v6772_v2 = vld [vmem:[%s4401_s23 + $0x88] sm:$0x3f]  ;;  %v8777_v15 = vrot.slane %v8776_v22, 3  ;;  %v8782_v14 = vld [vmem:[#allocation47_spill] sm:$0xff] }
 0x1a9   : > { %8770 = vst [vmem:[#allocation12_spill] sm:$0xff] %v6763_v38  ;;  %v1364_v61 = vsel %vm536_vm2, %v8772_v58, %v1363_v20  ;;  %8775 = vst [vmem:[#allocation107_spill] sm:$0xff] %v6772_v2  ;;  %v1738_v1 = vmul.f32 %v6772_v2, %v8669_v19  ;;  %v1299_v27 = vadd.f32 %v1280_v9, %v1235_v25  ;;  %v3335_v60 = vsel %vm3322_vm8, %v6763_v38, 0.0 }
 0x1aa   : > { %v1428_v48 = vsel %vm601_vm3, %v8774_v39, %v1427_v0  ;;  %v1492_v8 = vsel %vm666_vm4, %v8777_v15, %v1491_v46  ;;  %v1802_v57 = vmul.f32 %v6772_v2, %v8778_v54  ;;  %v1866_v20 = vmul.f32 %v6772_v2, %v8779_v42  ;;  %3336 = vadd.xlane.f32.xlu0 %v3335_v60  ;;  %v6798_v15 = vld [vmem:[%s4401_s23 + $0xa0] sm:$0x3f]  ;;  %v8786_v60 = vld [vmem:[#allocation58_spill] sm:$0xff] }
 0x1ab   : > { %v1930_v0 = vmul.f32 %v6772_v2, %v8682_v33  ;;  %v1994_v34 = vmul.f32 %v6772_v2, %v8686_v26  ;;  %v2058_v9 = vmul.f32 %v6772_v2, %v8688_v55  ;;  %v1319_v46 = vadd.f32 %v1311_v50, %v1299_v27  ;;  %8784 = vst [vmem:[#allocation108_spill] sm:$0xff] %v6798_v15  ;;  %v8787_v27 = vld [vmem:[#allocation60_spill] sm:$0xff]  ;;  %v6816_v33 = vld [vmem:[%s4401_s23 + $0x80] sm:$0xff] }
 0x1ac   : > { %v8781_v25 = vrot.slane %v8780_v7, 4  ;;  %v8783_v39 = vrot.slane %v8782_v14, 5  ;;  %v2142_v3 = vmul.f32 %v6798_v15, %v8694_v51  ;;  %v1767_v38 = vrot.slane %v1738_v1, 1  ;;  %v8788_v14 = vld [vmem:[#allocation62_spill] sm:$0xff]  ;;  %8792 = vst [vmem:[#allocation110_spill] sm:$0xff] %v6816_v33  ;;  %v8802_v54 = vld [vmem:[#allocation65_spill] sm:$0xff] }
 0x1ad   : > { %v2206_v2 = vmul.f32 %v6798_v15, %v8785_v56  ;;  %v2270_v50 = vmul.f32 %v6798_v15, %v8786_v60  ;;  %v1383_v7 = vadd.f32 %v1364_v61, %v1319_v46  ;;  %v1895_v55 = vrot.slane %v1866_v20, 3  ;;  %v8790_v56 = vld [vmem:[#allocation51_spill] sm:$0xff]  ;;  %v8794_v46 = vld [vmem:[#allocation56_spill] sm:$0xff] }
 0x1ae   : > { %v1556_v58 = vsel %vm731_vm5, %v8781_v25, %v1555_v52  ;;  %v1620_v22 = vsel %vm796_vm6, %v8783_v39, %v1619_v59  ;;  %v2334_v52 = vmul.f32 %v6798_v15, %v8787_v27  ;;  %v1831_v25 = vrot.slane %v1802_v57, 2  ;;  %v8789_v39 = vld [vmem:[#allocation64_spill] sm:$0xff] }
 0x1af   : > { %v2398_v59 = vmul.f32 %v6798_v15, %v8788_v14  ;;  %v2462_v16 = vmul.f32 %v6798_v15, %v8789_v39  ;;  %v1959_v51 = vrot.slane %v1930_v0, 4  ;;  %v2023_v1 = vrot.slane %v1994_v34, 5  ;;  %v8793_v27 = vld [vmem:[#allocation40_spill] sm:$0xff] }
 0x1b0   : > { %v2087_v26 = vrot.slane %v2058_v9, 6  ;;  %v1447_v49 = vadd.f32 %v1428_v48, %v1383_v7  ;;  %v8791_v47 = vrot.slane %v8790_v56, 6  ;;  %v1715_v61 = vmul.f32 %v6816_v33, %v8793_v27  ;;  %v8796_v9 = vld [vmem:[#allocation59_spill] sm:$0xff] }
 0x1b1   : > { %v2171_v57 = vrot.slane %v2142_v3, 1  ;;  %v8795_v14 = vrot.slane %v8794_v46, 1  ;;  %v2235_v15 = vrot.slane %v2206_v2, 2  ;;  %v2299_v20 = vrot.slane %v2270_v50, 3  ;;  %v8800_v27 = vld [vmem:[#allocation63_spill] sm:$0xff] }
 0x1b2   : > { %v1684_v60 = vsel %vm861_vm7, %v8791_v47, %v1683_v4  ;;  %v2363_v0 = vrot.slane %v2334_v52, 4  ;;  %v1511_v34 = vadd.f32 %v1492_v8, %v1447_v49  ;;  %v8797_v48 = vrot.slane %v8796_v9, 2  ;;  %v8798_v4 = vld [vmem:[#allocation61_spill] sm:$0xff]  ;;  %v8804_v49 = vld [vmem:[#allocation66_spill] sm:$0xff] }
 0x1b3   : > { %v1768_v42 = vsel %vm536_vm2, %v8795_v14, %v1767_v38  ;;  %v2427_v7 = vrot.slane %v2398_v59, 5  ;;  %v2491_v47 = vrot.slane %v2462_v16, 6  ;;  %v8799_v39 = vrot.slane %v8798_v4, 3  ;;  %v8806_v16 = vld [vmem:[#allocation55_spill] sm:$0xff] }
 0x1b4   : > { %v1832_v56 = vsel %vm601_vm3, %v8797_v48, %v1831_v25  ;;  %v8801_v3 = vrot.slane %v8800_v27, 4  ;;  %v8803_v38 = vrot.slane %v8802_v54, 5  ;;  %v8805_v8 = vrot.slane %v8804_v49, 6  ;;  %v8807_v25 = vld [vmem:[#allocation20_spill] sm:$0xff]  ;;  %v8811_v54 = vld [vmem:[#allocation67_spill] sm:$0xff] }
 0x1b5   : > { %v1896_v36 = vsel %vm666_vm4, %v8799_v39, %v1895_v55  ;;  %v1575_v52 = vadd.f32 %v1556_v58, %v1511_v34  ;;  %v6844_v14 = vmul.f32 %v8807_v25, %v8806_v16  ;;  %v8808_v55 = vld [vmem:[#allocation72_spill] sm:$0xff]  ;;  %v8816_v4 = vld [vmem:[#allocation79_spill] sm:$0xff] }
 0x1b6   : > { %v1960_v46 = vsel %vm731_vm5, %v8801_v3, %v1959_v51  ;;  %v6835_v2 = vsel %vm796_vm6, %v8803_v38, %v2023_v1  ;;  %v6840_v50 = vsel %vm861_vm7, %v8805_v8, %v2087_v26  ;;  %v8809_v59 = vrot.slane %v8808_v55, 1  ;;  %v8810_v51 = vld [vmem:[#allocation45_spill] sm:$0xff]  ;;  %v8812_v1 = vld [vmem:[#allocation75_spill] sm:$0xff]  ;;  %v8814_v26 = vld [vmem:[#allocation76_spill] sm:$0xff] }
 0x1b7   : > { %v6853_v39 = vmul.f32 %v8811_v54, %v8810_v51  ;;  %v8813_v9 = vrot.slane %v8812_v1, 2  ;;  %v8815_v58 = vrot.slane %v8814_v26, 3  ;;  %v8817_v3 = vrot.slane %v8816_v4, 4  ;;  %v8819_v49 = vld [vmem:[#allocation24_spill] sm:$0xff]  ;;  %v8820_v55 = vld [vmem:[#allocation94_spill] sm:$0xff] }
 0x1b8   : > { %v6849_v27 = vsel %vm536_vm2, %v8809_v59, %v2171_v57  ;;  %v8818_v57 = vld [vmem:[#allocation3_spill] sm:$0xff]  ;;  %v1639_v25 = vadd.f32 %v1620_v22, %v1575_v52  ;;  %v8821_v59 = vrot.slane %v8820_v55, 5  ;;  %v8827_v22 = vld [vmem:[#allocation73_spill] sm:$0xff]  ;;  %v781_v45 = vmul.f32 %v8819_v49, %v8630_v6 }
 0x1b9   : > { %v6858_v48 = vsel %vm601_vm3, %v8813_v9, %v2235_v15  ;;  %v6863_v34 = vsel %vm666_vm4, %v8815_v58, %v2299_v20  ;;  %v6868_v38 = vsel %vm731_vm5, %v8817_v3, %v2363_v0  ;;  %v498_v8 = vmul.f32 %v8819_v49, %v8818_v57  ;;  %v8822_v15 = vld [vmem:[#allocation96_spill] sm:$0xff]  ;;  %v8824_v20 = vld [vmem:[#allocation69_spill] sm:$0xff]  ;;  %v8825_v58 = vld [vmem:[#allocation82_spill] sm:$0xff] }
 0x1ba   : > { %v6875_v1 = vsel %vm796_vm6, %v8821_v59, %v2427_v7  ;;  %v8823_v9 = vrot.slane %v8822_v15, 6  ;;  %v6884_v4 = vmul.f32 %v8825_v58, %v8824_v20  ;;  %v8826_v0 = vld [vmem:[#allocation70_spill] sm:$0xff]  ;;  %v6892_v52 = vmul.f32 %v8827_v22, %v8810_v51  ;;  %v8829_v59 = vld [vmem:[#allocation4_spill] sm:$0xff]  ;;  %v8830_v57 = vld [vmem:[#allocation77_spill] sm:$0xff] }
 0x1bb   : > { %v6888_v3 = vmul.f32 %v8826_v0, %v8810_v51  ;;  %v8828_v7 = vld [vmem:[#allocation74_spill] sm:$0xff]  ;;  %v1703_v15 = vadd.f32 %v1684_v60, %v1639_v25  ;;  %v6903_v20 = vmul.f32 %v8830_v57, %v8810_v51  ;;  %v506_v22 = vadd.f32 %v6620_v43, %v498_v8  ;;  %v8832_v58 = vld [vmem:[#allocation5_spill] sm:$0xff] }
 0x1bc   : > { %v6880_v26 = vsel %vm861_vm7, %v8823_v9, %v2491_v47  ;;  %v6896_v55 = vmul.f32 %v8828_v7, %v8810_v51  ;;  %v521_v47 = vmul.f32 %v8819_v49, %v8829_v59  ;;  %v2575_v9 = vrot.slane %v6853_v39, 1  ;;  %v8831_v0 = vld [vmem:[#allocation78_spill] sm:$0xff] }
 0x1bd   : > { %v6907_v54 = vmul.f32 %v8831_v0, %v8810_v51  ;;  %v6912_v7 = vmul.f32 %v6692_v44, %v8829_v59  ;;  %v586_v60 = vmul.f32 %v8819_v49, %v8832_v58  ;;  %v1723_v25 = vadd.f32 %v1715_v61, %v1703_v15 }
 0x1be   : > { %v552_v16 = vrot.slane %v521_v47, 1  ;;  %v6918_v39 = vmul.f32 %v6692_v44, %v8832_v58  ;;  %v651_v57 = vmul.f32 %v8819_v49, %v8628_v21  ;;  %v6924_v51 = vmul.f32 %v6692_v44, %v8628_v21 }
 0x1bf   : > { %v8125_v8 = vrot.slane %v6912_v7, 1  ;;  %v617_v43 = vrot.slane %v586_v60, 2  ;;  %v716_v47 = vmul.f32 %v8819_v49, %v8629_v37  ;;  %v6931_v61 = vmul.f32 %v6692_v44, %v8629_v37  ;;  %v8834_v37 = vld [vmem:[#allocation83_spill] sm:$0xff] }
 0x1c0   : > { %8833 = vst [vmem:[#allocation111_spill] sm:$0xff] %v6924_v51  ;;  %v1787_v15 = vadd.f32 %v1768_v42, %v1723_v25  ;;  %v8127_v58 = vrot.slane %v6918_v39, 2  ;;  %v682_v59 = vrot.slane %v651_v57, 3  ;;  %v8126_v0 = vrot.slane %v6924_v51, 3 }
 0x1c1   : > { %v554_v21 = vsel %vm536_vm2, %v552_v16, %v8125_v8  ;;  %v747_v19 = vrot.slane %v716_v47, 4  ;;  %v6943_v41 = vmul.f32 %v8834_v37, %v6604_v31  ;;  %v6953_v25 = vmul.f32 %v6692_v44, %v8630_v6  ;;  %v8835_v8 = vld [vmem:[#allocation14_spill] sm:$0xff] }
 0x1c2   : > { %v1851_v30 = vadd.f32 %v1832_v56, %v1787_v15  ;;  %v571_v42 = vadd.f32 %v554_v21, %v506_v22  ;;  %v619_v57 = vsel %vm601_vm3, %v617_v43, %v8127_v58  ;;  %v684_v16 = vsel %vm666_vm4, %v682_v59, %v8126_v0  ;;  %v8838_v58 = vld [vmem:[#allocation34_spill] sm:$0xff] }
 0x1c3   : > { %v812_v47 = vrot.slane %v781_v45, 5  ;;  %v846_v56 = vmul.f32 %v8819_v49, %v8835_v8  ;;  %v8836_v21 = vrot.slane %v6931_v61, 4  ;;  %v6962_v43 = vmul.f32 %v6692_v44, %v8835_v8 }
 0x1c4   : > { %v1915_v15 = vadd.f32 %v1896_v36, %v1851_v30  ;;  %v636_v60 = vadd.f32 %v619_v57, %v571_v42  ;;  %v8129_v59 = vrot.slane %v6953_v25, 5  ;;  %v931_v51 = vmul.f32 %v8838_v58, %v4482_v18 }
 0x1c5   : > { %v749_v22 = vsel %vm731_vm5, %v747_v19, %v8836_v21  ;;  %8837 = vst [vmem:[#allocation112_spill] sm:$0xff] %v6962_v43  ;;  %v877_v0 = vrot.slane %v846_v56, 6  ;;  %v6969_v45 = vmul.f32 %v6759_v62, %v4482_v18  ;;  %v8132_v49 = vrot.slane %v6962_v43, 6 }
 0x1c6   : > { %v1979_v30 = vadd.f32 %v1960_v46, %v1915_v15  ;;  %v701_v36 = vadd.f32 %v684_v16, %v636_v60  ;;  %v995_v19 = vmul.f32 %v8838_v58, %v4498_v24  ;;  %v2639_v42 = vrot.slane %v6888_v3, 2 }
 0x1c7   : > { %8839 = vst [vmem:[#allocation113_spill] sm:$0xff] %v6969_v45  ;;  %v2703_v57 = vrot.slane %v6892_v52, 3  ;;  %v814_v56 = vsel %vm796_vm6, %v812_v47, %v8129_v59  ;;  %v6981_v21 = vmul.f32 %v6759_v62, %v4498_v24  ;;  %v908_v16 = vmul.f32 %v8838_v58, %v4479_v17 }
 0x1c8   : > { %v2043_v46 = vadd.f32 %v6835_v2, %v1979_v30  ;;  %v766_v60 = vadd.f32 %v749_v22, %v701_v36  ;;  %v961_v15 = vrot.slane %v931_v51, 1  ;;  %v879_v3 = vsel %vm861_vm7, %v877_v0, %v8132_v49  ;;  %v8842_v51 = vld [vmem:[#allocation98_spill] sm:$0xff] }
 0x1c9   : > { %8840 = vst [vmem:[#allocation52_spill] sm:$0xff] %v6981_v21  ;;  %v1059_v47 = vmul.f32 %v8838_v58, %v4519_v35  ;;  %v6994_v59 = vmul.f32 %v6759_v62, %v4519_v35  ;;  %v1025_v30 = vrot.slane %v995_v19, 2  ;;  %v8134_v36 = vrot.slane %v6981_v21, 2  ;;  %v8853_v21 = vld [vmem:[#allocation85_spill] sm:$0xff] }
 0x1ca   : > { %v2107_v2 = vadd.f32 %v6840_v50, %v2043_v46  ;;  %v831_v22 = vadd.f32 %v814_v56, %v766_v60  ;;  %v8843_v17 = vrot.slane %v8842_v51, 1  ;;  %v2767_v0 = vrot.slane %v6896_v55, 4 }
 0x1cb   : > { %8841 = vst [vmem:[#allocation16_spill] sm:$0xff] %v6994_v59  ;;  %v1123_v49 = vmul.f32 %v8838_v58, %v4526_v53  ;;  %v7008_v52 = vmul.f32 %v6759_v62, %v4526_v53  ;;  %v2831_v19 = vrot.slane %v6903_v20, 5  ;;  %v1187_v46 = vmul.f32 %v8838_v58, %v4542_v5 }
 0x1cc   : > { %v7001_v43 = vsel %vm536_vm2, %v8843_v17, %v2575_v9  ;;  %v2127_v50 = vadd.f32 %v6844_v14, %v2107_v2  ;;  %v896_v56 = vadd.f32 %v879_v3, %v831_v22  ;;  %v8844_v17 = vrot.slane %v6969_v45, 1 }
 0x1cd   : > { %v1089_v9 = vrot.slane %v1059_v47, 3  ;;  %v8138_v60 = vrot.slane %v6994_v59, 3  ;;  %v7020_v51 = vmul.f32 %v6759_v62, %v4542_v5  ;;  %v2895_v2 = vrot.slane %v6907_v54, 6 }
 0x1ce   : > { %v963_v55 = vsel %vm536_vm2, %v961_v15, %v8844_v17  ;;  %v2191_v14 = vadd.f32 %v6849_v27, %v2127_v50  ;;  %v916_v20 = vadd.f32 %v908_v16, %v896_v56  ;;  %v1027_v3 = vsel %vm601_vm3, %v1025_v30, %v8134_v36  ;;  %v7035_v17 = vld [vmem:[%s4401_s23 + $0xd0] sm:$0x3f]  ;;  %v8846_v30 = vld [vmem:[#allocation81_spill] sm:$0xff] }
 0x1cf   : > { %v1153_v22 = vrot.slane %v1123_v49, 4  ;;  %v1251_v15 = vmul.f32 %v8838_v58, %v4546_v10  ;;  %v7032_v47 = vmul.f32 %v6759_v62, %v4546_v10  ;;  %8845 = vst [vmem:[#allocation54_spill] sm:$0xff] %v7035_v17  ;;  %v1217_v16 = vrot.slane %v1187_v46, 5  ;;  %v8847_v58 = vld [vmem:[#allocation53_spill] sm:$0xff] }
 0x1d0   : > { %v2255_v27 = vadd.f32 %v6858_v48, %v2191_v14  ;;  %v980_v54 = vadd.f32 %v963_v55, %v916_v20  ;;  %v2950_v49 = vmul.f32 %v8846_v30, %v7035_v17  ;;  %v1091_v56 = vsel %vm666_vm4, %v1089_v9, %v8138_v60  ;;  %v8849_v55 = vld [vmem:[#allocation99_spill] sm:$0xff]  ;;  %v8851_v20 = vld [vmem:[#allocation100_spill] sm:$0xff] }
 0x1d1   : > { %v1335_v36 = vmul.f32 %v8847_v58, %v4575_v40  ;;  %v7048_v45 = vmul.f32 %v6816_v33, %v4575_v40  ;;  %v8850_v46 = vrot.slane %v8849_v55, 2  ;;  %v8852_v50 = vrot.slane %v8851_v20, 3  ;;  %v8856_v55 = vld [vmem:[#allocation87_spill] sm:$0xff] }
 0x1d2   : > { %v2319_v48 = vadd.f32 %v6863_v34, %v2255_v27  ;;  %v1044_v59 = vadd.f32 %v1027_v3, %v980_v54  ;;  %v8854_v9 = vrot.slane %v8853_v21, 4  ;;  %v8855_v5 = vrot.slane %v7008_v52, 4 }
 0x1d3   : > { %8848 = vst [vmem:[#allocation114_spill] sm:$0xff] %v7048_v45  ;;  %v2640_v14 = vsel %vm601_vm3, %v8850_v46, %v2639_v42  ;;  %v2704_v10 = vsel %vm666_vm4, %v8852_v50, %v2703_v57  ;;  %v1281_v53 = vrot.slane %v1251_v15, 6  ;;  %v8143_v34 = vrot.slane %v7032_v47, 6 }
 0x1d4   : > { %v2768_v60 = vsel %vm731_vm5, %v8854_v9, %v2767_v0  ;;  %v1155_v40 = vsel %vm731_vm5, %v1153_v22, %v8855_v5  ;;  %v2383_v27 = vadd.f32 %v6868_v38, %v2319_v48  ;;  %v8857_v42 = vrot.slane %v8856_v55, 5 }
 0x1d5   : > { %v1108_v57 = vadd.f32 %v1091_v56, %v1044_v59  ;;  %v8858_v3 = vrot.slane %v7020_v51, 5  ;;  %v1365_v0 = vrot.slane %v1335_v36, 1  ;;  %v8142_v54 = vrot.slane %v7048_v45, 1 }
 0x1d6   : > { %v7068_v46 = vsel %vm796_vm6, %v8857_v42, %v2831_v19  ;;  %v1399_v5 = vmul.f32 %v8847_v58, %v8758_v12  ;;  %v7078_v22 = vmul.f32 %v6816_v33, %v8758_v12  ;;  %v2447_v38 = vadd.f32 %v6875_v1, %v2383_v27 }
 0x1d7   : > { %v1219_v21 = vsel %vm796_vm6, %v1217_v16, %v8858_v3  ;;  %v1172_v15 = vadd.f32 %v1155_v40, %v1108_v57  ;;  %v1463_v59 = vmul.f32 %v8847_v58, %v8759_v23  ;;  %v7085_v19 = vmul.f32 %v6816_v33, %v8759_v23 }
 0x1d8   : > { %8859 = vst [vmem:[#allocation115_spill] sm:$0xff] %v7078_v22  ;;  %v8860_v36 = vrot.slane %v6574_v63, 6  ;;  %v2979_v50 = vrot.slane %v2950_v49, 1  ;;  %v1283_v56 = vsel %vm861_vm7, %v1281_v53, %v8143_v34  ;;  %v1312_v1 = vmul.f32 %v8847_v58, %v8769_v32  ;;  %v8861_v63 = vld [vmem:[#allocation84_spill] sm:$0xff] }
 0x1d9   : > { %v2511_v40 = vadd.f32 %v6880_v26, %v2447_v38  ;;  %v1236_v48 = vadd.f32 %v1219_v21, %v1172_v15  ;;  %v1527_v20 = vmul.f32 %v8847_v58, %v8762_v29  ;;  %v7100_v9 = vmul.f32 %v6816_v33, %v8762_v29 }
 0x1da   : > { %v2896_v16 = vsel %vm861_vm7, %v8860_v36, %v2895_v2  ;;  %v3014_v2 = vmul.f32 %v8861_v63, %v7035_v17  ;;  %v1367_v53 = vsel %vm536_vm2, %v1365_v0, %v8142_v54  ;;  %v1429_v49 = vrot.slane %v1399_v5, 2 }
 0x1db   : > { %v8151_v27 = vrot.slane %v7078_v22, 2  ;;  %v2531_v26 = vadd.f32 %v6884_v4, %v2511_v40  ;;  %v1300_v55 = vadd.f32 %v1283_v56, %v1236_v48  ;;  %v1493_v42 = vrot.slane %v1463_v59, 3  ;;  %v8863_v56 = vld [vmem:[#allocation89_spill] sm:$0xff]  ;;  %v8864_v48 = vld [vmem:[#allocation90_spill] sm:$0xff] }
 0x1dc   : > { %v8150_v57 = vrot.slane %v7085_v19, 3  ;;  %v1591_v3 = vmul.f32 %v8847_v58, %v8763_v11  ;;  %v7114_v21 = vmul.f32 %v6816_v33, %v8763_v11  ;;  %v1655_v38 = vmul.f32 %v8847_v58, %v8764_v13 }
 0x1dd   : > { %v7120_v0 = vmul.f32 %v6816_v33, %v8764_v13  ;;  %v2595_v4 = vadd.f32 %v7001_v43, %v2531_v26  ;;  %v1320_v5 = vadd.f32 %v1312_v1, %v1300_v55  ;;  %v1557_v15 = vrot.slane %v1527_v20, 4  ;;  %v8865_v20 = vld [vmem:[#allocation91_spill] sm:$0xff] }
 0x1de   : > { %v3078_v36 = vmul.f32 %v8657_v28, %v7035_v17  ;;  %v7128_v40 = vmul.f32 %v8863_v56, %v7035_v17  ;;  %v7132_v58 = vmul.f32 %v8864_v48, %v7035_v17  ;;  %v1431_v43 = vsel %vm601_vm3, %v1429_v49, %v8151_v27 }
 0x1df   : > { %8862 = vst [vmem:[#allocation116_spill] sm:$0xff] %v7120_v0  ;;  %v2659_v1 = vadd.f32 %v2640_v14, %v2595_v4  ;;  %v8866_v26 = vrot.slane %v8865_v20, 1  ;;  %v1384_v54 = vadd.f32 %v1367_v53, %v1320_v5  ;;  %v1495_v34 = vsel %vm666_vm4, %v1493_v42, %v8150_v57  ;;  %v8868_v4 = vld [vmem:[#allocation38_spill] sm:$0xff]  ;;  %v7151_v5 = vld [vmem:[%s4401_s23 + $0x98] sm:$0xff] }
 0x1e0   : > { %v1621_v59 = vrot.slane %v1591_v3, 5  ;;  %v8154_v13 = vrot.slane %v7114_v21, 5  ;;  %v1685_v11 = vrot.slane %v1655_v38, 6  ;;  %v8155_v45 = vrot.slane %v7120_v0, 6  ;;  %v8871_v3 = vld [vmem:[#allocation42_spill] sm:$0xff]  ;;  %v8874_v57 = vld [vmem:[#allocation40_spill] sm:$0xff] }
 0x1e1   : > { %v2980_v55 = vsel %vm536_vm2, %v8866_v26, %v2979_v50  ;;  %v2723_v29 = vadd.f32 %v2704_v10, %v2659_v1  ;;  %v3043_v22 = vrot.slane %v3014_v2, 2  ;;  %v1448_v33 = vadd.f32 %v1431_v43, %v1384_v54  ;;  %v8869_v50 = vld [vmem:[#allocation71_spill] sm:$0xff]  ;;  %v8877_v0 = vld [vmem:[#allocation44_spill] sm:$0xff] }
 0x1e2   : > { %v8867_v14 = vrot.slane %v7100_v9, 4  ;;  %v1739_v53 = vmul.f32 %v8869_v50, %v8868_v4  ;;  %v7155_v42 = vmul.f32 %v7151_v5, %v8868_v4  ;;  %v1803_v38 = vmul.f32 %v8869_v50, %v8871_v3 }
 0x1e3   : > { %v7161_v10 = vmul.f32 %v7151_v5, %v8871_v3  ;;  %v2787_v54 = vadd.f32 %v2768_v60, %v2723_v29  ;;  %v3107_v2 = vrot.slane %v3078_v36, 3  ;;  %v1512_v1 = vadd.f32 %v1495_v34, %v1448_v33  ;;  %v8875_v36 = vld [vmem:[#allocation43_spill] sm:$0xff] }
 0x1e4   : > { %v1559_v49 = vsel %vm731_vm5, %v1557_v15, %v8867_v14  ;;  %8870 = vst [vmem:[#allocation117_spill] sm:$0xff] %v7155_v42  ;;  %v8873_v15 = vld [vmem:[#allocation93_spill] sm:$0xff]  ;;  %v3171_v20 = vrot.slane %v7128_v40, 4  ;;  %v1623_v26 = vsel %vm796_vm6, %v1621_v59, %v8154_v13  ;;  %v1687_v14 = vsel %vm861_vm7, %v1685_v11, %v8155_v45 }
 0x1e5   : > { %8872 = vst [vmem:[#allocation68_spill] sm:$0xff] %v7161_v10  ;;  %v3270_v43 = vmul.f32 %v8873_v15, %v7035_v17  ;;  %v1716_v27 = vmul.f32 %v8869_v50, %v8874_v57  ;;  %v2851_v29 = vadd.f32 %v7068_v46, %v2787_v54  ;;  %v1576_v60 = vadd.f32 %v1559_v49, %v1512_v1  ;;  %v8878_v49 = vld [vmem:[#allocation101_spill] sm:$0xff] }
 0x1e6   : > { %v1867_v17 = vmul.f32 %v8869_v50, %v8875_v36  ;;  %v7179_v33 = vmul.f32 %v7151_v5, %v8875_v36  ;;  %v1769_v34 = vrot.slane %v1739_v53, 1  ;;  %v1833_v40 = vrot.slane %v1803_v38, 2  ;;  %v8880_v36 = vld [vmem:[#allocation102_spill] sm:$0xff] }
 0x1e7   : > { %v2915_v11 = vadd.f32 %v2896_v16, %v2851_v29  ;;  %v1640_v45 = vadd.f32 %v1623_v26, %v1576_v60  ;;  %v1931_v57 = vmul.f32 %v8869_v50, %v8877_v0  ;;  %v7187_v46 = vmul.f32 %v7151_v5, %v8877_v0 }
 0x1e8   : > { %8876 = vst [vmem:[#allocation17_spill] sm:$0xff] %v7179_v33  ;;  %v8879_v54 = vrot.slane %v8878_v49, 2  ;;  %v8881_v53 = vrot.slane %v8880_v36, 3  ;;  %v3235_v38 = vrot.slane %v7132_v58, 5  ;;  %v3299_v13 = vrot.slane %v3270_v43, 6  ;;  %v8884_v36 = vld [vmem:[#allocation48_spill] sm:$0xff] }
 0x1e9   : > { %v2935_v16 = vadd.f32 %v6943_v41, %v2915_v11  ;;  %v1704_v26 = vadd.f32 %v1687_v14, %v1640_v45  ;;  %v1897_v29 = vrot.slane %v1867_v17, 3  ;;  %v8882_v0 = vrot.slane %v7155_v42, 1  ;;  %v8885_v14 = vld [vmem:[#allocation49_spill] sm:$0xff] }
 0x1ea   : > { %v3044_v1 = vsel %vm601_vm3, %v8879_v54, %v3043_v22  ;;  %v3108_v59 = vsel %vm666_vm4, %v8881_v53, %v3107_v2  ;;  %v8883_v49 = vrot.slane %v7161_v10, 2  ;;  %v1995_v2 = vmul.f32 %v8869_v50, %v8884_v36  ;;  %v8888_v53 = vld [vmem:[#allocation82_spill] sm:$0xff]  ;;  %v8893_v10 = vld [vmem:[#allocation57_spill] sm:$0xff] }
 0x1eb   : > { %v1771_v3 = vsel %vm536_vm2, %v1769_v34, %v8882_v0  ;;  %v7208_v58 = vmul.f32 %v7151_v5, %v8884_v36  ;;  %v2999_v41 = vadd.f32 %v2980_v55, %v2935_v16  ;;  %v1724_v45 = vadd.f32 %v1716_v27, %v1704_v26  ;;  %v8886_v34 = vld [vmem:[#allocation50_spill] sm:$0xff]  ;;  %v8890_v55 = vld [vmem:[#allocation103_spill] sm:$0xff]  ;;  %v8898_v42 = vld [vmem:[#allocation105_spill] sm:$0xff] }
 0x1ec   : > { %v1835_v22 = vsel %vm601_vm3, %v1833_v40, %v8883_v49  ;;  %v1961_v17 = vrot.slane %v1931_v57, 4  ;;  %v2059_v11 = vmul.f32 %v8869_v50, %v8885_v14  ;;  %v7215_v0 = vmul.f32 %v7151_v5, %v8885_v14  ;;  %v8887_v40 = vld [vmem:[#allocation97_spill] sm:$0xff] }
 0x1ed   : > { %v2143_v54 = vmul.f32 %v8887_v40, %v8886_v34  ;;  %v7221_v49 = vmul.f32 %v8888_v53, %v8886_v34  ;;  %v3063_v60 = vadd.f32 %v3044_v1, %v2999_v41  ;;  %v8891_v27 = vrot.slane %v8890_v55, 4  ;;  %v8895_v41 = vld [vmem:[#allocation104_spill] sm:$0xff] }
 0x1ee   : > { %v1788_v16 = vadd.f32 %v1771_v3, %v1724_v45  ;;  %v8892_v26 = vrot.slane %v7179_v33, 3  ;;  %v2025_v43 = vrot.slane %v1995_v2, 5  ;;  %v2207_v36 = vmul.f32 %v8887_v40, %v8893_v10 }
 0x1ef   : > { %8889 = vst [vmem:[#allocation118_spill] sm:$0xff] %v7221_v49  ;;  %v3172_v57 = vsel %vm731_vm5, %v8891_v27, %v3171_v20  ;;  %v7234_v34 = vmul.f32 %v8888_v53, %v8893_v10  ;;  %v3127_v1 = vadd.f32 %v3108_v59, %v3063_v60  ;;  %v8896_v55 = vrot.slane %v8895_v41, 5  ;;  %v8900_v41 = vld [vmem:[#allocation58_spill] sm:$0xff] }
 0x1f0   : > { %v1899_v50 = vsel %vm666_vm4, %v1897_v29, %v8892_v26  ;;  %v1852_v3 = vadd.f32 %v1835_v22, %v1788_v16  ;;  %v8897_v45 = vrot.slane %v7187_v46, 4  ;;  %v2089_v2 = vrot.slane %v2059_v11, 6 }
 0x1f1   : > { %8894 = vst [vmem:[#allocation119_spill] sm:$0xff] %v7234_v34  ;;  %v3236_v20 = vsel %vm796_vm6, %v8896_v55, %v3235_v38  ;;  %v8169_v27 = vrot.slane %v7215_v0, 6  ;;  %v2173_v26 = vrot.slane %v2143_v54, 1  ;;  %v8168_v14 = vrot.slane %v7221_v49, 1 }
 0x1f2   : > { %v1963_v29 = vsel %vm731_vm5, %v1961_v17, %v8897_v45  ;;  %v3191_v33 = vadd.f32 %v3172_v57, %v3127_v1  ;;  %v8899_v10 = vrot.slane %v8898_v42, 6  ;;  %v1916_v60 = vadd.f32 %v1899_v50, %v1852_v3  ;;  %v8903_v42 = vld [vmem:[#allocation60_spill] sm:$0xff]  ;;  %v8904_v50 = vld [vmem:[#allocation55_spill] sm:$0xff] }
 0x1f3   : > { %v2271_v38 = vmul.f32 %v8887_v40, %v8900_v41  ;;  %v8901_v22 = vrot.slane %v7208_v58, 5  ;;  %v2237_v17 = vrot.slane %v2207_v36, 2  ;;  %v8167_v11 = vrot.slane %v7234_v34, 2 }
 0x1f4   : > { %v3300_v59 = vsel %vm861_vm7, %v8899_v10, %v3299_v13  ;;  %v7255_v54 = vmul.f32 %v8888_v53, %v8900_v41  ;;  %v3255_v57 = vadd.f32 %v3236_v20, %v3191_v33  ;;  %v1980_v1 = vadd.f32 %v1963_v29, %v1916_v60  ;;  %v8913_v29 = vld [vmem:[#allocation70_spill] sm:$0xff] }
 0x1f5   : > { %v2027_v16 = vsel %vm796_vm6, %v2025_v43, %v8901_v22  ;;  %v2335_v13 = vmul.f32 %v8887_v40, %v8903_v42  ;;  %v2091_v10 = vsel %vm861_vm7, %v2089_v2, %v8169_v27  ;;  %v2120_v55 = vmul.f32 %v8887_v40, %v8904_v50  ;;  %v8906_v2 = vld [vmem:[#allocation62_spill] sm:$0xff] }
 0x1f6   : > { %8902 = vst [vmem:[#allocation120_spill] sm:$0xff] %v7255_v54  ;;  %v2175_v36 = vsel %vm536_vm2, %v2173_v26, %v8168_v14  ;;  %v7267_v43 = vadd.f32 %v3300_v59, %v3255_v57  ;;  %v2044_v3 = vadd.f32 %v2027_v16, %v1980_v1  ;;  %v2301_v45 = vrot.slane %v2271_v38, 3  ;;  %v8908_v16 = vld [vmem:[#allocation64_spill] sm:$0xff] }
 0x1f7   : > { %v7271_v33 = vmul.f32 %v8888_v53, %v8903_v42  ;;  %v2239_v20 = vsel %vm601_vm3, %v2237_v17, %v8167_v11  ;;  %v2399_v60 = vmul.f32 %v8887_v40, %v8906_v2  ;;  %v7281_v26 = vmul.f32 %v8888_v53, %v8906_v2  ;;  %v8910_v1 = vld [vmem:[#allocation88_spill] sm:$0xff]  ;;  %v8911_v11 = vld [vmem:[#allocation67_spill] sm:$0xff] }
 0x1f8   : > { %8905 = vst [vmem:[#allocation18_spill] sm:$0xff] %v7267_v43  ;;  %v3338_v59 = vsel %vm3322_vm8, %v7267_v43, 0.0  ;;  %v2108_v38 = vadd.f32 %v2091_v10, %v2044_v3  ;;  %v2365_v22 = vrot.slane %v2335_v13, 4  ;;  %v2463_v57 = vmul.f32 %v8887_v40, %v8908_v16  ;;  %v8915_v40 = vld [vmem:[#allocation73_spill] sm:$0xff] }
 0x1f9   : > { %8907 = vst [vmem:[#allocation121_spill] sm:$0xff] %v7281_v26  ;;  %3339 = vadd.xlane.f32.xlu1 %v3338_v59  ;;  %v7289_v17 = vmul.f32 %v8888_v53, %v8908_v16  ;;  %v2547_v14 = vmul.f32 %v8911_v11, %v8910_v1  ;;  %v7295_v27 = vmul.f32 %v8911_v11, %v6604_v31  ;;  %v8917_v59 = vrot.slane %v7255_v54, 3 }
 0x1fa   : > { %v2611_v43 = vmul.f32 %v8913_v29, %v8910_v1  ;;  %v2128_v10 = vadd.f32 %v2120_v55, %v2108_v38  ;;  %v7301_v13 = vmul.f32 %v8913_v29, %v6604_v31  ;;  %v2675_v3 = vmul.f32 %v8915_v40, %v8910_v1  ;;  %v8918_v29 = vld [vmem:[#allocation74_spill] sm:$0xff]  ;;  %v8921_v55 = vld [vmem:[#allocation77_spill] sm:$0xff] }
 0x1fb   : > { %8909 = vst [vmem:[#allocation122_spill] sm:$0xff] %v7289_v17  ;;  %8912 = vst [vmem:[#allocation123_spill] sm:$0xff] %v7295_v27  ;;  %v7307_v53 = vmul.f32 %v8915_v40, %v6604_v31  ;;  %v2303_v11 = vsel %vm666_vm4, %v2301_v45, %v8917_v59  ;;  %v2429_v34 = vrot.slane %v2399_v60, 5  ;;  %v2493_v2 = vrot.slane %v2463_v57, 6 }
 0x1fc   : > { %8914 = vst [vmem:[#allocation124_spill] sm:$0xff] %v7301_v13  ;;  %v2192_v38 = vadd.f32 %v2175_v36, %v2128_v10  ;;  %v2739_v49 = vmul.f32 %v8918_v29, %v8910_v1  ;;  %v7318_v42 = vmul.f32 %v8918_v29, %v6604_v31  ;;  %v2577_v50 = vrot.slane %v2547_v14, 1 }
 0x1fd   : > { %8916 = vst [vmem:[#allocation125_spill] sm:$0xff] %v7307_v53  ;;  %v2641_v45 = vrot.slane %v2611_v43, 2  ;;  %v2705_v16 = vrot.slane %v2675_v3, 3  ;;  %v8920_v57 = vrot.slane %v7271_v33, 4  ;;  %v2803_v29 = vmul.f32 %v8921_v55, %v8910_v1 }
 0x1fe   : > { %8919 = vst [vmem:[#allocation132_spill] sm:$0xff] %v7318_v42  ;;  %v2256_v59 = vadd.f32 %v2239_v20, %v2192_v38  ;;  %v7331_v40 = vmul.f32 %v8921_v55, %v6604_v31  ;;  %v2769_v54 = vrot.slane %v2739_v49, 4  ;;  %v8922_v20 = vrot.slane %v7281_v26, 5 }
 0x1ff   : > { %v2367_v10 = vsel %vm731_vm5, %v2365_v22, %v8920_v57  ;;  %v8923_v38 = vrot.slane %v7289_v17, 6  ;;  %v8924_v57 = vld [vmem:[#allocation69_spill] sm:$0xff]  ;;  %v8925_v60 = vrot.slane %v7295_v27, 1  ;;  %v8926_v49 = vrot.slane %v7301_v13, 2  ;;  %v8929_v17 = vld [vmem:[#allocation3_spill] sm:$0xff] }
 0x200   : > { %v2320_v14 = vadd.f32 %v2303_v11, %v2256_v59  ;;  %v2431_v3 = vsel %vm796_vm6, %v2429_v34, %v8922_v20  ;;  %v2524_v36 = vmul.f32 %v8924_v57, %v8910_v1  ;;  %v8927_v43 = vrot.slane %v7307_v53, 3  ;;  %v8928_v20 = vld [vmem:[#allocation78_spill] sm:$0xff]  ;;  %v8934_v57 = vld [vmem:[#allocation92_spill] sm:$0xff] }
 0x201   : > { %v2495_v22 = vsel %vm861_vm7, %v2493_v2, %v8923_v38  ;;  %v2579_v55 = vsel %vm536_vm2, %v2577_v50, %v8925_v60  ;;  %v2643_v59 = vsel %vm601_vm3, %v2641_v45, %v8926_v49  ;;  %v2867_v2 = vmul.f32 %v8928_v20, %v8910_v1  ;;  %v8930_v50 = vld [vmem:[#allocation4_spill] sm:$0xff]  ;;  %v8931_v60 = vld [vmem:[#allocation95_spill] sm:$0xff] }
 0x202   : > { %v2384_v11 = vadd.f32 %v2367_v10, %v2320_v14  ;;  %v2707_v34 = vsel %vm666_vm4, %v2705_v16, %v8927_v43  ;;  %v2833_v38 = vrot.slane %v2803_v29, 5  ;;  %v499_v27 = vmul.f32 %v6692_v44, %v8929_v17  ;;  %v8933_v43 = vld [vmem:[#allocation5_spill] sm:$0xff]  ;;  %v7368_v1 = vld [vmem:[%s4401_s23 + $0xd8] sm:$0xff]  ;;  %v8935_v17 = vld [vmem:[#allocation6_spill] sm:$0xff] }
 0x203   : > { %v523_v10 = vmul.f32 %v8931_v60, %v8930_v50  ;;  %v8932_v45 = vrot.slane %v7318_v42, 4  ;;  %v7363_v16 = vmul.f32 %v8928_v20, %v6604_v31  ;;  %v588_v29 = vmul.f32 %v8931_v60, %v8933_v43  ;;  %v7376_v42 = vld [vmem:[%s4401_s23 + $0xe0] sm:$0xff] }
 0x204   : > { %v2448_v14 = vadd.f32 %v2431_v3, %v2384_v11  ;;  %v507_v53 = vadd.f32 %v8934_v57, %v499_v27  ;;  %v653_v50 = vmul.f32 %v8931_v60, %v8935_v17  ;;  %v8936_v3 = vld [vmem:[#allocation7_spill] sm:$0xff]  ;;  %v783_v20 = vmul.f32 %v8931_v60, %v8630_v6 }
 0x205   : > { %v2771_v49 = vsel %vm731_vm5, %v2769_v54, %v8932_v45  ;;  %v555_v44 = vrot.slane %v523_v10, 1  ;;  %v718_v11 = vmul.f32 %v8931_v60, %v8936_v3  ;;  %v2897_v45 = vrot.slane %v2867_v2, 6 }
 0x206   : > { %v2512_v54 = vadd.f32 %v2495_v22, %v2448_v14  ;;  %v620_v31 = vrot.slane %v588_v29, 2  ;;  %v8937_v43 = vrot.slane %v6912_v7, 1  ;;  %v685_v27 = vrot.slane %v653_v50, 3  ;;  %v8939_v14 = vld [vmem:[#allocation111_spill] sm:$0xff] }
 0x207   : > { %v750_v57 = vrot.slane %v718_v11, 4  ;;  %v848_v10 = vmul.f32 %v8931_v60, %v8835_v8  ;;  %v2928_v3 = vmul.f32 %v8834_v37, %v7368_v1  ;;  %v8938_v22 = vrot.slane %v6918_v39, 2 }
 0x208   : > { %v556_v13 = vsel %vm536_vm2, %v8937_v43, %v555_v44  ;;  %v2532_v17 = vadd.f32 %v2524_v36, %v2512_v54  ;;  %v2951_v6 = vmul.f32 %v8846_v30, %v7368_v1  ;;  %v7394_v7 = vmul.f32 %v8846_v30, %v7376_v42  ;;  %v8943_v43 = vld [vmem:[#allocation106_spill] sm:$0xff] }
 0x209   : > { %v572_v26 = vadd.f32 %v556_v13, %v507_v53  ;;  %v621_v2 = vsel %vm601_vm3, %v8938_v22, %v620_v31  ;;  %v8940_v29 = vrot.slane %v8939_v14, 3  ;;  %v815_v36 = vrot.slane %v783_v20, 5 }
 0x20a   : > { %v2596_v60 = vadd.f32 %v2579_v55, %v2532_v17  ;;  %v8941_v44 = vrot.slane %v7331_v40, 5  ;;  %v2898_v39 = vrot.slane %v7363_v16, 6  ;;  %v3015_v50 = vmul.f32 %v8861_v63, %v7368_v1 }
 0x20b   : > { %v686_v8 = vsel %vm666_vm4, %v8940_v29, %v685_v27  ;;  %v637_v53 = vadd.f32 %v621_v2, %v572_v26  ;;  %v8942_v11 = vrot.slane %v6931_v61, 4  ;;  %v880_v31 = vrot.slane %v848_v10, 6  ;;  %v8945_v29 = vld [vmem:[#allocation112_spill] sm:$0xff] }
 0x20c   : > { %v2835_v13 = vsel %vm796_vm6, %v2833_v38, %v8941_v44  ;;  %v933_v27 = vmul.f32 %v8943_v43, %v4482_v18  ;;  %v2660_v20 = vadd.f32 %v2643_v59, %v2596_v60  ;;  %v7412_v55 = vmul.f32 %v8861_v63, %v7376_v42 }
 0x20d   : > { %v751_v54 = vsel %vm731_vm5, %v8942_v11, %v750_v57  ;;  %v3079_v38 = vmul.f32 %v8657_v28, %v7368_v1  ;;  %v702_v26 = vadd.f32 %v686_v8, %v637_v53  ;;  %v2981_v17 = vrot.slane %v2951_v6, 1  ;;  %v8947_v53 = vld [vmem:[#allocation15_spill] sm:$0xff] }
 0x20e   : > { %v2982_v22 = vrot.slane %v7394_v7, 1  ;;  %v8944_v61 = vrot.slane %v6953_v25, 5  ;;  %v997_v10 = vmul.f32 %v8943_v43, %v4498_v24  ;;  %v2724_v18 = vadd.f32 %v2707_v34, %v2660_v20  ;;  %v8948_v20 = vld [vmem:[#allocation19_spill] sm:$0xff] }
 0x20f   : > { %v2899_v59 = vsel %vm861_vm7, %v2897_v45, %v2898_v39  ;;  %v7427_v2 = vmul.f32 %v8657_v28, %v7376_v42  ;;  %v767_v14 = vadd.f32 %v751_v54, %v702_v26  ;;  %v3045_v6 = vrot.slane %v3015_v50, 2 }
 0x210   : > { %v816_v57 = vsel %vm796_vm6, %v8944_v61, %v815_v36  ;;  %v8946_v8 = vrot.slane %v8945_v29, 6  ;;  %v964_v60 = vrot.slane %v933_v27, 1  ;;  %v1061_v36 = vmul.f32 %v8943_v43, %v4519_v35  ;;  %v8949_v61 = vld [vmem:[#allocation113_spill] sm:$0xff] }
 0x211   : > { %v2788_v24 = vadd.f32 %v2771_v49, %v2724_v18  ;;  %v8189_v34 = vrot.slane %v7412_v55, 2  ;;  %v832_v44 = vadd.f32 %v816_v57, %v767_v14  ;;  %v909_v45 = vmul.f32 %v6759_v62, %v8947_v53  ;;  %v8954_v53 = vld [vmem:[#allocation23_spill] sm:$0xff] }
 0x212   : > { %v881_v25 = vsel %vm861_vm7, %v8946_v8, %v880_v31  ;;  %v2983_v11 = vsel %vm536_vm2, %v2981_v17, %v2982_v22  ;;  %v3109_v50 = vrot.slane %v3079_v38, 3  ;;  %v1028_v54 = vrot.slane %v997_v10, 2  ;;  %v8951_v10 = vld [vmem:[#allocation22_spill] sm:$0xff] }
 0x213   : > { %v1125_v31 = vmul.f32 %v8943_v43, %v8948_v20  ;;  %v2852_v27 = vadd.f32 %v2835_v13, %v2788_v24  ;;  %v3143_v35 = vmul.f32 %v8863_v56, %v7368_v1  ;;  %v7446_v49 = vmul.f32 %v8863_v56, %v7376_v42  ;;  %v8952_v24 = vld [vmem:[#allocation52_spill] sm:$0xff] }
 0x214   : > { %v897_v26 = vadd.f32 %v881_v25, %v832_v44  ;;  %v3110_v62 = vrot.slane %v7427_v2, 3  ;;  %v8950_v57 = vrot.slane %v8949_v61, 1  ;;  %v1092_v38 = vrot.slane %v1061_v36, 3 }
 0x215   : > { %v1189_v18 = vmul.f32 %v8943_v43, %v8951_v10  ;;  %v2916_v14 = vadd.f32 %v2899_v59, %v2852_v27  ;;  %v3047_v13 = vsel %vm601_vm3, %v3045_v6, %v8189_v34  ;;  %v3207_v29 = vmul.f32 %v8864_v48, %v7368_v1 }
 0x216   : > { %v965_v17 = vsel %vm536_vm2, %v8950_v57, %v964_v60  ;;  %v917_v8 = vadd.f32 %v909_v45, %v897_v26  ;;  %v7461_v25 = vmul.f32 %v8864_v48, %v7376_v42  ;;  %v8953_v44 = vrot.slane %v8952_v24, 2  ;;  %v8955_v57 = vld [vmem:[#allocation16_spill] sm:$0xff] }
 0x217   : > { %v1156_v36 = vrot.slane %v1125_v31, 4  ;;  %v1253_v59 = vmul.f32 %v8943_v43, %v8954_v53  ;;  %v2936_v20 = vadd.f32 %v2928_v3, %v2916_v14  ;;  %v3173_v27 = vrot.slane %v3143_v35, 4  ;;  %v8959_v53 = vld [vmem:[#allocation107_spill] sm:$0xff] }
 0x218   : > { %v1029_v60 = vsel %vm601_vm3, %v8953_v44, %v1028_v54  ;;  %v3174_v6 = vrot.slane %v7446_v49, 4  ;;  %v981_v61 = vadd.f32 %v965_v17, %v917_v8  ;;  %v3271_v45 = vmul.f32 %v8873_v15, %v7368_v1  ;;  %v8958_v44 = vld [vmem:[#allocation26_spill] sm:$0xff] }
 0x219   : > { %v7473_v26 = vmul.f32 %v8873_v15, %v7376_v42  ;;  %v8956_v10 = vrot.slane %v8955_v57, 3  ;;  %v1220_v31 = vrot.slane %v1189_v18, 5  ;;  %v3000_v24 = vadd.f32 %v2983_v11, %v2936_v20 }
 0x21a   : > { %v3111_v3 = vsel %vm666_vm4, %v3109_v50, %v3110_v62  ;;  %v3237_v43 = vrot.slane %v3207_v29, 5  ;;  %v1045_v35 = vadd.f32 %v1029_v60, %v981_v61  ;;  %v3238_v17 = vrot.slane %v7461_v25, 5 }
 0x21b   : > { %v1093_v54 = vsel %vm666_vm4, %v8956_v10, %v1092_v38  ;;  %v8957_v1 = vrot.slane %v7008_v52, 4  ;;  %v1284_v8 = vrot.slane %v1253_v59, 6  ;;  %v1337_v57 = vmul.f32 %v8959_v53, %v8958_v44 }
 0x21c   : > { %v3064_v34 = vadd.f32 %v3047_v13, %v3000_v24  ;;  %v3175_v11 = vsel %vm731_vm5, %v3173_v27, %v3174_v6  ;;  %v1109_v38 = vadd.f32 %v1093_v54, %v1045_v35  ;;  %v3301_v18 = vrot.slane %v3271_v45, 6  ;;  %v8962_v54 = vld [vmem:[#allocation110_spill] sm:$0xff]  ;;  %v8963_v24 = vld [vmem:[#allocation33_spill] sm:$0xff] }
 0x21d   : > { %v1157_v14 = vsel %vm731_vm5, %v8957_v1, %v1156_v36  ;;  %v3302_v50 = vrot.slane %v7473_v26, 6  ;;  %v8960_v29 = vrot.slane %v7020_v51, 5  ;;  %v1401_v52 = vmul.f32 %v8959_v53, %v8758_v12  ;;  %v8964_v35 = vld [vmem:[#allocation114_spill] sm:$0xff]  ;;  %v9030_v26 = vld [vmem:[#allocation12_spill] sm:$0xff] }
 0x21e   : > { %v3128_v36 = vadd.f32 %v3111_v3, %v3064_v34  ;;  %v1173_v59 = vadd.f32 %v1157_v14, %v1109_v38  ;;  %v3239_v13 = vsel %vm796_vm6, %v3237_v43, %v3238_v17  ;;  %v8961_v20 = vrot.slane %v7032_v47, 6 }
 0x21f   : > { %v1221_v60 = vsel %vm796_vm6, %v8960_v29, %v1220_v31  ;;  %v1368_v61 = vrot.slane %v1337_v57, 1  ;;  %v1465_v45 = vmul.f32 %v8959_v53, %v8759_v23  ;;  %v1313_v31 = vmul.f32 %v8962_v54, %v8769_v32  ;;  %v8972_v54 = vld [vmem:[#allocation108_spill] sm:$0xff] }
 0x220   : > { %v1285_v27 = vsel %vm861_vm7, %v8961_v20, %v1284_v8  ;;  %v3192_v51 = vadd.f32 %v3175_v11, %v3128_v36  ;;  %v1237_v10 = vadd.f32 %v1221_v60, %v1173_v59  ;;  %v3303_v12 = vsel %vm861_vm7, %v3301_v18, %v3302_v50  ;;  %v8966_v8 = vld [vmem:[#allocation35_spill] sm:$0xff]  ;;  %v8969_v60 = vld [vmem:[#allocation36_spill] sm:$0xff] }
 0x221   : > { %v1432_v34 = vrot.slane %v1401_v52, 2  ;;  %v1529_v3 = vmul.f32 %v8959_v53, %v8963_v24  ;;  %v8965_v1 = vrot.slane %v8964_v35, 1  ;;  %v1496_v23 = vrot.slane %v1465_v45, 3  ;;  %v8967_v11 = vld [vmem:[#allocation115_spill] sm:$0xff] }
 0x222   : > { %v3256_v47 = vadd.f32 %v3239_v13, %v3192_v51  ;;  %v1301_v43 = vadd.f32 %v1285_v27, %v1237_v10  ;;  %v1593_v44 = vmul.f32 %v8959_v53, %v8966_v8  ;;  %v8968_v38 = vrot.slane %v8967_v11, 2 }
 0x223   : > { %v1369_v14 = vsel %vm536_vm2, %v8965_v1, %v1368_v61  ;;  %v1560_v29 = vrot.slane %v1529_v3, 4  ;;  %v1657_v52 = vmul.f32 %v8959_v53, %v8969_v60  ;;  %v8970_v13 = vrot.slane %v7085_v19, 3  ;;  %v8974_v3 = vld [vmem:[#allocation42_spill] sm:$0xff] }
 0x224   : > { %v7516_v57 = vadd.f32 %v3303_v12, %v3256_v47  ;;  %v1321_v32 = vadd.f32 %v1313_v31, %v1301_v43  ;;  %v1433_v18 = vsel %vm601_vm3, %v8968_v38, %v1432_v34  ;;  %v1624_v27 = vrot.slane %v1593_v44, 5  ;;  %v3325_v12 = vpop.xlane.xlu0 %3324  ;;  %v8975_v43 = vld [vmem:[#allocation116_spill] sm:$0xff] }
 0x225   : > { %v1497_v20 = vsel %vm666_vm4, %v8970_v13, %v1496_v23  ;;  %v8971_v45 = vrot.slane %v7100_v9, 4  ;;  %v1688_v10 = vrot.slane %v1657_v52, 6  ;;  %v1741_v31 = vmul.f32 %v8972_v54, %v8868_v4  ;;  %v3331_v4 = vpop.xlane.xlu1 %3330  ;;  %v8979_v38 = vld [vmem:[#allocation44_spill] sm:$0xff] }
 0x226   : > { %v3341_v36 = vsel %vm3322_vm8, %v7516_v57, 0.0  ;;  %v1385_v59 = vadd.f32 %v1369_v14, %v1321_v32  ;;  %v8973_v34 = vrot.slane %v7114_v21, 5  ;;  %v1805_v19 = vmul.f32 %v8972_v54, %v8974_v3  ;;  %v8977_v14 = vld [vmem:[#allocation43_spill] sm:$0xff]  ;;  %v8978_v32 = vld [vmem:[#allocation40_spill] sm:$0xff]  ;;  %v8987_v3 = vld [vmem:[#allocation49_spill] sm:$0xff] }
 0x227   : > { %3342 = vadd.xlane.f32.xlu0 %v3341_v36  ;;  %v1561_v51 = vsel %vm731_vm5, %v8971_v45, %v1560_v29  ;;  %v8976_v35 = vrot.slane %v8975_v43, 6  ;;  %v1772_v1 = vrot.slane %v1741_v31, 1  ;;  %v1869_v23 = vmul.f32 %v8972_v54, %v8977_v14  ;;  %v8980_v29 = vld [vmem:[#allocation109_spill] sm:$0xff] }
 0x228   : > { %v1449_v61 = vadd.f32 %v1433_v18, %v1385_v59  ;;  %v1625_v24 = vsel %vm796_vm6, %v8973_v34, %v1624_v27  ;;  %v3348_v8 = vmul.f32 0.25, %v3325_v12  ;;  %v1717_v21 = vmul.f32 %v7151_v5, %v8978_v32  ;;  %v8981_v59 = vld [vmem:[#allocation117_spill] sm:$0xff] }
 0x229   : > { %v1689_v9 = vsel %vm861_vm7, %v8976_v35, %v1688_v10  ;;  %v1836_v11 = vrot.slane %v1805_v19, 2  ;;  %v1933_v18 = vmul.f32 %v8972_v54, %v8979_v38  ;;  %v3350_v36 = vmul.f32 0.25, %v3331_v4  ;;  %v8984_v10 = vld [vmem:[#allocation13_spill] sm:$0xff] }
 0x22a   : > { %v1513_v53 = vadd.f32 %v1497_v20, %v1449_v61  ;;  %v7548_v60 = vsub.f32 %v8980_v29, %v3348_v8  ;;  %v8982_v13 = vrot.slane %v8981_v59, 1  ;;  %v1900_v27 = vrot.slane %v1869_v23, 3  ;;  %v8983_v61 = vld [vmem:[#allocation48_spill] sm:$0xff] }
 0x22b   : > { %v1997_v45 = vmul.f32 %v8972_v54, %v8983_v61  ;;  %v7556_v5 = vsub.f32 %v8984_v10, %v3350_v36  ;;  %v2061_v19 = vmul.f32 %v8972_v54, %v8987_v3  ;;  %v8992_v29 = vrot.slane %v7208_v58, 5  ;;  %v8993_v36 = vld [vmem:[#allocation57_spill] sm:$0xff]  ;;  %v8995_v10 = vld [vmem:[#allocation55_spill] sm:$0xff] }
 0x22c   : > { %v1577_v47 = vadd.f32 %v1561_v51, %v1513_v53  ;;  %v1773_v20 = vsel %vm536_vm2, %v8982_v13, %v1772_v1  ;;  %v3364_v31 = vmul.f32 %v7548_v60, %v7548_v60  ;;  %v8985_v53 = vld [vmem:[#allocation68_spill] sm:$0xff] }
 0x22d   : > { %v8986_v12 = vrot.slane %v8985_v53, 2  ;;  %v3366_v35 = vmul.f32 %v7556_v5, %v7556_v5  ;;  %v2028_v23 = vrot.slane %v1997_v45, 5  ;;  %v2092_v32 = vrot.slane %v2061_v19, 6 }
 0x22e   : > { %v1641_v44 = vadd.f32 %v1625_v24, %v1577_v47  ;;  %v1964_v24 = vrot.slane %v1933_v18, 4  ;;  %v3372_v43 = vsel %vm3322_vm8, %v3364_v31, 0.0 }
 0x22f   : > { %v1837_v34 = vsel %vm601_vm3, %v8986_v12, %v1836_v11  ;;  %3373 = vadd.xlane.f32.xlu0 %v3372_v43  ;;  %v3378_v4 = vsel %vm3322_vm8, %v3366_v35, 0.0  ;;  %v8991_v11 = vld [vmem:[#allocation50_spill] sm:$0xff]  ;;  %v8996_v12 = vld [vmem:[#allocation60_spill] sm:$0xff] }
 0x230   : > { %v1705_v52 = vadd.f32 %v1689_v9, %v1641_v44  ;;  %v8988_v9 = vld [vmem:[#allocation17_spill] sm:$0xff]  ;;  %v8990_v44 = vrot.slane %v7187_v46, 4  ;;  %v8999_v43 = vld [vmem:[#allocation62_spill] sm:$0xff] }
 0x231   : > { %v8989_v1 = vrot.slane %v8988_v9, 3  ;;  %v9000_v9 = vld [vmem:[#allocation119_spill] sm:$0xff] }
 0x232   : > { %v1725_v51 = vadd.f32 %v1717_v21, %v1705_v52  ;;  %v1965_v54 = vsel %vm731_vm5, %v8990_v44, %v1964_v24  ;;  %v4058_v21 = vld [vmem:[%s4401_s23 + $0xb8] sm:$0x3f]  ;;  %v2029_v52 = vsel %vm796_vm6, %v8992_v29, %v2028_v23  ;;  %v8997_v24 = vld [vmem:[#allocation118_spill] sm:$0xff] }
 0x233   : > { %v1901_v14 = vsel %vm666_vm4, %v8989_v1, %v1900_v27  ;;  %v2145_v38 = vmul.f32 %v4058_v21, %v8991_v11  ;;  %v2209_v59 = vmul.f32 %v4058_v21, %v8993_v36  ;;  %3379 = vadd.xlane.f32.xlu0 %v3378_v4  ;;  %v2273_v61 = vmul.f32 %v4058_v21, %v8900_v41  ;;  %v9002_v23 = vld [vmem:[#allocation64_spill] sm:$0xff]  ;;  %v9006_v36 = vld [vmem:[#allocation54_spill] sm:$0xff] }
 0x234   : > { %v1789_v47 = vadd.f32 %v1773_v20, %v1725_v51  ;;  %v8994_v20 = vrot.slane %v7215_v0, 6  ;;  %v4059_v51 = vld [vmem:[%s4401_s23 + $0xb0] sm:$0xff]  ;;  %v2337_v58 = vmul.f32 %v4058_v21, %v8996_v12  ;;  %v8998_v3 = vrot.slane %v8997_v24, 1  ;;  %v9003_v44 = vld [vmem:[#allocation120_spill] sm:$0xff]  ;;  %v9013_v12 = vld [vmem:[#allocation73_spill] sm:$0xff] }
 0x235   : > { %v2176_v46 = vrot.slane %v2145_v38, 1  ;;  %v2121_v31 = vmul.f32 %v4059_v51, %v8995_v10  ;;  %v2240_v53 = vrot.slane %v2209_v59, 2  ;;  %v2401_v0 = vmul.f32 %v4058_v21, %v8999_v43  ;;  %v9007_v59 = vld [vmem:[#allocation67_spill] sm:$0xff]  ;;  %v9011_v10 = vld [vmem:[#allocation122_spill] sm:$0xff] }
 0x236   : > { %v1853_v8 = vadd.f32 %v1837_v34, %v1789_v47  ;;  %v2093_v27 = vsel %vm861_vm7, %v8994_v20, %v2092_v32  ;;  %v2304_v47 = vrot.slane %v2273_v61, 3  ;;  %v9001_v1 = vrot.slane %v9000_v9, 2  ;;  %v9010_v61 = vld [vmem:[#allocation70_spill] sm:$0xff]  ;;  %v9016_v9 = vld [vmem:[#allocation123_spill] sm:$0xff] }
 0x237   : > { %v2177_v19 = vsel %vm536_vm2, %v8998_v3, %v2176_v46  ;;  %v2432_v11 = vrot.slane %v2401_v0, 5  ;;  %v4060_v24 = vld [vmem:[%s4401_s23 + $0xc8] sm:$0xff]  ;;  %v9014_v3 = vld [vmem:[#allocation69_spill] sm:$0xff] }
 0x238   : > { %v1917_v18 = vadd.f32 %v1901_v14, %v1853_v8  ;;  %v2241_v41 = vsel %vm601_vm3, %v9001_v1, %v2240_v53  ;;  %v2368_v14 = vrot.slane %v2337_v58, 4  ;;  %v2465_v8 = vmul.f32 %v4058_v21, %v9002_v23  ;;  %v9015_v43 = vld [vmem:[#allocation74_spill] sm:$0xff]  ;;  %v9018_v23 = vld [vmem:[#allocation77_spill] sm:$0xff] }
 0x239   : > { %v2677_v58 = vmul.f32 %v9013_v12, %v9006_v36  ;;  %v2741_v0 = vmul.f32 %v9015_v43, %v9006_v36  ;;  %v9017_v1 = vrot.slane %v9016_v9, 1 }
 0x23a   : > { %v1981_v13 = vadd.f32 %v1965_v54, %v1917_v18  ;;  %v9004_v54 = vrot.slane %v9003_v44, 3  ;;  %v9005_v18 = vrot.slane %v7271_v33, 4  ;;  %v9019_v44 = vld [vmem:[#allocation124_spill] sm:$0xff] }
 0x23c   : > { %v2045_v45 = vadd.f32 %v2029_v52, %v1981_v13  ;;  %v2305_v32 = vsel %vm666_vm4, %v9004_v54, %v2304_v47  ;;  %v2369_v29 = vsel %vm731_vm5, %v9005_v18, %v2368_v14  ;;  %v2496_v52 = vrot.slane %v2465_v8, 6 }
 0x23d   : > { %v2549_v13 = vmul.f32 %v9007_v59, %v9006_v36  ;;  %v2708_v14 = vrot.slane %v2677_v58, 3  ;;  %v2805_v8 = vmul.f32 %v9018_v23, %v9006_v36  ;;  %v9020_v54 = vrot.slane %v9019_v44, 2  ;;  %v9022_v59 = vld [vmem:[#allocation125_spill] sm:$0xff]  ;;  %v3334_v44 = vpop.xlane.xlu1 %3333 }
 0x23e   : > { %v2109_v34 = vadd.f32 %v2093_v27, %v2045_v45  ;;  %v9008_v27 = vld [vmem:[#allocation121_spill] sm:$0xff]  ;;  %v2613_v45 = vmul.f32 %v9010_v61, %v9006_v36 }
 0x23f   : > { %v9009_v46 = vrot.slane %v9008_v27, 5  ;;  %v2580_v33 = vrot.slane %v2549_v13, 1  ;;  %v9023_v13 = vrot.slane %v9022_v59, 3  ;;  %v2836_v27 = vrot.slane %v2805_v8, 5  ;;  %v9028_v23 = vld [vmem:[#allocation25_spill] sm:$0xff] }
 0x240   : > { %v2129_v35 = vadd.f32 %v2121_v31, %v2109_v34  ;;  %v9012_v31 = vrot.slane %v9011_v10, 6  ;;  %v2644_v47 = vrot.slane %v2613_v45, 2 }
 0x241   : > { %v2433_v21 = vsel %vm796_vm6, %v9009_v46, %v2432_v11  ;;  %v2772_v11 = vrot.slane %v2741_v0, 4 }
 0x242   : > { %v2193_v4 = vadd.f32 %v2177_v19, %v2129_v35  ;;  %v2497_v53 = vsel %vm861_vm7, %v9012_v31, %v2496_v52  ;;  %v2525_v19 = vmul.f32 %v4060_v24, %v9014_v3 }
 0x244   : > { %v2257_v38 = vadd.f32 %v2241_v41, %v2193_v4  ;;  %v2581_v41 = vsel %vm536_vm2, %v9017_v1, %v2580_v33 }
 0x246   : > { %v2321_v20 = vadd.f32 %v2305_v32, %v2257_v38  ;;  %v2645_v32 = vsel %vm601_vm3, %v9020_v54, %v2644_v47  ;;  %v9021_v38 = vld [vmem:[#allocation78_spill] sm:$0xff] }
 0x247   : > { %v2869_v18 = vmul.f32 %v9021_v38, %v9006_v36 }
 0x248   : > { %v2385_v51 = vadd.f32 %v2369_v29, %v2321_v20  ;;  %v473_v29 = vld [vmem:[%s4401_s23 + $0xe8] sm:$0x3f]  ;;  %v2709_v20 = vsel %vm666_vm4, %v9023_v13, %v2708_v14 }
 0x249   : > { %v2953_v10 = vmul.f32 %v8846_v30, %v473_v29  ;;  %v3017_v33 = vmul.f32 %v8861_v63, %v473_v29  ;;  %v3081_v24 = vmul.f32 %v8657_v28, %v473_v29  ;;  %v3145_v47 = vmul.f32 %v8863_v56, %v473_v29 }
 0x24a   : > { %v2449_v34 = vadd.f32 %v2433_v21, %v2385_v51  ;;  %v9024_v21 = vld [vmem:[#allocation132_spill] sm:$0xff]  ;;  %v2900_v51 = vrot.slane %v2869_v18, 6  ;;  %v3209_v16 = vmul.f32 %v8864_v48, %v473_v29  ;;  %v3273_v9 = vmul.f32 %v8873_v15, %v473_v29 }
 0x24b   : > { %v9025_v61 = vrot.slane %v9024_v21, 4  ;;  %v3048_v30 = vrot.slane %v3017_v33, 2  ;;  %v3112_v43 = vrot.slane %v3081_v24, 3 }
 0x24c   : > { %v2513_v35 = vadd.f32 %v2497_v53, %v2449_v34  ;;  %v9026_v53 = vrot.slane %v7331_v40, 5  ;;  %v2901_v58 = vsel %vm861_vm7, %v2898_v39, %v2900_v51  ;;  %v2984_v34 = vrot.slane %v2953_v10, 1 }
 0x24d   : > { %v2773_v45 = vsel %vm731_vm5, %v9025_v61, %v2772_v11  ;;  %v9027_v39 = vrot.slane %v7412_v55, 2  ;;  %v3113_v56 = vsel %vm666_vm4, %v3110_v62, %v3112_v43  ;;  %v3240_v7 = vrot.slane %v3209_v16, 5  ;;  %v9029_v11 = vld [vmem:[#allocation80_spill] sm:$0xff] }
 0x24e   : > { %v2533_v4 = vadd.f32 %v2525_v19, %v2513_v35  ;;  %v2837_v36 = vsel %vm796_vm6, %v9026_v53, %v2836_v27  ;;  %v2929_v19 = vmul.f32 %v8834_v37, %v7376_v42  ;;  %v2985_v63 = vsel %vm536_vm2, %v2982_v22, %v2984_v34  ;;  %v3328_v37 = vpop.xlane.xlu0 %3327  ;;  %v9031_v27 = vld [vmem:[#allocation18_spill] sm:$0xff] }
 0x24f   : > { %v3049_v28 = vsel %vm601_vm3, %v9027_v39, %v3048_v30  ;;  %v3176_v35 = vrot.slane %v3145_v47, 4  ;;  %v3349_v22 = vmul.f32 0.25, %v3328_v37  ;;  %v3241_v14 = vsel %vm796_vm6, %v3238_v17, %v3240_v7 }
 0x250   : > { %v2597_v52 = vadd.f32 %v2581_v41, %v2533_v4  ;;  %v3304_v41 = vrot.slane %v3273_v9, 6  ;;  %v3351_v17 = vmul.f32 0.25, %v3334_v44 }
 0x251   : > { %v3177_v48 = vsel %vm731_vm5, %v3174_v6, %v3176_v35  ;;  %v7665_v8 = vsub.f32 %v9028_v23, %v3349_v22 }
 0x252   : > { %v2661_v46 = vadd.f32 %v2645_v32, %v2597_v52  ;;  %v3305_v2 = vsel %vm861_vm7, %v3302_v50, %v3304_v41  ;;  %v3337_v54 = vpop.xlane.xlu0 %3336  ;;  %v3359_v38 = vsub.f32 %v9029_v11, %v3351_v17 }
 0x253   : > { %v3365_v49 = vmul.f32 %v7665_v8, %v7665_v8  ;;  %v3352_v32 = vmul.f32 0.25, %v3337_v54 }
 0x254   : > { %v2725_v31 = vadd.f32 %v2709_v20, %v2661_v46  ;;  %v3367_v50 = vmul.f32 %v3359_v38, %v3359_v38 }
 0x255   : > { %v3375_v25 = vsel %vm3322_vm8, %v3365_v49, 0.0  ;;  %v3360_v18 = vsub.f32 %v9030_v26, %v3352_v32 }
 0x256   : > { %v2789_v12 = vadd.f32 %v2773_v45, %v2725_v31  ;;  %v3381_v52 = vsel %vm3322_vm8, %v3367_v50, 0.0 }
 0x257   : > { %v3368_v29 = vmul.f32 %v3360_v18, %v3360_v18 }
 0x258   : > { %v2853_v3 = vadd.f32 %v2837_v36, %v2789_v12 }
 0x259   : > { %v3384_v59 = vsel %vm3322_vm8, %v3368_v29, 0.0 }
 0x25a   : > { %v2917_v40 = vadd.f32 %v2901_v58, %v2853_v3  ;;  %3385 = vadd.xlane.f32.xlu0 %v3384_v59 }
 0x25c   : > { %v2937_v0 = vadd.f32 %v2929_v19, %v2917_v40 }
 0x25e   : > { %v3001_v42 = vadd.f32 %v2985_v63, %v2937_v0 }
 0x260   : > { %v3065_v1 = vadd.f32 %v3049_v28, %v3001_v42 }
 0x262   : > { %v3129_v55 = vadd.f32 %v3113_v56, %v3065_v1  ;;  %v3428_v1 = vld [vmem:[%s7765_s3] sm:$0xf] }
 0x263   : > { %3925 = vmatprep.subr.msk.mxu0 %vm731_vm5, %v3428_v1 }
 0x264   : > { %v3193_v15 = vadd.f32 %v3177_v48, %v3129_v55  ;;  %3926 = vmatpush3.msk.msra.mxu0 %vm731_vm5, %v3428_v1 }
 0x266   : > { %v3257_v62 = vadd.f32 %v3241_v14, %v3193_v15 }
 0x268   : > { %v3321_v4 = vadd.f32 %v3305_v2, %v3257_v62 }
 0x26a   : > { %v3344_v6 = vsel %vm3322_vm8, %v3321_v4, 0.0 }
 0x26b   : > { %3345 = vadd.xlane.f32.xlu1 %v3344_v6 }
 0x26f   : > { %3376 = vadd.xlane.f32.xlu1 %v3375_v25 }
 0x273   : > { %3382 = vadd.xlane.f32.xlu1 %v3381_v52 }
 0x286   : > { %v3340_v13 = vpop.xlane.xlu1 %3339 }
 0x287   : > { %v3353_v20 = vmul.f32 0.25, %v3340_v13 }
 0x289   : > { %v3361_v46 = vsub.f32 %v9031_v27, %v3353_v20 }
 0x28b   : > { %v3369_v21 = vmul.f32 %v3361_v46, %v3361_v46 }
 0x28d   : > { %v3387_v61 = vsel %vm3322_vm8, %v3369_v21, 0.0 }
 0x28e   : > { %3388 = vadd.xlane.f32.xlu1 %v3387_v61 }
 0x2b4   : > { %v3343_v45 = vpop.xlane.xlu0 %3342 }
 0x2b5   : > { %v3354_v51 = vmul.f32 0.25, %v3343_v45 }
 0x2b7   : > { %v3362_v10 = vsub.f32 %v7516_v57, %v3354_v51  ;;  %v3608_v51 = vld [vmem:[%s7767_s5] sm:$0xff] }
 0x2b9   : > { %v3370_v31 = vmul.f32 %v3362_v10, %v3362_v10 }
 0x2bb   : > { %v3390_v53 = vsel %vm3322_vm8, %v3370_v31, 0.0 }
 0x2bc   : > { %3391 = vadd.xlane.f32.xlu0 %v3390_v53  ;;  %v3374_v36 = vpop.xlane.xlu0 %3373 }
 0x2bd   : > { %v3396_v12 = vmul.f32 0.25, %v3374_v36 }
 0x2bf   : > { %v3404_v19 = vadd.f32 1e-06, %v3396_v12 }
 0x2c0   : > { %v3380_v58 = vpop.xlane.xlu0 %3379 }
 0x2c1   : > { %v3398_v3 = vmul.f32 0.25, %v3380_v58  ;;  %4000 = vrsqrt.f32 %v3404_v19 }
 0x2c3   : > { %v3406_v43 = vadd.f32 1e-06, %v3398_v3 }
 0x2c5   : > { %4002 = vrsqrt.f32 %v3406_v43 }
 0x2cb   : > { %v4001_v37 = vpop.eup %4000 }
 0x2cc   : > { %v3420_v56 = vmul.f32 %v4001_v37, %v7548_v60 }
 0x2ce   : > { %3927 = vmatprep.mubr.msk.f32.mxu0 %vm3322_vm8, %v3420_v56 }
 0x2cf   : > { %v4003_v42 = vpop.eup %4002 }
 0x2d0   : > { %v3422_v48 = vmul.f32 %v4003_v42, %v7556_v5 }
 0x2e7   : > { %v3386_v0 = vpop.xlane.xlu0 %3385 }
 0x2e8   : > { %v3400_v28 = vmul.f32 0.25, %v3386_v0 }
 0x2ea   : > { %v3408_v9 = vadd.f32 1e-06, %v3400_v28 }
 0x2f8   : > { %v3346_v33 = vpop.xlane.xlu1 %3345 }
 0x2f9   : > { %v3355_v34 = vmul.f32 0.25, %v3346_v33 }
 0x2fb   : > { %v3363_v24 = vsub.f32 %v3321_v4, %v3355_v34 }
 0x2fc   : > { %v3377_v30 = vpop.xlane.xlu1 %3376 }
 0x2fd   : > { %v3371_v47 = vmul.f32 %v3363_v24, %v3363_v24  ;;  %v3397_v40 = vmul.f32 0.25, %v3377_v30 }
 0x2ff   : > { %v3393_v63 = vsel %vm3322_vm8, %v3371_v47, 0.0  ;;  %v3405_v57 = vadd.f32 1e-06, %v3397_v40 }
 0x300   : > { %3394 = vadd.xlane.f32.xlu1 %v3393_v63  ;;  %v3383_v16 = vpop.xlane.xlu1 %3382 }
 0x301   : > { %4004 = vrsqrt.f32 %v3405_v57  ;;  %v3399_v39 = vmul.f32 0.25, %v3383_v16 }
 0x303   : > { %v3407_v35 = vadd.f32 1e-06, %v3399_v39 }
 0x305   : > { %4006 = vrsqrt.f32 %v3407_v35 }
 0x306   : > { %4008 = vrsqrt.f32 %v3408_v9 }
 0x30b   : > { %v4005_v7 = vpop.eup %4004 }
 0x30c   : > { %v3421_v22 = vmul.f32 %v4005_v7, %v7665_v8 }
 0x30e   : > { %3928 = vmatmul.mubr.msk.f32.vlgmr.msra.gmra.mrb[0].mxu0 %vm3322_vm8, %v3421_v22 }
 0x30f   : > { %v4007_v41 = vpop.eup %4006  ;;  %3930 = vmatprep.mubr.msk.f32.mxu0 %vm3322_vm8, %v3422_v48 }
 0x310   : > { %v4009_v60 = vpop.eup %4008  ;;  %v3423_v55 = vmul.f32 %v4007_v41, %v3359_v38  ;;  %v7702_v38 = vld [vmem:[%s7766_s4] ss:$0 sm:$0xff] }
 0x311   : > { %v3424_v14 = vmul.f32 %v4009_v60, %v3360_v18 }
 0x312   : > { %3931 = vmatmul.mubr.msk.f32.gmra.mrb[2].mxu0 %vm3322_vm8, %v3423_v55 }
 0x313   : > { %3933 = vmatprep.mubr.msk.f32.mxu0 %vm3322_vm8, %v3424_v14 }
 0x31b   : > { %v3389_v15 = vpop.xlane.xlu1 %3388 }
 0x31c   : > { %v3401_v23 = vmul.f32 0.25, %v3389_v15 }
 0x31e   : > { %v3409_v2 = vadd.f32 1e-06, %v3401_v23 }
 0x320   : > { %4010 = vrsqrt.f32 %v3409_v2 }
 0x32a   : > { %v4011_v8 = vpop.eup %4010 }
 0x32b   : > { %v3425_v5 = vmul.f32 %v4011_v8, %v3361_v46 }
 0x32d   : > { %3934 = vmatmul.mubr.msk.f32.gmra.mrb[4].mxu0 %vm3322_vm8, %v3425_v5 }
 0x349   : > { %v3392_v62 = vpop.xlane.xlu0 %3391 }
 0x34a   : > { %v3402_v4 = vmul.f32 0.25, %v3392_v62 }
 0x34c   : > { %v3410_v49 = vadd.f32 1e-06, %v3402_v4 }
 0x34e   : > { %4012 = vrsqrt.f32 %v3410_v49 }
 0x358   : > { %v4013_v6 = vpop.eup %4012 }
 0x359   : > { %v3426_v44 = vmul.f32 %v4013_v6, %v3362_v10  ;;  %v3609_v10 = vld [vmem:[%s7767_s5 + $0x8] sm:$0xff] }
 0x35a   : > { %v3955_v36 = vpack.c.bf16 %v3609_v10, %v3608_v51 }
 0x35b   : > { %3936 = vmatprep.mubr.msk.f32.mxu0 %vm3322_vm8, %v3426_v44 }
 0x35c   : > { %3956 = vmatprep.subr.bf16.mxu1 %v3955_v36 }
 0x35d   : > { %3958 = vmatpush3.bf16.msra.mxu1 %v3955_v36 }
 0x38d   : > { %v3395_v54 = vpop.xlane.xlu1 %3394 }
 0x38e   : > { %v3403_v25 = vmul.f32 0.25, %v3395_v54 }
 0x390   : > { %v3411_v17 = vadd.f32 1e-06, %v3403_v25  ;;  %v3892_v25 = vld [vmem:[%s7768_s6] ss:$0 sm:$0xff] }
 0x392   : > { %4014 = vrsqrt.f32 %v3411_v17 }
 0x39c   : > { %v4015_v32 = vpop.eup %4014 }
 0x39d   : > { %v3427_v11 = vmul.f32 %v4015_v32, %v3363_v24  ;;  %v3750_v32 = vld [vmem:[%s3748_s21 + $0x8] sm:$0xff] }
 0x39f   : > { %3937 = vmatmul.mubr.msk.f32.gmra.mrb[6].mxu0 %vm3322_vm8, %v3427_v11 }
 0x3e1   : > { %v3929_v26 = vpop.f32.mrb[0].mxu0 }
 0x3e2   : > { %v3535_v18 = vadd.f32 %v3929_v26, %v7702_v38  ;;  %v3529_v50 = vpop.f32.mrb[1].mxu0  ;;  %v3749_v26 = vld [vmem:[%s3748_s21] sm:$0xff] }
 0x3e3   : > { %v3530_v29 = vadd.f32 %v7702_v38, %v3529_v50 }
 0x3e4   : > { %v3577_v52 = vmul.f32 0.70710677, %v3535_v18  ;;  %v3569_v58 = vmul.f32 0.5, %v3535_v18  ;;  %v3752_v18 = vld [vmem:[%s3748_s21 + $0x18] sm:$0xff] }
 0x3e5   : > { %v3576_v59 = vmul.f32 0.70710677, %v3530_v29  ;;  %v3932_v13 = vpop.f32.mrb[2].mxu0  ;;  %v3568_v33 = vmul.f32 0.5, %v3530_v29  ;;  %v3751_v29 = vld [vmem:[%s3748_s21 + $0x10] sm:$0xff] }
 0x3e6   : > { %4016 = verf.f32 %v3577_v52  ;;  %v3545_v20 = vadd.f32 %v3932_v13, %v7702_v38  ;;  %v3539_v27 = vpop.f32.mrb[3].mxu0  ;;  %v3754_v52 = vld [vmem:[%s3748_s21 + $0x28] sm:$0xff] }
 0x3e7   : > { %4018 = verf.f32 %v3576_v59  ;;  %v3540_v46 = vadd.f32 %v7702_v38, %v3539_v27  ;;  %v3753_v59 = vld [vmem:[%s3748_s21 + $0x20] sm:$0xff] }
 0x3e8   : > { %v3579_v21 = vmul.f32 0.70710677, %v3545_v20  ;;  %v3571_v63 = vmul.f32 0.5, %v3545_v20 }
 0x3e9   : > { %v3578_v61 = vmul.f32 0.70710677, %v3540_v46  ;;  %v3570_v47 = vmul.f32 0.5, %v3540_v46  ;;  %v3756_v46 = vld [vmem:[%s3748_s21 + $0x38] sm:$0xff] }
 0x3ea   : > { %4020 = verf.f32 %v3579_v21  ;;  %v3755_v21 = vld [vmem:[%s3748_s21 + $0x30] sm:$0xff] }
 0x3eb   : > { %4022 = verf.f32 %v3578_v61 }
 0x3f0   : > { %v4017_v45 = vpop.eup %4016 }
 0x3f1   : > { %v4019_v31 = vpop.eup %4018  ;;  %v3593_v53 = vadd.f32 1.0, %v4017_v45 }
 0x3f2   : > { %v3592_v12 = vadd.f32 1.0, %v4019_v31 }
 0x3f3   : > { %v3601_v19 = vmul.f32 %v3593_v53, %v3569_v58 }
 0x3f4   : > { %v4021_v34 = vpop.eup %4020  ;;  %v3600_v24 = vmul.f32 %v3592_v12, %v3568_v33 }
 0x3f5   : > { %v4023_v3 = vpop.eup %4022  ;;  %v3595_v30 = vadd.f32 1.0, %v4021_v34 }
 0x3f6   : > { %v3594_v40 = vadd.f32 1.0, %v4023_v3  ;;  %3943 = vmatprep.mubr.msk.f32.mxu1 %vm3617_vm9, %v3600_v24 }
 0x3f7   : > { %3944 = vmatmul.mubr.msk.f32.vlgmr.msra.gmra.mrb[0].mxu1 %vm3617_vm9, %v3601_v19  ;;  %v3603_v57 = vmul.f32 %v3595_v30, %v3571_v63 }
 0x3f8   : > { %v3602_v43 = vmul.f32 %v3594_v40, %v3570_v47 }
 0x3fa   : > { %3946 = vmatprep.mubr.msk.f32.mxu1 %vm3617_vm9, %v3602_v43 }
 0x3fb   : > { %3947 = vmatmul.mubr.msk.f32.gmra.mrb[2].mxu1 %vm3617_vm9, %v3603_v57 }
 0x400   : > { %v3935_v16 = vpop.f32.mrb[4].mxu0 }
 0x401   : > { %v3555_v0 = vadd.f32 %v3935_v16, %v7702_v38  ;;  %v3549_v39 = vpop.f32.mrb[5].mxu0 }
 0x402   : > { %v3550_v28 = vadd.f32 %v7702_v38, %v3549_v39 }
 0x403   : > { %v3581_v35 = vmul.f32 0.70710677, %v3555_v0  ;;  %v3573_v22 = vmul.f32 0.5, %v3555_v0 }
 0x404   : > { %v3580_v9 = vmul.f32 0.70710677, %v3550_v28  ;;  %v3572_v7 = vmul.f32 0.5, %v3550_v28 }
 0x405   : > { %4024 = verf.f32 %v3581_v35 }
 0x406   : > { %4026 = verf.f32 %v3580_v9 }
 0x40f   : > { %v4025_v37 = vpop.eup %4024 }
 0x410   : > { %v4027_v42 = vpop.eup %4026  ;;  %v3597_v56 = vadd.f32 1.0, %v4025_v37 }
 0x411   : > { %v3596_v1 = vadd.f32 1.0, %v4027_v42 }
 0x412   : > { %v3605_v41 = vmul.f32 %v3597_v56, %v3573_v22 }
 0x413   : > { %v3604_v48 = vmul.f32 %v3596_v1, %v3572_v7 }
 0x415   : > { %3949 = vmatprep.mubr.msk.f32.mxu1 %vm3617_vm9, %v3604_v48 }
 0x416   : > { %3950 = vmatmul.mubr.msk.f32.gmra.mrb[4].mxu1 %vm3617_vm9, %v3605_v41 }
 0x472   : > { %v3938_v60 = vpop.f32.mrb[6].mxu0 }
 0x473   : > { %v3565_v55 = vadd.f32 %v3938_v60, %v7702_v38  ;;  %v3559_v14 = vpop.f32.mrb[7].mxu0 }
 0x474   : > { %v3560_v15 = vadd.f32 %v7702_v38, %v3559_v14 }
 0x475   : > { %v3583_v23 = vmul.f32 0.70710677, %v3565_v55  ;;  %v3575_v6 = vmul.f32 0.5, %v3565_v55 }
 0x476   : > { %v3582_v2 = vmul.f32 0.70710677, %v3560_v15  ;;  %v3574_v4 = vmul.f32 0.5, %v3560_v15 }
 0x477   : > { %4028 = verf.f32 %v3583_v23 }
 0x478   : > { %4030 = verf.f32 %v3582_v2 }
 0x481   : > { %v4029_v8 = vpop.eup %4028 }
 0x482   : > { %v4031_v5 = vpop.eup %4030  ;;  %v3599_v62 = vadd.f32 1.0, %v4029_v8 }
 0x483   : > { %v3598_v49 = vadd.f32 1.0, %v4031_v5 }
 0x484   : > { %v3607_v54 = vmul.f32 %v3599_v62, %v3575_v6 }
 0x485   : > { %v3606_v44 = vmul.f32 %v3598_v49, %v3574_v4 }
 0x487   : > { %3952 = vmatprep.mubr.msk.f32.mxu1 %vm3617_vm9, %v3606_v44 }
 0x488   : > { %3953 = vmatmul.mubr.msk.f32.gmra.mrb[6].mxu1 %vm3617_vm9, %v3607_v54 }
 0x4ca   : > { %v3945_v17 = vpop.f32.mrb[0].mxu1 }
 0x4cb   : > { %v3714_v11 = vadd.f32 %v3945_v17, %v3892_v25  ;;  %v3708_v38 = vpop.f32.mrb[1].mxu1 }
 0x4cc   : > { %v3709_v50 = vadd.f32 %v3892_v25, %v3708_v38 }
 0x4cd   : > { %v3758_v13 = vadd.f32 %v3750_v32, %v3714_v11 }
 0x4ce   : > { %v3757_v20 = vadd.f32 %v3749_v26, %v3709_v50  ;;  %v3948_v27 = vpop.f32.mrb[2].mxu1 }
 0x4cf   : > { %v3724_v61 = vadd.f32 %v3948_v27, %v3892_v25  ;;  %v3718_v45 = vpop.f32.mrb[3].mxu1  ;;  %3766 = vst.msk [vmem:[%s4183_s19 + $0x8] sm:$0xff] %vm3322_vm8, %v3758_v13 }
 0x4d0   : > { %v3719_v51 = vadd.f32 %v3892_v25, %v3718_v45  ;;  %3765 = vst.msk [vmem:[%s4183_s19] sm:$0xff] %vm3322_vm8, %v3757_v20 }
 0x4d1   : > { %v3760_v10 = vadd.f32 %v3752_v18, %v3724_v61 }
 0x4d2   : > { %v3759_v31 = vadd.f32 %v3751_v29, %v3719_v51 }
 0x4d3   : > { %3768 = vst.msk [vmem:[%s4183_s19 + $0x18] sm:$0xff] %vm3322_vm8, %v3760_v10 }
 0x4d4   : > { %3767 = vst.msk [vmem:[%s4183_s19 + $0x10] sm:$0xff] %vm3322_vm8, %v3759_v31 }
 0x4e9   : > { %v3951_v53 = vpop.f32.mrb[4].mxu1 }
 0x4ea   : > { %v3734_v36 = vadd.f32 %v3951_v53, %v3892_v25  ;;  %v3728_v33 = vpop.f32.mrb[5].mxu1 }
 0x4eb   : > { %v3729_v12 = vadd.f32 %v3892_v25, %v3728_v33 }
 0x4ec   : > { %v3762_v58 = vadd.f32 %v3754_v52, %v3734_v36 }
 0x4ed   : > { %v3761_v34 = vadd.f32 %v3753_v59, %v3729_v12 }
 0x4ee   : > { %3770 = vst.msk [vmem:[%s4183_s19 + $0x28] sm:$0xff] %vm3322_vm8, %v3762_v58 }
 0x4ef   : > { %3769 = vst.msk [vmem:[%s4183_s19 + $0x20] sm:$0xff] %vm3322_vm8, %v3761_v34 }
 0x55b   : > { %v3954_v24 = vpop.f32.mrb[6].mxu1 }
 0x55c   : > { %v3744_v3 = vadd.f32 %v3954_v24, %v3892_v25  ;;  %v3738_v19 = vpop.f32.mrb[7].mxu1 }
 0x55d   : > { %v3739_v30 = vadd.f32 %v3892_v25, %v3738_v19 }
 0x55e   : > { %v3764_v47 = vadd.f32 %v3756_v46, %v3744_v3 }
 0x55f   : > { %v3763_v40 = vadd.f32 %v3755_v21, %v3739_v30 }
 0x560   : > { %3772 = vst.msk [vmem:[%s4183_s19 + $0x38] sm:$0xff] %vm3322_vm8, %v3764_v47 }
 0x561   : > { %3771 = vst.msk [vmem:[%s4183_s19 + $0x30] sm:$0xff] %vm3322_vm8, %v3763_v40 }
 0x562 PF: > { %s17_s28 = sadd.s32 1, %s4099_s28   ;;  %s9032_s24 = smov %s4091_s26 }
 0x563   : > { %p14_p8 = scmp.ge.s32.totalorder %s17_s28, 10   ;;  %s9033_s25 = smov %s4095_s27 }
 0x564   : > { %s9034_s26 = smov %s9037_s29  ;;  %s9035_s27 = smov %s9041_s30 }
 0x565   :  { %16 = sbr.rel (!%p14_p8) target bundleno = 3 (0x3), region = 85 }

</bundles_post_ra>
